<compile_context>
chip_gen: v7x
topology: tpu7x:2x2x1
jax: 0.10.0
libtpu: 0.0.40
codegen_flags: <defaults>
</compile_context>

<pallas_src>
import functools
import math

import jax
import jax.numpy as jnp
from jax import lax
from jax.experimental import pallas as pl
from jax.experimental.pallas import tpu as pltpu


def _self_attention_layer_kernel(*refs, nhead, d_head, scale, eps, has_pos):
    if has_pos:
        (x_ref, pos_ref, wqk_ref, bqk_ref, wv_ref, bv_ref,
         wo_ref, bo_ref, g_ref, b_ref, o_ref) = refs
    else:
        (x_ref, wqk_ref, bqk_ref, wv_ref, bv_ref,
         wo_ref, bo_ref, g_ref, b_ref, o_ref) = refs
    E = nhead * d_head

    x = x_ref[...].astype(jnp.float32)                         # (L, E): value + residual input
    xp = x + pos_ref[...].astype(jnp.float32) if has_pos else x  # q/k input (with pos embed)

    # Fused, lane-dense projections: one 2E-wide and one E-wide matmul, bf16 in / f32 out.
    qk = jnp.dot(xp.astype(jnp.bfloat16), wqk_ref[...],
                 preferred_element_type=jnp.float32) + bqk_ref[...]        # (L, 2E)
    v = jnp.dot(x.astype(jnp.bfloat16), wv_ref[...],
                preferred_element_type=jnp.float32) + bv_ref[...]          # (L, E)

    qb = (qk[:, :E] * scale).astype(jnp.bfloat16)   # scale in f32 before the bf16 cast
    kb = qk[:, E:].astype(jnp.bfloat16)
    vb = v.astype(jnp.bfloat16)

    # Per-head (L,L) scaled-dot-product core; heads re-joined along lanes so the
    # out-projection below is a single dense (L,E)@(E,E) matmul.
    # TODO(synk): for large L this full (L,L) softmax needs flash-style KV tiling.
    ctx_heads = []
    for h in range(nhead):                                      # static unroll, nhead small
        sl = slice(h * d_head, (h + 1) * d_head)
        s = lax.dot_general(qb[:, sl], kb[:, sl], (((1,), (1,)), ((), ())),
                            preferred_element_type=jnp.float32)            # (L, L)
        s = s - jnp.max(s, axis=-1, keepdims=True)
        p = jnp.exp(s)
        p = p * pl.reciprocal(jnp.sum(p, axis=-1, keepdims=True), approx=True)
        ctx_heads.append(jnp.dot(p.astype(jnp.bfloat16), vb[:, sl],
                                 preferred_element_type=jnp.float32))      # (L, D)
    ctx = jnp.concatenate(ctx_heads, axis=-1)                              # (L, E)

    attn = jnp.dot(ctx.astype(jnp.bfloat16), wo_ref[...],
                   preferred_element_type=jnp.float32) + bo_ref[...]       # (L, E)

    # Residual + LayerNorm, f32 elementwise, lane-dense (E = multiple of 128) store.
    y = x + attn
    mu = jnp.mean(y, axis=-1, keepdims=True)
    var = jnp.mean((y - mu) * (y - mu), axis=-1, keepdims=True)
    yhat = (y - mu) * lax.rsqrt(var + eps)
    o_ref[...] = (yhat * g_ref[...] + b_ref[...]).astype(o_ref.dtype)


def self_attention_layer(tgt, query_pos, params, nhead, eps=1e-5):
    """Fused SelfAttentionLayer.forward_post (normalize_before=False, dropout=0).

    tgt, query_pos: (L, N, E) seq-first like PyTorch. query_pos may be None.
    params (PyTorch layout): in_proj_weight (3E,E), in_proj_bias (3E,),
      out_proj_weight (E,E), out_proj_bias (E,), norm_weight (E,), norm_bias (E,).
    """
    # TODO(synk): attn_mask / key_padding_mask and the normalize_before=True
    # (pre-norm) path are not implemented; the default config passes None / post-norm.
    L, N, E = tgt.shape
    assert E % nhead == 0
    assert E % 128 == 0, "lane-dense design assumes d_model is a multiple of 128"
    D = E // nhead
    has_pos = query_pos is not None

    in_w = params["in_proj_weight"].astype(jnp.float32)
    in_b = params["in_proj_bias"].astype(jnp.float32)
    out_w = params["out_proj_weight"].astype(jnp.float32)
    out_b = params["out_proj_bias"].astype(jnp.float32)

    # Dense, lane-wide weight layouts (no per-head padding). Column order of w_qk[:, :E]
    # / w_qk[:, E:] is PyTorch's q/k feature order, so lane-slice h*D:(h+1)*D is head h.
    w_qk = jnp.concatenate([in_w[:E].T, in_w[E:2 * E].T], axis=1).astype(jnp.bfloat16)  # (E, 2E)
    b_qk = in_b[:2 * E].reshape(1, 2 * E)
    w_v = in_w[2 * E:].T.astype(jnp.bfloat16)                                           # (E, E)
    b_v = in_b[2 * E:].reshape(1, E)
    w_o = out_w.T.astype(jnp.bfloat16)                                                  # (E, E)
    b_o = out_b.reshape(1, E)
    g = params["norm_weight"].astype(jnp.float32).reshape(1, E)
    b = params["norm_bias"].astype(jnp.float32).reshape(1, E)

    # (L, N, E) -> (L, N*E) is a free contiguous reshape (NO transpose); column block n
    # of width E is exactly batch n's tokens. Output comes back the same way.
    operands = [tgt.reshape(L, N * E)]
    if has_pos:
        operands.append(query_pos.reshape(L, N * E))
    operands += [w_qk, b_qk, w_v, b_v, w_o, b_o, g, b]

    kernel = functools.partial(
        _self_attention_layer_kernel,
        nhead=nhead, d_head=D, scale=1.0 / math.sqrt(D), eps=float(eps),
        has_pos=has_pos)

    def build(single_buffer_weights):
        # Constant-index operands don't need double-buffering; Buffered(1) halves
        # their VMEM footprint (matters as E scales on v7x's 64 MiB VMEM).
        pm = {"pipeline_mode": pl.Buffered(1)} if single_buffer_weights else {}

        def const_spec(shape):
            return pl.BlockSpec(shape, lambda n: (0,) * len(shape), **pm)

        tok_spec = pl.BlockSpec((L, E), lambda n: (0, n))
        in_specs = [tok_spec] + ([tok_spec] if has_pos else []) + [
            const_spec((E, 2 * E)), const_spec((1, 2 * E)),   # w_qk, b_qk
            const_spec((E, E)), const_spec((1, E)),           # w_v, b_v
            const_spec((E, E)), const_spec((1, E)),           # w_o, b_o
            const_spec((1, E)), const_spec((1, E)),           # gamma, beta
        ]
        return pl.pallas_call(
            kernel,
            out_shape=jax.ShapeDtypeStruct((L, N * E), tgt.dtype),
            grid_spec=pltpu.PrefetchScalarGridSpec(
                num_scalar_prefetch=0,
                grid=(N,),
                in_specs=in_specs,
                out_specs=pl.BlockSpec((L, E), lambda n: (0, n)),
            ),
            compiler_params=pltpu.CompilerParams(
                dimension_semantics=("parallel",),   # batch splits across v7x's 2 TCs
            ),
        )

    try:
        out2 = build(True)(*operands)
    except Exception:
        # Fallback if this JAX build rejects single-buffered (pl.Buffered(1)) operands.
        out2 = build(False)(*operands)

    return out2.reshape(L, N, E)


def _reference(tgt, query_pos, params, nhead, eps=1e-5):
    """Pure-JAX f32 reference matching PyTorch nn.MultiheadAttention + residual + LayerNorm."""
    L, N, E = tgt.shape
    H, D = nhead, E // nhead
    in_w, in_b = params["in_proj_weight"], params["in_proj_bias"]
    qk_in = tgt + (query_pos if query_pos is not None else 0.0)
    q = qk_in @ in_w[:E].T + in_b[:E]
    k = qk_in @ in_w[E:2 * E].T + in_b[E:2 * E]
    v = tgt @ in_w[2 * E:].T + in_b[2 * E:]

    def split(t):                       # (L, N, E) -> (N, H, L, D)
        return t.reshape(L, N, H, D).transpose(1, 2, 0, 3)

    qh, kh, vh = split(q), split(k), split(v)
    s = jnp.einsum("nhqd,nhkd->nhqk", qh, kh) / math.sqrt(D)
    p = jax.nn.softmax(s, axis=-1)
    ctx = jnp.einsum("nhqk,nhkd->nhqd", p, vh)
    ctx = ctx.transpose(2, 0, 1, 3).reshape(L, N, E)      # head-major concat, like PyTorch
    attn_out = ctx @ params["out_proj_weight"].T + params["out_proj_bias"]
    y = tgt + attn_out
    mu = y.mean(-1, keepdims=True)
    var = ((y - mu) ** 2).mean(-1, keepdims=True)
    yhat = (y - mu) / jnp.sqrt(var + eps)
    return yhat * params["norm_weight"] + params["norm_bias"]


if __name__ == "__main__":
    key = jax.random.PRNGKey(0)
    keys = jax.random.split(key, 8)

    # Small shapes implied by the module: seq L=8, batch N=2, d_model=128, nhead=8.
    L, N, E, H = 8, 2, 128, 8

    tgt = jax.random.normal(keys[0], (L, N, E), dtype=jnp.float32)
    query_pos = jax.random.normal(keys[1], (L, N, E), dtype=jnp.float32)

    params = {
        "in_proj_weight": jax.random.normal(keys[2], (3 * E, E), jnp.float32) * 0.05,
        "in_proj_bias": jax.random.normal(keys[3], (3 * E,), jnp.float32) * 0.1,
        "out_proj_weight": jax.random.normal(keys[4], (E, E), jnp.float32) * 0.05,
        "out_proj_bias": jax.random.normal(keys[5], (E,), jnp.float32) * 0.1,
        "norm_weight": 1.0 + 0.1 * jax.random.normal(keys[6], (E,), jnp.float32),
        "norm_bias": 0.1 * jax.random.normal(keys[7], (E,), jnp.float32),
    }

    out = self_attention_layer(tgt, query_pos, params, nhead=H)
    out = jax.block_until_ready(out)

    ref = _reference(tgt, query_pos, params, nhead=H)
    assert out.shape == (L, N, E)
    # Tolerance loosened vs. f32: matmul operands are fed to the MXU in bf16
    # (f32 accumulation) per the perf feedback.
    err = float(jnp.max(jnp.abs(out - ref)))
    assert jnp.allclose(out, ref, atol=3e-2, rtol=3e-2), err

    print("KERNEL_OK")
</pallas_src>

<mosaic_0001>
module attributes {stable_mosaic.version = 11 : i64} {
  func.func @_self_attention_layer_kernel(%arg0: i32, %arg1: memref<8x128xf32, #tpu.memory_space<vmem>>, %arg2: memref<8x128xf32, #tpu.memory_space<vmem>>, %arg3: memref<128x256xbf16, #tpu.memory_space<vmem>>, %arg4: memref<1x256xf32, #tpu.memory_space<vmem>>, %arg5: memref<128x128xbf16, #tpu.memory_space<vmem>>, %arg6: memref<1x128xf32, #tpu.memory_space<vmem>>, %arg7: memref<128x128xbf16, #tpu.memory_space<vmem>>, %arg8: memref<1x128xf32, #tpu.memory_space<vmem>>, %arg9: memref<1x128xf32, #tpu.memory_space<vmem>>, %arg10: memref<1x128xf32, #tpu.memory_space<vmem>>, %arg11: memref<8x128xf32, #tpu.memory_space<vmem>>) attributes {dimension_semantics = [#tpu.dimension_semantics<parallel>], iteration_bounds = array<i64: 2>, scalar_prefetch = 0 : i64, scratch_operands = 0 : i64, tpu.core_type = #tpu.core_type<tc>, window_params = [{transform_indices = @transform_0, window_bounds = array<i64: 8, 128>}, {transform_indices = @transform_1, window_bounds = array<i64: 8, 128>}, {pipeline_mode = #tpu.pipeline_mode<synchronous>, transform_indices = @transform_2, window_bounds = array<i64: 128, 256>}, {pipeline_mode = #tpu.pipeline_mode<synchronous>, transform_indices = @transform_3, window_bounds = array<i64: 1, 256>}, {pipeline_mode = #tpu.pipeline_mode<synchronous>, transform_indices = @transform_4, window_bounds = array<i64: 128, 128>}, {pipeline_mode = #tpu.pipeline_mode<synchronous>, transform_indices = @transform_5, window_bounds = array<i64: 1, 128>}, {pipeline_mode = #tpu.pipeline_mode<synchronous>, transform_indices = @transform_6, window_bounds = array<i64: 128, 128>}, {pipeline_mode = #tpu.pipeline_mode<synchronous>, transform_indices = @transform_7, window_bounds = array<i64: 1, 128>}, {pipeline_mode = #tpu.pipeline_mode<synchronous>, transform_indices = @transform_8, window_bounds = array<i64: 1, 128>}, {pipeline_mode = #tpu.pipeline_mode<synchronous>, transform_indices = @transform_9, window_bounds = array<i64: 1, 128>}, {transform_indices = @transform_10, window_bounds = array<i64: 8, 128>}]} {
    %c0 = arith.constant 0 : index
    %c0_0 = arith.constant 0 : index
    %0 = vector.load %arg1[%c0, %c0_0] : memref<8x128xf32, #tpu.memory_space<vmem>>, vector<8x128xf32>
    %c0_1 = arith.constant 0 : index
    %c0_2 = arith.constant 0 : index
    %1 = vector.load %arg2[%c0_1, %c0_2] : memref<8x128xf32, #tpu.memory_space<vmem>>, vector<8x128xf32>
    %2 = arith.addf %0, %1 : vector<8x128xf32>
    %3 = arith.truncf %2 : vector<8x128xf32> to vector<8x128xbf16>
    %c0_3 = arith.constant 0 : index
    %c0_4 = arith.constant 0 : index
    %4 = vector.load %arg3[%c0_3, %c0_4] : memref<128x256xbf16, #tpu.memory_space<vmem>>, vector<128x256xbf16>
    %cst = arith.constant dense<0.000000e+00> : vector<8x256xf32>
    %5 = tpu.matmul %3, %4, %cst {dimension_numbers = #tpu.dot_dimension_numbers<[1], [0], [0], [1], [0, 0, 1, 1], [], []>} : vector<8x128xbf16>, vector<128x256xbf16>, vector<8x256xf32> -> vector<8x256xf32>
    %c0_5 = arith.constant 0 : index
    %c0_6 = arith.constant 0 : index
    %6 = vector.load %arg4[%c0_5, %c0_6] : memref<1x256xf32, #tpu.memory_space<vmem>>, vector<1x256xf32>
    %7 = vector.broadcast %6 : vector<1x256xf32> to vector<8x256xf32>
    %8 = arith.addf %5, %7 : vector<8x256xf32>
    %9 = arith.truncf %0 : vector<8x128xf32> to vector<8x128xbf16>
    %c0_7 = arith.constant 0 : index
    %c0_8 = arith.constant 0 : index
    %10 = vector.load %arg5[%c0_7, %c0_8] : memref<128x128xbf16, #tpu.memory_space<vmem>>, vector<128x128xbf16>
    %cst_9 = arith.constant dense<0.000000e+00> : vector<8x128xf32>
    %11 = tpu.matmul %9, %10, %cst_9 {dimension_numbers = #tpu.dot_dimension_numbers<[1], [0], [0], [1], [0, 0, 1, 1], [], []>} : vector<8x128xbf16>, vector<128x128xbf16>, vector<8x128xf32> -> vector<8x128xf32>
    %c0_10 = arith.constant 0 : index
    %c0_11 = arith.constant 0 : index
    %12 = vector.load %arg6[%c0_10, %c0_11] : memref<1x128xf32, #tpu.memory_space<vmem>>, vector<1x128xf32>
    %13 = vector.broadcast %12 : vector<1x128xf32> to vector<8x128xf32>
    %14 = arith.addf %11, %13 : vector<8x128xf32>
    %15 = vector.extract_strided_slice %8 {offsets = [0, 0], sizes = [8, 128], strides = [1, 1]} : vector<8x256xf32> to vector<8x128xf32>
    %cst_12 = arith.constant 2.500000e-01 : f32
    %16 = vector.broadcast %cst_12 : f32 to vector<8x128xf32>
    %17 = arith.mulf %15, %16 : vector<8x128xf32>
    %18 = arith.truncf %17 : vector<8x128xf32> to vector<8x128xbf16>
    %19 = vector.extract_strided_slice %8 {offsets = [0, 128], sizes = [8, 128], strides = [1, 1]} : vector<8x256xf32> to vector<8x128xf32>
    %20 = arith.truncf %19 : vector<8x128xf32> to vector<8x128xbf16>
    %21 = arith.truncf %14 : vector<8x128xf32> to vector<8x128xbf16>
    %22 = vector.extract_strided_slice %18 {offsets = [0, 0], sizes = [8, 16], strides = [1, 1]} : vector<8x128xbf16> to vector<8x16xbf16>
    %23 = vector.extract_strided_slice %20 {offsets = [0, 0], sizes = [8, 16], strides = [1, 1]} : vector<8x128xbf16> to vector<8x16xbf16>
    %cst_13 = arith.constant dense<0.000000e+00> : vector<8x8xf32>
    %24 = tpu.matmul %22, %23, %cst_13 {dimension_numbers = #tpu.dot_dimension_numbers<[1], [1], [0], [0], [0, 0, 1, 0], [], []>} : vector<8x16xbf16>, vector<8x16xbf16>, vector<8x8xf32> -> vector<8x8xf32>
    %cst_14 = arith.constant dense<0xFF800000> : vector<8xf32>
    %25 = vector.multi_reduction <maximumf>, %24, %cst_14 [1] : vector<8x8xf32> to vector<8xf32>
    %26 = vector.shape_cast %25 : vector<8xf32> to vector<8x1xf32>
    %27 = vector.broadcast %26 : vector<8x1xf32> to vector<8x8xf32>
    %28 = arith.subf %24, %27 : vector<8x8xf32>
    %29 = math.exp %28 : vector<8x8xf32>
    %cst_15 = arith.constant dense<0.000000e+00> : vector<8xf32>
    %30 = vector.multi_reduction <add>, %29, %cst_15 [1] : vector<8x8xf32> to vector<8xf32>
    %31 = vector.shape_cast %30 : vector<8xf32> to vector<8x1xf32>
    %32 = tpu.reciprocal %31 {approx = true} : vector<8x1xf32> -> vector<8x1xf32>
    %33 = vector.broadcast %32 : vector<8x1xf32> to vector<8x8xf32>
    %34 = arith.mulf %29, %33 : vector<8x8xf32>
    %35 = arith.truncf %34 : vector<8x8xf32> to vector<8x8xbf16>
    %36 = vector.extract_strided_slice %21 {offsets = [0, 0], sizes = [8, 16], strides = [1, 1]} : vector<8x128xbf16> to vector<8x16xbf16>
    %cst_16 = arith.constant dense<0.000000e+00> : vector<8x16xf32>
    %37 = tpu.matmul %35, %36, %cst_16 {dimension_numbers = #tpu.dot_dimension_numbers<[1], [0], [0], [1], [0, 0, 1, 1], [], []>} : vector<8x8xbf16>, vector<8x16xbf16>, vector<8x16xf32> -> vector<8x16xf32>
    %38 = vector.extract_strided_slice %18 {offsets = [0, 16], sizes = [8, 16], strides = [1, 1]} : vector<8x128xbf16> to vector<8x16xbf16>
    %39 = vector.extract_strided_slice %20 {offsets = [0, 16], sizes = [8, 16], strides = [1, 1]} : vector<8x128xbf16> to vector<8x16xbf16>
    %cst_17 = arith.constant dense<0.000000e+00> : vector<8x8xf32>
    %40 = tpu.matmul %38, %39, %cst_17 {dimension_numbers = #tpu.dot_dimension_numbers<[1], [1], [0], [0], [0, 0, 1, 0], [], []>} : vector<8x16xbf16>, vector<8x16xbf16>, vector<8x8xf32> -> vector<8x8xf32>
    %cst_18 = arith.constant dense<0xFF800000> : vector<8xf32>
    %41 = vector.multi_reduction <maximumf>, %40, %cst_18 [1] : vector<8x8xf32> to vector<8xf32>
    %42 = vector.shape_cast %41 : vector<8xf32> to vector<8x1xf32>
    %43 = vector.broadcast %42 : vector<8x1xf32> to vector<8x8xf32>
    %44 = arith.subf %40, %43 : vector<8x8xf32>
    %45 = math.exp %44 : vector<8x8xf32>
    %cst_19 = arith.constant dense<0.000000e+00> : vector<8xf32>
    %46 = vector.multi_reduction <add>, %45, %cst_19 [1] : vector<8x8xf32> to vector<8xf32>
    %47 = vector.shape_cast %46 : vector<8xf32> to vector<8x1xf32>
    %48 = tpu.reciprocal %47 {approx = true} : vector<8x1xf32> -> vector<8x1xf32>
    %49 = vector.broadcast %48 : vector<8x1xf32> to vector<8x8xf32>
    %50 = arith.mulf %45, %49 : vector<8x8xf32>
    %51 = arith.truncf %50 : vector<8x8xf32> to vector<8x8xbf16>
    %52 = vector.extract_strided_slice %21 {offsets = [0, 16], sizes = [8, 16], strides = [1, 1]} : vector<8x128xbf16> to vector<8x16xbf16>
    %cst_20 = arith.constant dense<0.000000e+00> : vector<8x16xf32>
    %53 = tpu.matmul %51, %52, %cst_20 {dimension_numbers = #tpu.dot_dimension_numbers<[1], [0], [0], [1], [0, 0, 1, 1], [], []>} : vector<8x8xbf16>, vector<8x16xbf16>, vector<8x16xf32> -> vector<8x16xf32>
    %54 = vector.extract_strided_slice %18 {offsets = [0, 32], sizes = [8, 16], strides = [1, 1]} : vector<8x128xbf16> to vector<8x16xbf16>
    %55 = vector.extract_strided_slice %20 {offsets = [0, 32], sizes = [8, 16], strides = [1, 1]} : vector<8x128xbf16> to vector<8x16xbf16>
    %cst_21 = arith.constant dense<0.000000e+00> : vector<8x8xf32>
    %56 = tpu.matmul %54, %55, %cst_21 {dimension_numbers = #tpu.dot_dimension_numbers<[1], [1], [0], [0], [0, 0, 1, 0], [], []>} : vector<8x16xbf16>, vector<8x16xbf16>, vector<8x8xf32> -> vector<8x8xf32>
    %cst_22 = arith.constant dense<0xFF800000> : vector<8xf32>
    %57 = vector.multi_reduction <maximumf>, %56, %cst_22 [1] : vector<8x8xf32> to vector<8xf32>
    %58 = vector.shape_cast %57 : vector<8xf32> to vector<8x1xf32>
    %59 = vector.broadcast %58 : vector<8x1xf32> to vector<8x8xf32>
    %60 = arith.subf %56, %59 : vector<8x8xf32>
    %61 = math.exp %60 : vector<8x8xf32>
    %cst_23 = arith.constant dense<0.000000e+00> : vector<8xf32>
    %62 = vector.multi_reduction <add>, %61, %cst_23 [1] : vector<8x8xf32> to vector<8xf32>
    %63 = vector.shape_cast %62 : vector<8xf32> to vector<8x1xf32>
    %64 = tpu.reciprocal %63 {approx = true} : vector<8x1xf32> -> vector<8x1xf32>
    %65 = vector.broadcast %64 : vector<8x1xf32> to vector<8x8xf32>
    %66 = arith.mulf %61, %65 : vector<8x8xf32>
    %67 = arith.truncf %66 : vector<8x8xf32> to vector<8x8xbf16>
    %68 = vector.extract_strided_slice %21 {offsets = [0, 32], sizes = [8, 16], strides = [1, 1]} : vector<8x128xbf16> to vector<8x16xbf16>
    %cst_24 = arith.constant dense<0.000000e+00> : vector<8x16xf32>
    %69 = tpu.matmul %67, %68, %cst_24 {dimension_numbers = #tpu.dot_dimension_numbers<[1], [0], [0], [1], [0, 0, 1, 1], [], []>} : vector<8x8xbf16>, vector<8x16xbf16>, vector<8x16xf32> -> vector<8x16xf32>
    %70 = vector.extract_strided_slice %18 {offsets = [0, 48], sizes = [8, 16], strides = [1, 1]} : vector<8x128xbf16> to vector<8x16xbf16>
    %71 = vector.extract_strided_slice %20 {offsets = [0, 48], sizes = [8, 16], strides = [1, 1]} : vector<8x128xbf16> to vector<8x16xbf16>
    %cst_25 = arith.constant dense<0.000000e+00> : vector<8x8xf32>
    %72 = tpu.matmul %70, %71, %cst_25 {dimension_numbers = #tpu.dot_dimension_numbers<[1], [1], [0], [0], [0, 0, 1, 0], [], []>} : vector<8x16xbf16>, vector<8x16xbf16>, vector<8x8xf32> -> vector<8x8xf32>
    %cst_26 = arith.constant dense<0xFF800000> : vector<8xf32>
    %73 = vector.multi_reduction <maximumf>, %72, %cst_26 [1] : vector<8x8xf32> to vector<8xf32>
    %74 = vector.shape_cast %73 : vector<8xf32> to vector<8x1xf32>
    %75 = vector.broadcast %74 : vector<8x1xf32> to vector<8x8xf32>
    %76 = arith.subf %72, %75 : vector<8x8xf32>
    %77 = math.exp %76 : vector<8x8xf32>
    %cst_27 = arith.constant dense<0.000000e+00> : vector<8xf32>
    %78 = vector.multi_reduction <add>, %77, %cst_27 [1] : vector<8x8xf32> to vector<8xf32>
    %79 = vector.shape_cast %78 : vector<8xf32> to vector<8x1xf32>
    %80 = tpu.reciprocal %79 {approx = true} : vector<8x1xf32> -> vector<8x1xf32>
    %81 = vector.broadcast %80 : vector<8x1xf32> to vector<8x8xf32>
    %82 = arith.mulf %77, %81 : vector<8x8xf32>
    %83 = arith.truncf %82 : vector<8x8xf32> to vector<8x8xbf16>
    %84 = vector.extract_strided_slice %21 {offsets = [0, 48], sizes = [8, 16], strides = [1, 1]} : vector<8x128xbf16> to vector<8x16xbf16>
    %cst_28 = arith.constant dense<0.000000e+00> : vector<8x16xf32>
    %85 = tpu.matmul %83, %84, %cst_28 {dimension_numbers = #tpu.dot_dimension_numbers<[1], [0], [0], [1], [0, 0, 1, 1], [], []>} : vector<8x8xbf16>, vector<8x16xbf16>, vector<8x16xf32> -> vector<8x16xf32>
    %86 = vector.extract_strided_slice %18 {offsets = [0, 64], sizes = [8, 16], strides = [1, 1]} : vector<8x128xbf16> to vector<8x16xbf16>
    %87 = vector.extract_strided_slice %20 {offsets = [0, 64], sizes = [8, 16], strides = [1, 1]} : vector<8x128xbf16> to vector<8x16xbf16>
    %cst_29 = arith.constant dense<0.000000e+00> : vector<8x8xf32>
    %88 = tpu.matmul %86, %87, %cst_29 {dimension_numbers = #tpu.dot_dimension_numbers<[1], [1], [0], [0], [0, 0, 1, 0], [], []>} : vector<8x16xbf16>, vector<8x16xbf16>, vector<8x8xf32> -> vector<8x8xf32>
    %cst_30 = arith.constant dense<0xFF800000> : vector<8xf32>
    %89 = vector.multi_reduction <maximumf>, %88, %cst_30 [1] : vector<8x8xf32> to vector<8xf32>
    %90 = vector.shape_cast %89 : vector<8xf32> to vector<8x1xf32>
    %91 = vector.broadcast %90 : vector<8x1xf32> to vector<8x8xf32>
    %92 = arith.subf %88, %91 : vector<8x8xf32>
    %93 = math.exp %92 : vector<8x8xf32>
    %cst_31 = arith.constant dense<0.000000e+00> : vector<8xf32>
    %94 = vector.multi_reduction <add>, %93, %cst_31 [1] : vector<8x8xf32> to vector<8xf32>
    %95 = vector.shape_cast %94 : vector<8xf32> to vector<8x1xf32>
    %96 = tpu.reciprocal %95 {approx = true} : vector<8x1xf32> -> vector<8x1xf32>
    %97 = vector.broadcast %96 : vector<8x1xf32> to vector<8x8xf32>
    %98 = arith.mulf %93, %97 : vector<8x8xf32>
    %99 = arith.truncf %98 : vector<8x8xf32> to vector<8x8xbf16>
    %100 = vector.extract_strided_slice %21 {offsets = [0, 64], sizes = [8, 16], strides = [1, 1]} : vector<8x128xbf16> to vector<8x16xbf16>
    %cst_32 = arith.constant dense<0.000000e+00> : vector<8x16xf32>
    %101 = tpu.matmul %99, %100, %cst_32 {dimension_numbers = #tpu.dot_dimension_numbers<[1], [0], [0], [1], [0, 0, 1, 1], [], []>} : vector<8x8xbf16>, vector<8x16xbf16>, vector<8x16xf32> -> vector<8x16xf32>
    %102 = vector.extract_strided_slice %18 {offsets = [0, 80], sizes = [8, 16], strides = [1, 1]} : vector<8x128xbf16> to vector<8x16xbf16>
    %103 = vector.extract_strided_slice %20 {offsets = [0, 80], sizes = [8, 16], strides = [1, 1]} : vector<8x128xbf16> to vector<8x16xbf16>
    %cst_33 = arith.constant dense<0.000000e+00> : vector<8x8xf32>
    %104 = tpu.matmul %102, %103, %cst_33 {dimension_numbers = #tpu.dot_dimension_numbers<[1], [1], [0], [0], [0, 0, 1, 0], [], []>} : vector<8x16xbf16>, vector<8x16xbf16>, vector<8x8xf32> -> vector<8x8xf32>
    %cst_34 = arith.constant dense<0xFF800000> : vector<8xf32>
    %105 = vector.multi_reduction <maximumf>, %104, %cst_34 [1] : vector<8x8xf32> to vector<8xf32>
    %106 = vector.shape_cast %105 : vector<8xf32> to vector<8x1xf32>
    %107 = vector.broadcast %106 : vector<8x1xf32> to vector<8x8xf32>
    %108 = arith.subf %104, %107 : vector<8x8xf32>
    %109 = math.exp %108 : vector<8x8xf32>
    %cst_35 = arith.constant dense<0.000000e+00> : vector<8xf32>
    %110 = vector.multi_reduction <add>, %109, %cst_35 [1] : vector<8x8xf32> to vector<8xf32>
    %111 = vector.shape_cast %110 : vector<8xf32> to vector<8x1xf32>
    %112 = tpu.reciprocal %111 {approx = true} : vector<8x1xf32> -> vector<8x1xf32>
    %113 = vector.broadcast %112 : vector<8x1xf32> to vector<8x8xf32>
    %114 = arith.mulf %109, %113 : vector<8x8xf32>
    %115 = arith.truncf %114 : vector<8x8xf32> to vector<8x8xbf16>
    %116 = vector.extract_strided_slice %21 {offsets = [0, 80], sizes = [8, 16], strides = [1, 1]} : vector<8x128xbf16> to vector<8x16xbf16>
    %cst_36 = arith.constant dense<0.000000e+00> : vector<8x16xf32>
    %117 = tpu.matmul %115, %116, %cst_36 {dimension_numbers = #tpu.dot_dimension_numbers<[1], [0], [0], [1], [0, 0, 1, 1], [], []>} : vector<8x8xbf16>, vector<8x16xbf16>, vector<8x16xf32> -> vector<8x16xf32>
    %118 = vector.extract_strided_slice %18 {offsets = [0, 96], sizes = [8, 16], strides = [1, 1]} : vector<8x128xbf16> to vector<8x16xbf16>
    %119 = vector.extract_strided_slice %20 {offsets = [0, 96], sizes = [8, 16], strides = [1, 1]} : vector<8x128xbf16> to vector<8x16xbf16>
    %cst_37 = arith.constant dense<0.000000e+00> : vector<8x8xf32>
    %120 = tpu.matmul %118, %119, %cst_37 {dimension_numbers = #tpu.dot_dimension_numbers<[1], [1], [0], [0], [0, 0, 1, 0], [], []>} : vector<8x16xbf16>, vector<8x16xbf16>, vector<8x8xf32> -> vector<8x8xf32>
    %cst_38 = arith.constant dense<0xFF800000> : vector<8xf32>
    %121 = vector.multi_reduction <maximumf>, %120, %cst_38 [1] : vector<8x8xf32> to vector<8xf32>
    %122 = vector.shape_cast %121 : vector<8xf32> to vector<8x1xf32>
    %123 = vector.broadcast %122 : vector<8x1xf32> to vector<8x8xf32>
    %124 = arith.subf %120, %123 : vector<8x8xf32>
    %125 = math.exp %124 : vector<8x8xf32>
    %cst_39 = arith.constant dense<0.000000e+00> : vector<8xf32>
    %126 = vector.multi_reduction <add>, %125, %cst_39 [1] : vector<8x8xf32> to vector<8xf32>
    %127 = vector.shape_cast %126 : vector<8xf32> to vector<8x1xf32>
    %128 = tpu.reciprocal %127 {approx = true} : vector<8x1xf32> -> vector<8x1xf32>
    %129 = vector.broadcast %128 : vector<8x1xf32> to vector<8x8xf32>
    %130 = arith.mulf %125, %129 : vector<8x8xf32>
    %131 = arith.truncf %130 : vector<8x8xf32> to vector<8x8xbf16>
    %132 = vector.extract_strided_slice %21 {offsets = [0, 96], sizes = [8, 16], strides = [1, 1]} : vector<8x128xbf16> to vector<8x16xbf16>
    %cst_40 = arith.constant dense<0.000000e+00> : vector<8x16xf32>
    %133 = tpu.matmul %131, %132, %cst_40 {dimension_numbers = #tpu.dot_dimension_numbers<[1], [0], [0], [1], [0, 0, 1, 1], [], []>} : vector<8x8xbf16>, vector<8x16xbf16>, vector<8x16xf32> -> vector<8x16xf32>
    %134 = vector.extract_strided_slice %18 {offsets = [0, 112], sizes = [8, 16], strides = [1, 1]} : vector<8x128xbf16> to vector<8x16xbf16>
    %135 = vector.extract_strided_slice %20 {offsets = [0, 112], sizes = [8, 16], strides = [1, 1]} : vector<8x128xbf16> to vector<8x16xbf16>
    %cst_41 = arith.constant dense<0.000000e+00> : vector<8x8xf32>
    %136 = tpu.matmul %134, %135, %cst_41 {dimension_numbers = #tpu.dot_dimension_numbers<[1], [1], [0], [0], [0, 0, 1, 0], [], []>} : vector<8x16xbf16>, vector<8x16xbf16>, vector<8x8xf32> -> vector<8x8xf32>
    %cst_42 = arith.constant dense<0xFF800000> : vector<8xf32>
    %137 = vector.multi_reduction <maximumf>, %136, %cst_42 [1] : vector<8x8xf32> to vector<8xf32>
    %138 = vector.shape_cast %137 : vector<8xf32> to vector<8x1xf32>
    %139 = vector.broadcast %138 : vector<8x1xf32> to vector<8x8xf32>
    %140 = arith.subf %136, %139 : vector<8x8xf32>
    %141 = math.exp %140 : vector<8x8xf32>
    %cst_43 = arith.constant dense<0.000000e+00> : vector<8xf32>
    %142 = vector.multi_reduction <add>, %141, %cst_43 [1] : vector<8x8xf32> to vector<8xf32>
    %143 = vector.shape_cast %142 : vector<8xf32> to vector<8x1xf32>
    %144 = tpu.reciprocal %143 {approx = true} : vector<8x1xf32> -> vector<8x1xf32>
    %145 = vector.broadcast %144 : vector<8x1xf32> to vector<8x8xf32>
    %146 = arith.mulf %141, %145 : vector<8x8xf32>
    %147 = arith.truncf %146 : vector<8x8xf32> to vector<8x8xbf16>
    %148 = vector.extract_strided_slice %21 {offsets = [0, 112], sizes = [8, 16], strides = [1, 1]} : vector<8x128xbf16> to vector<8x16xbf16>
    %cst_44 = arith.constant dense<0.000000e+00> : vector<8x16xf32>
    %149 = tpu.matmul %147, %148, %cst_44 {dimension_numbers = #tpu.dot_dimension_numbers<[1], [0], [0], [1], [0, 0, 1, 1], [], []>} : vector<8x8xbf16>, vector<8x16xbf16>, vector<8x16xf32> -> vector<8x16xf32>
    %150 = tpu.concatenate %37, %53, %69, %85, %101, %117, %133, %149 in 1 : vector<8x16xf32>, vector<8x16xf32>, vector<8x16xf32>, vector<8x16xf32>, vector<8x16xf32>, vector<8x16xf32>, vector<8x16xf32>, vector<8x16xf32> -> vector<8x128xf32>
    %151 = arith.truncf %150 : vector<8x128xf32> to vector<8x128xbf16>
    %c0_45 = arith.constant 0 : index
    %c0_46 = arith.constant 0 : index
    %152 = vector.load %arg7[%c0_45, %c0_46] : memref<128x128xbf16, #tpu.memory_space<vmem>>, vector<128x128xbf16>
    %cst_47 = arith.constant dense<0.000000e+00> : vector<8x128xf32>
    %153 = tpu.matmul %151, %152, %cst_47 {dimension_numbers = #tpu.dot_dimension_numbers<[1], [0], [0], [1], [0, 0, 1, 1], [], []>} : vector<8x128xbf16>, vector<128x128xbf16>, vector<8x128xf32> -> vector<8x128xf32>
    %c0_48 = arith.constant 0 : index
    %c0_49 = arith.constant 0 : index
    %154 = vector.load %arg8[%c0_48, %c0_49] : memref<1x128xf32, #tpu.memory_space<vmem>>, vector<1x128xf32>
    %155 = vector.broadcast %154 : vector<1x128xf32> to vector<8x128xf32>
    %156 = arith.addf %153, %155 : vector<8x128xf32>
    %157 = arith.addf %0, %156 : vector<8x128xf32>
    %cst_50 = arith.constant dense<0.000000e+00> : vector<8xf32>
    %158 = vector.multi_reduction <add>, %157, %cst_50 [1] : vector<8x128xf32> to vector<8xf32>
    %159 = vector.shape_cast %158 : vector<8xf32> to vector<8x1xf32>
    %cst_51 = arith.constant 1.280000e+02 : f32
    %160 = vector.broadcast %cst_51 : f32 to vector<8x1xf32>
    %161 = arith.divf %159, %160 : vector<8x1xf32>
    %162 = vector.broadcast %161 : vector<8x1xf32> to vector<8x128xf32>
    %163 = arith.subf %157, %162 : vector<8x128xf32>
    %164 = vector.broadcast %161 : vector<8x1xf32> to vector<8x128xf32>
    %165 = arith.subf %157, %164 : vector<8x128xf32>
    %166 = arith.mulf %163, %165 : vector<8x128xf32>
    %cst_52 = arith.constant dense<0.000000e+00> : vector<8xf32>
    %167 = vector.multi_reduction <add>, %166, %cst_52 [1] : vector<8x128xf32> to vector<8xf32>
    %168 = vector.shape_cast %167 : vector<8xf32> to vector<8x1xf32>
    %cst_53 = arith.constant 1.280000e+02 : f32
    %169 = vector.broadcast %cst_53 : f32 to vector<8x1xf32>
    %170 = arith.divf %168, %169 : vector<8x1xf32>
    %171 = vector.broadcast %161 : vector<8x1xf32> to vector<8x128xf32>
    %172 = arith.subf %157, %171 : vector<8x128xf32>
    %cst_54 = arith.constant 9.99999974E-6 : f32
    %173 = vector.broadcast %cst_54 : f32 to vector<8x1xf32>
    %174 = arith.addf %170, %173 : vector<8x1xf32>
    %175 = math.rsqrt %174 : vector<8x1xf32>
    %176 = vector.broadcast %175 : vector<8x1xf32> to vector<8x128xf32>
    %177 = arith.mulf %172, %176 : vector<8x128xf32>
    %c0_55 = arith.constant 0 : index
    %c0_56 = arith.constant 0 : index
    %178 = vector.load %arg9[%c0_55, %c0_56] : memref<1x128xf32, #tpu.memory_space<vmem>>, vector<1x128xf32>
    %179 = vector.broadcast %178 : vector<1x128xf32> to vector<8x128xf32>
    %180 = arith.mulf %177, %179 : vector<8x128xf32>
    %c0_57 = arith.constant 0 : index
    %c0_58 = arith.constant 0 : index
    %181 = vector.load %arg10[%c0_57, %c0_58] : memref<1x128xf32, #tpu.memory_space<vmem>>, vector<1x128xf32>
    %182 = vector.broadcast %181 : vector<1x128xf32> to vector<8x128xf32>
    %183 = arith.addf %180, %182 : vector<8x128xf32>
    %c0_59 = arith.constant 0 : index
    %c0_60 = arith.constant 0 : index
    %184 = vector.load %arg11[%c0_59, %c0_60] : memref<8x128xf32, #tpu.memory_space<vmem>>, vector<8x128xf32>
    tpu.vector_store %arg11[%c0_59, %c0_60], %183 {strides = array<i32>} : memref<8x128xf32, #tpu.memory_space<vmem>>, vector<8x128xf32>,
    return
  }
  func.func @transform_0(%arg0: i32) -> (i32, i32) {
    %c0_i32 = arith.constant 0 : i32
    %c0_i32_0 = arith.constant 0 : i32
    return %c0_i32, %arg0 : i32, i32
  }
  func.func @transform_1(%arg0: i32) -> (i32, i32) {
    %c0_i32 = arith.constant 0 : i32
    %c0_i32_0 = arith.constant 0 : i32
    return %c0_i32, %arg0 : i32, i32
  }
  func.func @transform_2(%arg0: i32) -> (i32, i32) {
    %c0_i32 = arith.constant 0 : i32
    %c0_i32_0 = arith.constant 0 : i32
    %c0_i32_1 = arith.constant 0 : i32
    return %c0_i32, %c0_i32_0 : i32, i32
  }
  func.func @transform_3(%arg0: i32) -> (i32, i32) {
    %c0_i32 = arith.constant 0 : i32
    %c0_i32_0 = arith.constant 0 : i32
    %c0_i32_1 = arith.constant 0 : i32
    return %c0_i32, %c0_i32_0 : i32, i32
  }
  func.func @transform_4(%arg0: i32) -> (i32, i32) {
    %c0_i32 = arith.constant 0 : i32
    %c0_i32_0 = arith.constant 0 : i32
    %c0_i32_1 = arith.constant 0 : i32
    return %c0_i32, %c0_i32_0 : i32, i32
  }
  func.func @transform_5(%arg0: i32) -> (i32, i32) {
    %c0_i32 = arith.constant 0 : i32
    %c0_i32_0 = arith.constant 0 : i32
    %c0_i32_1 = arith.constant 0 : i32
    return %c0_i32, %c0_i32_0 : i32, i32
  }
  func.func @transform_6(%arg0: i32) -> (i32, i32) {
    %c0_i32 = arith.constant 0 : i32
    %c0_i32_0 = arith.constant 0 : i32
    %c0_i32_1 = arith.constant 0 : i32
    return %c0_i32, %c0_i32_0 : i32, i32
  }
  func.func @transform_7(%arg0: i32) -> (i32, i32) {
    %c0_i32 = arith.constant 0 : i32
    %c0_i32_0 = arith.constant 0 : i32
    %c0_i32_1 = arith.constant 0 : i32
    return %c0_i32, %c0_i32_0 : i32, i32
  }
  func.func @transform_8(%arg0: i32) -> (i32, i32) {
    %c0_i32 = arith.constant 0 : i32
    %c0_i32_0 = arith.constant 0 : i32
    %c0_i32_1 = arith.constant 0 : i32
    return %c0_i32, %c0_i32_0 : i32, i32
  }
  func.func @transform_9(%arg0: i32) -> (i32, i32) {
    %c0_i32 = arith.constant 0 : i32
    %c0_i32_0 = arith.constant 0 : i32
    %c0_i32_1 = arith.constant 0 : i32
    return %c0_i32, %c0_i32_0 : i32, i32
  }
  func.func @transform_10(%arg0: i32) -> (i32, i32) {
    %c0_i32 = arith.constant 0 : i32
    %c0_i32_0 = arith.constant 0 : i32
    return %c0_i32, %arg0 : i32, i32
  }
}

module attributes {stable_mosaic.version = 11 : i64} {
  func.func @_self_attention_layer_kernel(%arg0: i32, %arg1: memref<8x128xf32, #tpu.memory_space<vmem>>, %arg2: memref<8x128xf32, #tpu.memory_space<vmem>>, %arg3: memref<128x256xbf16, #tpu.memory_space<vmem>>, %arg4: memref<1x256xf32, #tpu.memory_space<vmem>>, %arg5: memref<128x128xbf16, #tpu.memory_space<vmem>>, %arg6: memref<1x128xf32, #tpu.memory_space<vmem>>, %arg7: memref<128x128xbf16, #tpu.memory_space<vmem>>, %arg8: memref<1x128xf32, #tpu.memory_space<vmem>>, %arg9: memref<1x128xf32, #tpu.memory_space<vmem>>, %arg10: memref<1x128xf32, #tpu.memory_space<vmem>>, %arg11: memref<8x128xf32, #tpu.memory_space<vmem>>) attributes {dimension_semantics = [#tpu.dimension_semantics<parallel>], iteration_bounds = array<i64: 2>, scalar_prefetch = 0 : i64, scratch_operands = 0 : i64, tpu.core_type = #tpu.core_type<tc>, window_params = [{transform_indices = @transform_0, window_bounds = array<i64: 8, 128>}, {transform_indices = @transform_1, window_bounds = array<i64: 8, 128>}, {pipeline_mode = #tpu.pipeline_mode<synchronous>, transform_indices = @transform_2, window_bounds = array<i64: 128, 256>}, {pipeline_mode = #tpu.pipeline_mode<synchronous>, transform_indices = @transform_3, window_bounds = array<i64: 1, 256>}, {pipeline_mode = #tpu.pipeline_mode<synchronous>, transform_indices = @transform_4, window_bounds = array<i64: 128, 128>}, {pipeline_mode = #tpu.pipeline_mode<synchronous>, transform_indices = @transform_5, window_bounds = array<i64: 1, 128>}, {pipeline_mode = #tpu.pipeline_mode<synchronous>, transform_indices = @transform_6, window_bounds = array<i64: 128, 128>}, {pipeline_mode = #tpu.pipeline_mode<synchronous>, transform_indices = @transform_7, window_bounds = array<i64: 1, 128>}, {pipeline_mode = #tpu.pipeline_mode<synchronous>, transform_indices = @transform_8, window_bounds = array<i64: 1, 128>}, {pipeline_mode = #tpu.pipeline_mode<synchronous>, transform_indices = @transform_9, window_bounds = array<i64: 1, 128>}, {transform_indices = @transform_10, window_bounds = array<i64: 8, 128>}]} {
    %c0 = arith.constant 0 : index
    %c0_0 = arith.constant 0 : index
    %0 = vector.load %arg1[%c0, %c0_0] : memref<8x128xf32, #tpu.memory_space<vmem>>, vector<8x128xf32>
    %c0_1 = arith.constant 0 : index
    %c0_2 = arith.constant 0 : index
    %1 = vector.load %arg2[%c0_1, %c0_2] : memref<8x128xf32, #tpu.memory_space<vmem>>, vector<8x128xf32>
    %2 = arith.addf %0, %1 : vector<8x128xf32>
    %3 = arith.truncf %2 : vector<8x128xf32> to vector<8x128xbf16>
    %c0_3 = arith.constant 0 : index
    %c0_4 = arith.constant 0 : index
    %4 = vector.load %arg3[%c0_3, %c0_4] : memref<128x256xbf16, #tpu.memory_space<vmem>>, vector<128x256xbf16>
    %cst = arith.constant dense<0.000000e+00> : vector<8x256xf32>
    %5 = tpu.matmul %3, %4, %cst {dimension_numbers = #tpu.dot_dimension_numbers<[1], [0], [0], [1], [0, 0, 1, 1], [], []>} : vector<8x128xbf16>, vector<128x256xbf16>, vector<8x256xf32> -> vector<8x256xf32>
    %c0_5 = arith.constant 0 : index
    %c0_6 = arith.constant 0 : index
    %6 = vector.load %arg4[%c0_5, %c0_6] : memref<1x256xf32, #tpu.memory_space<vmem>>, vector<1x256xf32>
    %7 = vector.broadcast %6 : vector<1x256xf32> to vector<8x256xf32>
    %8 = arith.addf %5, %7 : vector<8x256xf32>
    %9 = arith.truncf %0 : vector<8x128xf32> to vector<8x128xbf16>
    %c0_7 = arith.constant 0 : index
    %c0_8 = arith.constant 0 : index
    %10 = vector.load %arg5[%c0_7, %c0_8] : memref<128x128xbf16, #tpu.memory_space<vmem>>, vector<128x128xbf16>
    %cst_9 = arith.constant dense<0.000000e+00> : vector<8x128xf32>
    %11 = tpu.matmul %9, %10, %cst_9 {dimension_numbers = #tpu.dot_dimension_numbers<[1], [0], [0], [1], [0, 0, 1, 1], [], []>} : vector<8x128xbf16>, vector<128x128xbf16>, vector<8x128xf32> -> vector<8x128xf32>
    %c0_10 = arith.constant 0 : index
    %c0_11 = arith.constant 0 : index
    %12 = vector.load %arg6[%c0_10, %c0_11] : memref<1x128xf32, #tpu.memory_space<vmem>>, vector<1x128xf32>
    %13 = vector.broadcast %12 : vector<1x128xf32> to vector<8x128xf32>
    %14 = arith.addf %11, %13 : vector<8x128xf32>
    %15 = vector.extract_strided_slice %8 {offsets = [0, 0], sizes = [8, 128], strides = [1, 1]} : vector<8x256xf32> to vector<8x128xf32>
    %cst_12 = arith.constant 2.500000e-01 : f32
    %16 = vector.broadcast %cst_12 : f32 to vector<8x128xf32>
    %17 = arith.mulf %15, %16 : vector<8x128xf32>
    %18 = arith.truncf %17 : vector<8x128xf32> to vector<8x128xbf16>
    %19 = vector.extract_strided_slice %8 {offsets = [0, 128], sizes = [8, 128], strides = [1, 1]} : vector<8x256xf32> to vector<8x128xf32>
    %20 = arith.truncf %19 : vector<8x128xf32> to vector<8x128xbf16>
    %21 = arith.truncf %14 : vector<8x128xf32> to vector<8x128xbf16>
    %22 = vector.extract_strided_slice %18 {offsets = [0, 0], sizes = [8, 16], strides = [1, 1]} : vector<8x128xbf16> to vector<8x16xbf16>
    %23 = vector.extract_strided_slice %20 {offsets = [0, 0], sizes = [8, 16], strides = [1, 1]} : vector<8x128xbf16> to vector<8x16xbf16>
    %cst_13 = arith.constant dense<0.000000e+00> : vector<8x8xf32>
    %24 = tpu.matmul %22, %23, %cst_13 {dimension_numbers = #tpu.dot_dimension_numbers<[1], [1], [0], [0], [0, 0, 1, 0], [], []>} : vector<8x16xbf16>, vector<8x16xbf16>, vector<8x8xf32> -> vector<8x8xf32>
    %cst_14 = arith.constant dense<0xFF800000> : vector<8xf32>
    %25 = vector.multi_reduction <maximumf>, %24, %cst_14 [1] : vector<8x8xf32> to vector<8xf32>
    %26 = vector.shape_cast %25 : vector<8xf32> to vector<8x1xf32>
    %27 = vector.broadcast %26 : vector<8x1xf32> to vector<8x8xf32>
    %28 = arith.subf %24, %27 : vector<8x8xf32>
    %29 = math.exp %28 : vector<8x8xf32>
    %cst_15 = arith.constant dense<0.000000e+00> : vector<8xf32>
    %30 = vector.multi_reduction <add>, %29, %cst_15 [1] : vector<8x8xf32> to vector<8xf32>
    %31 = vector.shape_cast %30 : vector<8xf32> to vector<8x1xf32>
    %32 = tpu.reciprocal %31 {approx = true} : vector<8x1xf32> -> vector<8x1xf32>
    %33 = vector.broadcast %32 : vector<8x1xf32> to vector<8x8xf32>
    %34 = arith.mulf %29, %33 : vector<8x8xf32>
    %35 = arith.truncf %34 : vector<8x8xf32> to vector<8x8xbf16>
    %36 = vector.extract_strided_slice %21 {offsets = [0, 0], sizes = [8, 16], strides = [1, 1]} : vector<8x128xbf16> to vector<8x16xbf16>
    %cst_16 = arith.constant dense<0.000000e+00> : vector<8x16xf32>
    %37 = tpu.matmul %35, %36, %cst_16 {dimension_numbers = #tpu.dot_dimension_numbers<[1], [0], [0], [1], [0, 0, 1, 1], [], []>} : vector<8x8xbf16>, vector<8x16xbf16>, vector<8x16xf32> -> vector<8x16xf32>
    %38 = vector.extract_strided_slice %18 {offsets = [0, 16], sizes = [8, 16], strides = [1, 1]} : vector<8x128xbf16> to vector<8x16xbf16>
    %39 = vector.extract_strided_slice %20 {offsets = [0, 16], sizes = [8, 16], strides = [1, 1]} : vector<8x128xbf16> to vector<8x16xbf16>
    %cst_17 = arith.constant dense<0.000000e+00> : vector<8x8xf32>
    %40 = tpu.matmul %38, %39, %cst_17 {dimension_numbers = #tpu.dot_dimension_numbers<[1], [1], [0], [0], [0, 0, 1, 0], [], []>} : vector<8x16xbf16>, vector<8x16xbf16>, vector<8x8xf32> -> vector<8x8xf32>
    %cst_18 = arith.constant dense<0xFF800000> : vector<8xf32>
    %41 = vector.multi_reduction <maximumf>, %40, %cst_18 [1] : vector<8x8xf32> to vector<8xf32>
    %42 = vector.shape_cast %41 : vector<8xf32> to vector<8x1xf32>
    %43 = vector.broadcast %42 : vector<8x1xf32> to vector<8x8xf32>
    %44 = arith.subf %40, %43 : vector<8x8xf32>
    %45 = math.exp %44 : vector<8x8xf32>
    %cst_19 = arith.constant dense<0.000000e+00> : vector<8xf32>
    %46 = vector.multi_reduction <add>, %45, %cst_19 [1] : vector<8x8xf32> to vector<8xf32>
    %47 = vector.shape_cast %46 : vector<8xf32> to vector<8x1xf32>
    %48 = tpu.reciprocal %47 {approx = true} : vector<8x1xf32> -> vector<8x1xf32>
    %49 = vector.broadcast %48 : vector<8x1xf32> to vector<8x8xf32>
    %50 = arith.mulf %45, %49 : vector<8x8xf32>
    %51 = arith.truncf %50 : vector<8x8xf32> to vector<8x8xbf16>
    %52 = vector.extract_strided_slice %21 {offsets = [0, 16], sizes = [8, 16], strides = [1, 1]} : vector<8x128xbf16> to vector<8x16xbf16>
    %cst_20 = arith.constant dense<0.000000e+00> : vector<8x16xf32>
    %53 = tpu.matmul %51, %52, %cst_20 {dimension_numbers = #tpu.dot_dimension_numbers<[1], [0], [0], [1], [0, 0, 1, 1], [], []>} : vector<8x8xbf16>, vector<8x16xbf16>, vector<8x16xf32> -> vector<8x16xf32>
    %54 = vector.extract_strided_slice %18 {offsets = [0, 32], sizes = [8, 16], strides = [1, 1]} : vector<8x128xbf16> to vector<8x16xbf16>
    %55 = vector.extract_strided_slice %20 {offsets = [0, 32], sizes = [8, 16], strides = [1, 1]} : vector<8x128xbf16> to vector<8x16xbf16>
    %cst_21 = arith.constant dense<0.000000e+00> : vector<8x8xf32>
    %56 = tpu.matmul %54, %55, %cst_21 {dimension_numbers = #tpu.dot_dimension_numbers<[1], [1], [0], [0], [0, 0, 1, 0], [], []>} : vector<8x16xbf16>, vector<8x16xbf16>, vector<8x8xf32> -> vector<8x8xf32>
    %cst_22 = arith.constant dense<0xFF800000> : vector<8xf32>
    %57 = vector.multi_reduction <maximumf>, %56, %cst_22 [1] : vector<8x8xf32> to vector<8xf32>
    %58 = vector.shape_cast %57 : vector<8xf32> to vector<8x1xf32>
    %59 = vector.broadcast %58 : vector<8x1xf32> to vector<8x8xf32>
    %60 = arith.subf %56, %59 : vector<8x8xf32>
    %61 = math.exp %60 : vector<8x8xf32>
    %cst_23 = arith.constant dense<0.000000e+00> : vector<8xf32>
    %62 = vector.multi_reduction <add>, %61, %cst_23 [1] : vector<8x8xf32> to vector<8xf32>
    %63 = vector.shape_cast %62 : vector<8xf32> to vector<8x1xf32>
    %64 = tpu.reciprocal %63 {approx = true} : vector<8x1xf32> -> vector<8x1xf32>
    %65 = vector.broadcast %64 : vector<8x1xf32> to vector<8x8xf32>
    %66 = arith.mulf %61, %65 : vector<8x8xf32>
    %67 = arith.truncf %66 : vector<8x8xf32> to vector<8x8xbf16>
    %68 = vector.extract_strided_slice %21 {offsets = [0, 32], sizes = [8, 16], strides = [1, 1]} : vector<8x128xbf16> to vector<8x16xbf16>
    %cst_24 = arith.constant dense<0.000000e+00> : vector<8x16xf32>
    %69 = tpu.matmul %67, %68, %cst_24 {dimension_numbers = #tpu.dot_dimension_numbers<[1], [0], [0], [1], [0, 0, 1, 1], [], []>} : vector<8x8xbf16>, vector<8x16xbf16>, vector<8x16xf32> -> vector<8x16xf32>
    %70 = vector.extract_strided_slice %18 {offsets = [0, 48], sizes = [8, 16], strides = [1, 1]} : vector<8x128xbf16> to vector<8x16xbf16>
    %71 = vector.extract_strided_slice %20 {offsets = [0, 48], sizes = [8, 16], strides = [1, 1]} : vector<8x128xbf16> to vector<8x16xbf16>
    %cst_25 = arith.constant dense<0.000000e+00> : vector<8x8xf32>
    %72 = tpu.matmul %70, %71, %cst_25 {dimension_numbers = #tpu.dot_dimension_numbers<[1], [1], [0], [0], [0, 0, 1, 0], [], []>} : vector<8x16xbf16>, vector<8x16xbf16>, vector<8x8xf32> -> vector<8x8xf32>
    %cst_26 = arith.constant dense<0xFF800000> : vector<8xf32>
    %73 = vector.multi_reduction <maximumf>, %72, %cst_26 [1] : vector<8x8xf32> to vector<8xf32>
    %74 = vector.shape_cast %73 : vector<8xf32> to vector<8x1xf32>
    %75 = vector.broadcast %74 : vector<8x1xf32> to vector<8x8xf32>
    %76 = arith.subf %72, %75 : vector<8x8xf32>
    %77 = math.exp %76 : vector<8x8xf32>
    %cst_27 = arith.constant dense<0.000000e+00> : vector<8xf32>
    %78 = vector.multi_reduction <add>, %77, %cst_27 [1] : vector<8x8xf32> to vector<8xf32>
    %79 = vector.shape_cast %78 : vector<8xf32> to vector<8x1xf32>
    %80 = tpu.reciprocal %79 {approx = true} : vector<8x1xf32> -> vector<8x1xf32>
    %81 = vector.broadcast %80 : vector<8x1xf32> to vector<8x8xf32>
    %82 = arith.mulf %77, %81 : vector<8x8xf32>
    %83 = arith.truncf %82 : vector<8x8xf32> to vector<8x8xbf16>
    %84 = vector.extract_strided_slice %21 {offsets = [0, 48], sizes = [8, 16], strides = [1, 1]} : vector<8x128xbf16> to vector<8x16xbf16>
    %cst_28 = arith.constant dense<0.000000e+00> : vector<8x16xf32>
    %85 = tpu.matmul %83, %84, %cst_28 {dimension_numbers = #tpu.dot_dimension_numbers<[1], [0], [0], [1], [0, 0, 1, 1], [], []>} : vector<8x8xbf16>, vector<8x16xbf16>, vector<8x16xf32> -> vector<8x16xf32>
    %86 = vector.extract_strided_slice %18 {offsets = [0, 64], sizes = [8, 16], strides = [1, 1]} : vector<8x128xbf16> to vector<8x16xbf16>
    %87 = vector.extract_strided_slice %20 {offsets = [0, 64], sizes = [8, 16], strides = [1, 1]} : vector<8x128xbf16> to vector<8x16xbf16>
    %cst_29 = arith.constant dense<0.000000e+00> : vector<8x8xf32>
    %88 = tpu.matmul %86, %87, %cst_29 {dimension_numbers = #tpu.dot_dimension_numbers<[1], [1], [0], [0], [0, 0, 1, 0], [], []>} : vector<8x16xbf16>, vector<8x16xbf16>, vector<8x8xf32> -> vector<8x8xf32>
    %cst_30 = arith.constant dense<0xFF800000> : vector<8xf32>
    %89 = vector.multi_reduction <maximumf>, %88, %cst_30 [1] : vector<8x8xf32> to vector<8xf32>
    %90 = vector.shape_cast %89 : vector<8xf32> to vector<8x1xf32>
    %91 = vector.broadcast %90 : vector<8x1xf32> to vector<8x8xf32>
    %92 = arith.subf %88, %91 : vector<8x8xf32>
    %93 = math.exp %92 : vector<8x8xf32>
    %cst_31 = arith.constant dense<0.000000e+00> : vector<8xf32>
    %94 = vector.multi_reduction <add>, %93, %cst_31 [1] : vector<8x8xf32> to vector<8xf32>
    %95 = vector.shape_cast %94 : vector<8xf32> to vector<8x1xf32>
    %96 = tpu.reciprocal %95 {approx = true} : vector<8x1xf32> -> vector<8x1xf32>
    %97 = vector.broadcast %96 : vector<8x1xf32> to vector<8x8xf32>
    %98 = arith.mulf %93, %97 : vector<8x8xf32>
    %99 = arith.truncf %98 : vector<8x8xf32> to vector<8x8xbf16>
    %100 = vector.extract_strided_slice %21 {offsets = [0, 64], sizes = [8, 16], strides = [1, 1]} : vector<8x128xbf16> to vector<8x16xbf16>
    %cst_32 = arith.constant dense<0.000000e+00> : vector<8x16xf32>
    %101 = tpu.matmul %99, %100, %cst_32 {dimension_numbers = #tpu.dot_dimension_numbers<[1], [0], [0], [1], [0, 0, 1, 1], [], []>} : vector<8x8xbf16>, vector<8x16xbf16>, vector<8x16xf32> -> vector<8x16xf32>
    %102 = vector.extract_strided_slice %18 {offsets = [0, 80], sizes = [8, 16], strides = [1, 1]} : vector<8x128xbf16> to vector<8x16xbf16>
    %103 = vector.extract_strided_slice %20 {offsets = [0, 80], sizes = [8, 16], strides = [1, 1]} : vector<8x128xbf16> to vector<8x16xbf16>
    %cst_33 = arith.constant dense<0.000000e+00> : vector<8x8xf32>
    %104 = tpu.matmul %102, %103, %cst_33 {dimension_numbers = #tpu.dot_dimension_numbers<[1], [1], [0], [0], [0, 0, 1, 0], [], []>} : vector<8x16xbf16>, vector<8x16xbf16>, vector<8x8xf32> -> vector<8x8xf32>
    %cst_34 = arith.constant dense<0xFF800000> : vector<8xf32>
    %105 = vector.multi_reduction <maximumf>, %104, %cst_34 [1] : vector<8x8xf32> to vector<8xf32>
    %106 = vector.shape_cast %105 : vector<8xf32> to vector<8x1xf32>
    %107 = vector.broadcast %106 : vector<8x1xf32> to vector<8x8xf32>
    %108 = arith.subf %104, %107 : vector<8x8xf32>
    %109 = math.exp %108 : vector<8x8xf32>
    %cst_35 = arith.constant dense<0.000000e+00> : vector<8xf32>
    %110 = vector.multi_reduction <add>, %109, %cst_35 [1] : vector<8x8xf32> to vector<8xf32>
    %111 = vector.shape_cast %110 : vector<8xf32> to vector<8x1xf32>
    %112 = tpu.reciprocal %111 {approx = true} : vector<8x1xf32> -> vector<8x1xf32>
    %113 = vector.broadcast %112 : vector<8x1xf32> to vector<8x8xf32>
    %114 = arith.mulf %109, %113 : vector<8x8xf32>
    %115 = arith.truncf %114 : vector<8x8xf32> to vector<8x8xbf16>
    %116 = vector.extract_strided_slice %21 {offsets = [0, 80], sizes = [8, 16], strides = [1, 1]} : vector<8x128xbf16> to vector<8x16xbf16>
    %cst_36 = arith.constant dense<0.000000e+00> : vector<8x16xf32>
    %117 = tpu.matmul %115, %116, %cst_36 {dimension_numbers = #tpu.dot_dimension_numbers<[1], [0], [0], [1], [0, 0, 1, 1], [], []>} : vector<8x8xbf16>, vector<8x16xbf16>, vector<8x16xf32> -> vector<8x16xf32>
    %118 = vector.extract_strided_slice %18 {offsets = [0, 96], sizes = [8, 16], strides = [1, 1]} : vector<8x128xbf16> to vector<8x16xbf16>
    %119 = vector.extract_strided_slice %20 {offsets = [0, 96], sizes = [8, 16], strides = [1, 1]} : vector<8x128xbf16> to vector<8x16xbf16>
    %cst_37 = arith.constant dense<0.000000e+00> : vector<8x8xf32>
    %120 = tpu.matmul %118, %119, %cst_37 {dimension_numbers = #tpu.dot_dimension_numbers<[1], [1], [0], [0], [0, 0, 1, 0], [], []>} : vector<8x16xbf16>, vector<8x16xbf16>, vector<8x8xf32> -> vector<8x8xf32>
    %cst_38 = arith.constant dense<0xFF800000> : vector<8xf32>
    %121 = vector.multi_reduction <maximumf>, %120, %cst_38 [1] : vector<8x8xf32> to vector<8xf32>
    %122 = vector.shape_cast %121 : vector<8xf32> to vector<8x1xf32>
    %123 = vector.broadcast %122 : vector<8x1xf32> to vector<8x8xf32>
    %124 = arith.subf %120, %123 : vector<8x8xf32>
    %125 = math.exp %124 : vector<8x8xf32>
    %cst_39 = arith.constant dense<0.000000e+00> : vector<8xf32>
    %126 = vector.multi_reduction <add>, %125, %cst_39 [1] : vector<8x8xf32> to vector<8xf32>
    %127 = vector.shape_cast %126 : vector<8xf32> to vector<8x1xf32>
    %128 = tpu.reciprocal %127 {approx = true} : vector<8x1xf32> -> vector<8x1xf32>
    %129 = vector.broadcast %128 : vector<8x1xf32> to vector<8x8xf32>
    %130 = arith.mulf %125, %129 : vector<8x8xf32>
    %131 = arith.truncf %130 : vector<8x8xf32> to vector<8x8xbf16>
    %132 = vector.extract_strided_slice %21 {offsets = [0, 96], sizes = [8, 16], strides = [1, 1]} : vector<8x128xbf16> to vector<8x16xbf16>
    %cst_40 = arith.constant dense<0.000000e+00> : vector<8x16xf32>
    %133 = tpu.matmul %131, %132, %cst_40 {dimension_numbers = #tpu.dot_dimension_numbers<[1], [0], [0], [1], [0, 0, 1, 1], [], []>} : vector<8x8xbf16>, vector<8x16xbf16>, vector<8x16xf32> -> vector<8x16xf32>
    %134 = vector.extract_strided_slice %18 {offsets = [0, 112], sizes = [8, 16], strides = [1, 1]} : vector<8x128xbf16> to vector<8x16xbf16>
    %135 = vector.extract_strided_slice %20 {offsets = [0, 112], sizes = [8, 16], strides = [1, 1]} : vector<8x128xbf16> to vector<8x16xbf16>
    %cst_41 = arith.constant dense<0.000000e+00> : vector<8x8xf32>
    %136 = tpu.matmul %134, %135, %cst_41 {dimension_numbers = #tpu.dot_dimension_numbers<[1], [1], [0], [0], [0, 0, 1, 0], [], []>} : vector<8x16xbf16>, vector<8x16xbf16>, vector<8x8xf32> -> vector<8x8xf32>
    %cst_42 = arith.constant dense<0xFF800000> : vector<8xf32>
    %137 = vector.multi_reduction <maximumf>, %136, %cst_42 [1] : vector<8x8xf32> to vector<8xf32>
    %138 = vector.shape_cast %137 : vector<8xf32> to vector<8x1xf32>
    %139 = vector.broadcast %138 : vector<8x1xf32> to vector<8x8xf32>
    %140 = arith.subf %136, %139 : vector<8x8xf32>
    %141 = math.exp %140 : vector<8x8xf32>
    %cst_43 = arith.constant dense<0.000000e+00> : vector<8xf32>
    %142 = vector.multi_reduction <add>, %141, %cst_43 [1] : vector<8x8xf32> to vector<8xf32>
    %143 = vector.shape_cast %142 : vector<8xf32> to vector<8x1xf32>
    %144 = tpu.reciprocal %143 {approx = true} : vector<8x1xf32> -> vector<8x1xf32>
    %145 = vector.broadcast %144 : vector<8x1xf32> to vector<8x8xf32>
    %146 = arith.mulf %141, %145 : vector<8x8xf32>
    %147 = arith.truncf %146 : vector<8x8xf32> to vector<8x8xbf16>
    %148 = vector.extract_strided_slice %21 {offsets = [0, 112], sizes = [8, 16], strides = [1, 1]} : vector<8x128xbf16> to vector<8x16xbf16>
    %cst_44 = arith.constant dense<0.000000e+00> : vector<8x16xf32>
    %149 = tpu.matmul %147, %148, %cst_44 {dimension_numbers = #tpu.dot_dimension_numbers<[1], [0], [0], [1], [0, 0, 1, 1], [], []>} : vector<8x8xbf16>, vector<8x16xbf16>, vector<8x16xf32> -> vector<8x16xf32>
    %150 = tpu.concatenate %37, %53, %69, %85, %101, %117, %133, %149 in 1 : vector<8x16xf32>, vector<8x16xf32>, vector<8x16xf32>, vector<8x16xf32>, vector<8x16xf32>, vector<8x16xf32>, vector<8x16xf32>, vector<8x16xf32> -> vector<8x128xf32>
    %151 = arith.truncf %150 : vector<8x128xf32> to vector<8x128xbf16>
    %c0_45 = arith.constant 0 : index
    %c0_46 = arith.constant 0 : index
    %152 = vector.load %arg7[%c0_45, %c0_46] : memref<128x128xbf16, #tpu.memory_space<vmem>>, vector<128x128xbf16>
    %cst_47 = arith.constant dense<0.000000e+00> : vector<8x128xf32>
    %153 = tpu.matmul %151, %152, %cst_47 {dimension_numbers = #tpu.dot_dimension_numbers<[1], [0], [0], [1], [0, 0, 1, 1], [], []>} : vector<8x128xbf16>, vector<128x128xbf16>, vector<8x128xf32> -> vector<8x128xf32>
    %c0_48 = arith.constant 0 : index
    %c0_49 = arith.constant 0 : index
    %154 = vector.load %arg8[%c0_48, %c0_49] : memref<1x128xf32, #tpu.memory_space<vmem>>, vector<1x128xf32>
    %155 = vector.broadcast %154 : vector<1x128xf32> to vector<8x128xf32>
    %156 = arith.addf %153, %155 : vector<8x128xf32>
    %157 = arith.addf %0, %156 : vector<8x128xf32>
    %cst_50 = arith.constant dense<0.000000e+00> : vector<8xf32>
    %158 = vector.multi_reduction <add>, %157, %cst_50 [1] : vector<8x128xf32> to vector<8xf32>
    %159 = vector.shape_cast %158 : vector<8xf32> to vector<8x1xf32>
    %cst_51 = arith.constant 1.280000e+02 : f32
    %160 = vector.broadcast %cst_51 : f32 to vector<8x1xf32>
    %161 = arith.divf %159, %160 : vector<8x1xf32>
    %162 = vector.broadcast %161 : vector<8x1xf32> to vector<8x128xf32>
    %163 = arith.subf %157, %162 : vector<8x128xf32>
    %164 = vector.broadcast %161 : vector<8x1xf32> to vector<8x128xf32>
    %165 = arith.subf %157, %164 : vector<8x128xf32>
    %166 = arith.mulf %163, %165 : vector<8x128xf32>
    %cst_52 = arith.constant dense<0.000000e+00> : vector<8xf32>
    %167 = vector.multi_reduction <add>, %166, %cst_52 [1] : vector<8x128xf32> to vector<8xf32>
    %168 = vector.shape_cast %167 : vector<8xf32> to vector<8x1xf32>
    %cst_53 = arith.constant 1.280000e+02 : f32
    %169 = vector.broadcast %cst_53 : f32 to vector<8x1xf32>
    %170 = arith.divf %168, %169 : vector<8x1xf32>
    %171 = vector.broadcast %161 : vector<8x1xf32> to vector<8x128xf32>
    %172 = arith.subf %157, %171 : vector<8x128xf32>
    %cst_54 = arith.constant 9.99999974E-6 : f32
    %173 = vector.broadcast %cst_54 : f32 to vector<8x1xf32>
    %174 = arith.addf %170, %173 : vector<8x1xf32>
    %175 = math.rsqrt %174 : vector<8x1xf32>
    %176 = vector.broadcast %175 : vector<8x1xf32> to vector<8x128xf32>
    %177 = arith.mulf %172, %176 : vector<8x128xf32>
    %c0_55 = arith.constant 0 : index
    %c0_56 = arith.constant 0 : index
    %178 = vector.load %arg9[%c0_55, %c0_56] : memref<1x128xf32, #tpu.memory_space<vmem>>, vector<1x128xf32>
    %179 = vector.broadcast %178 : vector<1x128xf32> to vector<8x128xf32>
    %180 = arith.mulf %177, %179 : vector<8x128xf32>
    %c0_57 = arith.constant 0 : index
    %c0_58 = arith.constant 0 : index
    %181 = vector.load %arg10[%c0_57, %c0_58] : memref<1x128xf32, #tpu.memory_space<vmem>>, vector<1x128xf32>
    %182 = vector.broadcast %181 : vector<1x128xf32> to vector<8x128xf32>
    %183 = arith.addf %180, %182 : vector<8x128xf32>
    %c0_59 = arith.constant 0 : index
    %c0_60 = arith.constant 0 : index
    %184 = vector.load %arg11[%c0_59, %c0_60] : memref<8x128xf32, #tpu.memory_space<vmem>>, vector<8x128xf32>
    tpu.vector_store %arg11[%c0_59, %c0_60], %183 {strides = array<i32>} : memref<8x128xf32, #tpu.memory_space<vmem>>, vector<8x128xf32>,
    return
  }
  func.func @transform_0(%arg0: i32) -> (i32, i32) {
    %c0_i32 = arith.constant 0 : i32
    %c0_i32_0 = arith.constant 0 : i32
    return %c0_i32, %arg0 : i32, i32
  }
  func.func @transform_1(%arg0: i32) -> (i32, i32) {
    %c0_i32 = arith.constant 0 : i32
    %c0_i32_0 = arith.constant 0 : i32
    return %c0_i32, %arg0 : i32, i32
  }
  func.func @transform_2(%arg0: i32) -> (i32, i32) {
    %c0_i32 = arith.constant 0 : i32
    %c0_i32_0 = arith.constant 0 : i32
    %c0_i32_1 = arith.constant 0 : i32
    return %c0_i32, %c0_i32_0 : i32, i32
  }
  func.func @transform_3(%arg0: i32) -> (i32, i32) {
    %c0_i32 = arith.constant 0 : i32
    %c0_i32_0 = arith.constant 0 : i32
    %c0_i32_1 = arith.constant 0 : i32
    return %c0_i32, %c0_i32_0 : i32, i32
  }
  func.func @transform_4(%arg0: i32) -> (i32, i32) {
    %c0_i32 = arith.constant 0 : i32
    %c0_i32_0 = arith.constant 0 : i32
    %c0_i32_1 = arith.constant 0 : i32
    return %c0_i32, %c0_i32_0 : i32, i32
  }
  func.func @transform_5(%arg0: i32) -> (i32, i32) {
    %c0_i32 = arith.constant 0 : i32
    %c0_i32_0 = arith.constant 0 : i32
    %c0_i32_1 = arith.constant 0 : i32
    return %c0_i32, %c0_i32_0 : i32, i32
  }
  func.func @transform_6(%arg0: i32) -> (i32, i32) {
    %c0_i32 = arith.constant 0 : i32
    %c0_i32_0 = arith.constant 0 : i32
    %c0_i32_1 = arith.constant 0 : i32
    return %c0_i32, %c0_i32_0 : i32, i32
  }
  func.func @transform_7(%arg0: i32) -> (i32, i32) {
    %c0_i32 = arith.constant 0 : i32
    %c0_i32_0 = arith.constant 0 : i32
    %c0_i32_1 = arith.constant 0 : i32
    return %c0_i32, %c0_i32_0 : i32, i32
  }
  func.func @transform_8(%arg0: i32) -> (i32, i32) {
    %c0_i32 = arith.constant 0 : i32
    %c0_i32_0 = arith.constant 0 : i32
    %c0_i32_1 = arith.constant 0 : i32
    return %c0_i32, %c0_i32_0 : i32, i32
  }
  func.func @transform_9(%arg0: i32) -> (i32, i32) {
    %c0_i32 = arith.constant 0 : i32
    %c0_i32_0 = arith.constant 0 : i32
    %c0_i32_1 = arith.constant 0 : i32
    return %c0_i32, %c0_i32_0 : i32, i32
  }
  func.func @transform_10(%arg0: i32) -> (i32, i32) {
    %c0_i32 = arith.constant 0 : i32
    %c0_i32_0 = arith.constant 0 : i32
    return %c0_i32, %arg0 : i32, i32
  }
}

</mosaic_0001>

<bundles_post_ra>
// kernel: tpu_custom_call.1
= control target key start
LH: loop header
LB: loop body
LE: loop exit
PB: predicated region body
PF: predicated region fallthrough
CT: control target
= control target key end

     0   :  { %s3148_s0 = inlined_call_operand.hbm [shape: f32[8,256], index: 0, kind: input, shape index: {}]   ;;  %s3149_s1 = inlined_call_operand.hbm [shape: f32[8,256], index: 1, kind: input, shape index: {}]   ;;  %s3150_s2 = inlined_call_operand.hbm [shape: bf16[128,256], index: 2, kind: input, shape index: {}]   ;;  %s3151_s3 = inlined_call_operand.vmem [shape: f32[1,256], index: 3, kind: input, shape index: {}]   ;;  %s3152_s4 = inlined_call_operand.hbm [shape: bf16[128,128], index: 4, kind: input, shape index: {}]   ;;  %s3153_s5 = inlined_call_operand.vmem [shape: f32[1,128], index: 5, kind: input, shape index: {}]   ;;  %s3154_s6 = inlined_call_operand.hbm [shape: bf16[128,128], index: 6, kind: input, shape index: {}]   ;;  %s3155_s7 = inlined_call_operand.vmem [shape: f32[1,128], index: 7, kind: input, shape index: {}]   ;;  %s3156_s8 = inlined_call_operand.vmem [shape: f32[1,128], index: 8, kind: input, shape index: {}]   ;;  %s3157_s9 = inlined_call_operand.vmem [shape: f32[1,128], index: 9, kind: input, shape index: {}]   ;;  %s3158_s10 = inlined_call_operand.hbm [shape: f32[8,256], index: 10, kind: output, shape index: {}]  }
   0x1   :  { %3166 = sst [smem:[#allocation19_spill]] %s3150_s2 }
   0x2   :  { %3167 = sst [smem:[#allocation20_spill]] %s3152_s4 }
   0x3   :  { %3168 = sst [smem:[#allocation21_spill]] %s3154_s6 }
   0x4   :  { %3169 = sst [smem:[#allocation22_spill]] %s3157_s9 }
   0x5   :  { %3170 = sst [smem:[#allocation23_spill]] %s3158_s10 }
   0x6   :  { %15 = vsyncpa [#allocation3], 0 }
   0x7   :  { %17 = vsyncpa [#allocation3 + $0x1], 0 }
   0x8   :  { %18 = vsyncpa [#allocation6], 0 }
   0x9   :  { %20 = vsyncpa [#allocation6 + $0x1], 0 }
   0xa   :  { %21 = vsyncpa [#allocation9], 0 }
   0xb   :  { %22 = vsyncpa [#allocation4], 0 }
   0xc   :  { %24 = vsyncpa [#allocation4 + $0x1], 0  ;;  %s2651_s13 = smov 0   ;;  %s2653_s14 = smov 0  }
   0xd   :  { %s2655_s15 = smov 0   ;;  %s2657_s16 = smov 0  }
   0xe LB: > { %3171 = sst [smem:[#allocation17_spill]] %s2562_s13  ;;  %s2672_s17 = sadd.s32 4294967295, %s2574_s16   ;;  %s2574_s16 = sphi %s2657_s16, %s3200_s16   ;;  %s2570_s15 = sphi %s2655_s15, %s3199_s15   ;;  %s2566_s14 = sphi %s2653_s14, %s3198_s14   ;;  %s2562_s13 = sphi %s2651_s13, %s3197_s13  }
   0xf   : > { %s1923_s18 = sadd.s32 4294967294, %s2574_s16   ;;  %p50_p0 = scmp.ne.s32.totalorder %s2566_s14, %s2562_s13 }
  0x10   : > { %p3159_p1 = scmp.eq.s32.totalorder %s2672_s17, 0  ;;  %p274_p3 = scmp.eq.s32.totalorder %s1923_s18, 1 }
  0x11   : > { %p1924_p5 = scmp.ge.s32.totalorder %s2574_s16, 1  ;;  %p281_p7 = scmp.lt.s32.totalorder %s2574_s16, 3 }
  0x12   : > { %p2681_p4 = por %p3159_p1, %p50_p0  ;;  %p2686_p6 = por %p274_p3, %p50_p0 }
  0x13   : > { %p2691_p8 = pnand %p1924_p5, %p281_p7  ;;  %s2576_s22 = smov [#allocation7]  }
  0x14   : > { %s3172_s19 = scalar_select %p2681_p4, 1, 0 }
  0x15   : > { %s3173_s20 = scalar_select %p2686_p6, 1, 0 }
  0x16   : > { %s3175_s21 = scalar_select %p2691_p8, 1, 0 }
  0x17   : > { %3174 = sst [smem:[#allocation18_spill]] %s3173_s20  ;;  %s293_s23 = sshll.u32 %s2576_s22, 4  ;;  %s2695_s23 = int_to_ptr.vmem [resolvable:$true] %s293_s23 }
  0x18   : > { %p2200_p9 = pneg %p2691_p8  ;;  %s2577_s25 = smov [#allocation8]  }
  0x19   : > { %s309_s26 = sshll.u32 %s2577_s25, 4  ;;  %s3177_s2 = sld [smem:[#allocation19_spill]]  ;;  %s2706_s26 = int_to_ptr.vmem [resolvable:$true] %s309_s26 }
  0x1a   : > { %p2702_p11 = pnand %p2200_p9, %p3159_p1 }
  0x1c   : > { %p2716_p13 = pneg %p2702_p11 }
  0x1f   : > { %s2352_s29 = scalar_lea.hbm %s3177_s2, 2048 }
  0x20   : > { %p2353_p12 = scmp.ne.s32.totalorder %s3177_s2, %s2352_s29  ;;  %p2359_p5 = scmp.lt.u32.totalorder %s2352_s29, %s3177_s2 }
  0x22   : > { %p2355_p0 = pnand %p2716_p13, %p2353_p12 }
  0x24   : > { %p2356_p3 = pneg %p2355_p0 }
  0x26   : > { %p2361_p7 = pnand %p2359_p5, %p2356_p3 }
  0x28   : > { %2364 = shalt.err (!%p2361_p7)
}
  0x29   : > { %s2365_s25 = scalar_lea.vmem %s2695_s23, 2048  ;;  %p2373_p2 = scmp.lt.s32.totalorder %s2695_s23, %s2695_s23 }
  0x2a   : > { %p2366_p9 = scmp.ne.s32.totalorder %s2695_s23, %s2365_s25  ;;  %p2374_p6 = scmp.lt.s32.totalorder %s2365_s25, %s2365_s25 }
  0x2c   : > { %p2368_p10 = pnand %p2366_p9, %p2716_p13  ;;  %p2375_p12 = por %p2374_p6, %p2373_p2 }
  0x2e   : > { %p2369_p1 = pneg %p2368_p10 }
  0x30   : > { %p2376_p0 = pnand %p2375_p12, %p2369_p1 }
  0x32   : > { %2379 = shalt.err (!%p2376_p0)
}
  0x33   : > { %s2578_s27 = smov 128   ;;  %s2579_s28 = smov 8  }
  0x34   : > { %2203 = dma.hbm_to_vmem [thread:$0]  (!%p2702_p11), %s3177_s2, 2048, %s2695_s23, [#allocation6], %s2578_s27, %s2578_s27, %s2579_s28  }
  0x35   : > { %s3179_s4 = sld [smem:[#allocation20_spill]] }
  0x3b   : > { %s2380_s22 = scalar_lea.hbm %s3179_s4, 1024 }
  0x3c   : > { %p2381_p2 = scmp.ne.s32.totalorder %s3179_s4, %s2380_s22  ;;  %p2387_p10 = scmp.lt.u32.totalorder %s2380_s22, %s3179_s4 }
  0x3e   : > { %p2383_p1 = pnand %p2381_p2, %p2716_p13 }
  0x40   : > { %p2384_p6 = pneg %p2383_p1 }
  0x42   : > { %p2389_p3 = pnand %p2387_p10, %p2384_p6 }
  0x44   : > { %2392 = shalt.err (!%p2389_p3)
}
  0x45   : > { %s2393_s23 = scalar_lea.vmem %s2706_s26, 1024  ;;  %p2401_p12 = scmp.lt.s32.totalorder %s2706_s26, %s2706_s26 }
  0x46   : > { %p2394_p5 = scmp.ne.s32.totalorder %s2706_s26, %s2393_s23  ;;  %p2402_p0 = scmp.lt.s32.totalorder %s2393_s23, %s2393_s23 }
  0x48   : > { %p2396_p7 = pnand %p2394_p5, %p2716_p13  ;;  %p2403_p2 = por %p2402_p0, %p2401_p12 }
  0x4a   : > { %p2397_p9 = pneg %p2396_p7 }
  0x4c   : > { %p2404_p1 = pnand %p2403_p2, %p2397_p9 }
  0x4e   : > { %2407 = shalt.err (!%p2404_p1)
}
  0x4f   : > { %s2580_s13 = smov 64   ;;  %s2581_s10 = smov 4  }
  0x50   : > { %2206 = dma.hbm_to_vmem [thread:$0]  (!%p2702_p11), %s3179_s4, 1024, %s2706_s26, [#allocation9], %s2580_s13, %s2580_s13, %s2581_s10  }
  0x51   : > { %s2582_s28 = smov [#allocation10]   ;;  %s2761_s30 = sadd.s32 1, %s2574_s16  }
  0x52   : > { %s325_s29 = sshll.u32 %s2582_s28, 4  ;;  %s3180_s6 = sld [smem:[#allocation21_spill]]  ;;  %s326_s29 = int_to_ptr.vmem [resolvable:$true] %s325_s29 }
  0x58   : > { %s2408_s22 = scalar_lea.hbm %s3180_s6, 1024 }
  0x59   : > { %p2409_p6 = scmp.ne.s32.totalorder %s3180_s6, %s2408_s22  ;;  %p2415_p5 = scmp.lt.u32.totalorder %s2408_s22, %s3180_s6 }
  0x5b   : > { %p2411_p10 = pnand %p2409_p6, %p2716_p13 }
  0x5d   : > { %p2412_p3 = pneg %p2411_p10 }
  0x5f   : > { %p2417_p7 = pnand %p2415_p5, %p2412_p3 }
  0x61   : > { %2420 = shalt.err (!%p2417_p7)
}
  0x62   : > { %s2421_s26 = scalar_lea.vmem %s326_s29, 1024  ;;  %p2429_p2 = scmp.lt.s32.totalorder %s326_s29, %s326_s29 }
  0x63   : > { %p2422_p9 = scmp.ne.s32.totalorder %s326_s29, %s2421_s26  ;;  %p2430_p1 = scmp.lt.s32.totalorder %s2421_s26, %s2421_s26 }
  0x65   : > { %p2424_p12 = pnand %p2422_p9, %p2716_p13  ;;  %p2431_p4 = por %p2430_p1, %p2429_p2 }
  0x67   : > { %p2425_p0 = pneg %p2424_p12 }
  0x69   : > { %p2432_p8 = pnand %p2431_p4, %p2425_p0 }
  0x6b   : > { %2435 = shalt.err (!%p2432_p8)
}
  0x6c   : > { %2209 = dma.hbm_to_vmem [thread:$0]  (!%p2702_p11), %s3180_s6, 1024, %s326_s29, [#allocation9], %s2580_s13, %s2580_s13, %s2581_s10  }
  0x6d   : > { %s34_s2 = ssub.s32 %s2574_s16, %s2761_s30  ;;  %s37_s9 = sadd.s32 1, %s2570_s15 }
  0x6e   : > { %p35_p4 = scmp.eq.s32.totalorder %s34_s2, 0  ;;  %p44_p8 = scmp.ne.s32.totalorder %s2570_s15, %s2566_s14 }
  0x6f   : > { %p45_p13 = scmp.eq.s32.totalorder %s2574_s16, 0  ;;  %p2224_p6 = scmp.lt.s32.totalorder %s2574_s16, 2 }
  0x70   : > { %s2789_s24 = scalar_select %p35_p4, %s2570_s15, %s37_s9  }
  0x71   : > { %p46_p10 = por %p45_p13, %p44_p8  ;;  %p3181_p3 = scmp.eq.s32.totalorder %s2672_s17, 1 }
  0x72   : > { %s348_s28 = sand.u32 1, %s2570_s15   ;;  %s1930_s11 = sshll.u32 %s2574_s16, 7 }
  0x73   : > { %p2793_p5 = por %p3181_p3, %p44_p8  ;;  %s2799_s18 = sshll.u32 %s348_s28, 3 }
  0x74   : > { %s2804_s10 = scalar_lea.hbm %s3148_s0, %s1930_s11  ;;  %s352_s29 = scalar_lea.vmem [#allocation2], %s2799_s18 }
  0x75   : > { %s3182_s12 = scalar_select %p2793_p5, 1, 0 }
  0x76   : > { %s359_s25 = sshll.u32 %s352_s29, 4  ;;  %p2807_p11 = pnand %p2224_p6, %p46_p10  ;;  %s2811_s25 = int_to_ptr.vmem [resolvable:$true] %s359_s25 }
  0x77   : > { %s2816_s27 = scalar_lea.hbm %s3149_s1, %s1930_s11  ;;  %s349_s2 = scalar_lea.sflag [#allocation3], %s348_s28 }
  0x78   : > { %s2436_s9 = scalar_lea.hbm %s2804_s10, 128  ;;  %p2438_p9 = pneg %p2807_p11 }
  0x79   : > { %p2437_p7 = scmp.ne.s32.totalorder %s2804_s10, %s2436_s9  ;;  %s2441_s29 = scalar_lea.hbm %s3148_s0, 256 }
  0x7a   : > { %p2442_p2 = scmp.lt.u32.totalorder %s2804_s10, %s3148_s0  ;;  %p2443_p1 = scmp.lt.u32.totalorder %s2441_s29, %s2436_s9 }
  0x7b   : > { %p2439_p12 = pnand %p2438_p9, %p2437_p7  ;;  %p2445_p8 = scmp.lt.u32.totalorder %s2436_s9, %s2804_s10 }
  0x7c   : > { %p2444_p4 = por %p2443_p1, %p2442_p2 }
  0x7d   : > { %p2440_p0 = pneg %p2439_p12 }
  0x7e   : > { %p2446_p13 = por %p2445_p8, %p2444_p4 }
  0x80   : > { %p2447_p6 = pnand %p2446_p13, %p2440_p0 }
  0x82   : > { %2450 = shalt.err (!%p2447_p6)
}
  0x83   : > { %s2451_s28 = scalar_lea.vmem %s2811_s25, 128  ;;  %s2583_s11 = smov [#allocation2]  }
  0x84   : > { %p2452_p10 = scmp.ne.s32.totalorder %s2811_s25, %s2451_s28  ;;  %s2456_s26 = sshll.u32 %s2583_s11, 4  ;;  %s2457_s26 = int_to_ptr.vmem [resolvable:$false] %s2456_s26 }
  0x85   : > { %s2458_s4 = scalar_lea.vmem %s2457_s26, 256  ;;  %p2459_p12 = scmp.lt.s32.totalorder %s2811_s25, %s2457_s26 }
  0x86   : > { %p2454_p3 = pnand %p2452_p10, %p2438_p9  ;;  %p2460_p2 = scmp.lt.s32.totalorder %s2458_s4, %s2451_s28 }
  0x88   : > { %p2455_p7 = pneg %p2454_p3  ;;  %p2461_p1 = por %p2460_p2, %p2459_p12 }
  0x8a   : > { %p2462_p4 = pnand %p2461_p1, %p2455_p7 }
  0x8c   : > { %2465 = shalt.err (!%p2462_p4)
}
  0x8d   : > { %2213 = dma.hbm_to_vmem [thread:$0]  (!%p2807_p11), %s2804_s10, 128, %s2811_s25, %s349_s2  }
  0x8e   : > { %s366_s6 = sand.u32 1, %s2574_s16   ;;  %s370_s20 = scalar_lea.vmem [#allocation5], %s2799_s18 }
  0x8f   : > { %s377_s9 = sshll.u32 %s370_s20, 4  ;;  %s367_s22 = scalar_lea.sflag [#allocation6], %s366_s6  ;;  %s378_s9 = int_to_ptr.vmem [resolvable:$true] %s377_s9 }
  0x90   : > { %s2466_s13 = scalar_lea.hbm %s2816_s27, 128  ;;  %s2471_s11 = scalar_lea.hbm %s3149_s1, 256 }
  0x91   : > { %p2467_p0 = scmp.ne.s32.totalorder %s2816_s27, %s2466_s13  ;;  %p2472_p6 = scmp.lt.u32.totalorder %s2816_s27, %s3149_s1 }
  0x92   : > { %p2473_p10 = scmp.lt.u32.totalorder %s2471_s11, %s2466_s13  ;;  %p2475_p7 = scmp.lt.u32.totalorder %s2466_s13, %s2816_s27 }
  0x93   : > { %p2469_p8 = pnand %p2467_p0, %p2438_p9 }
  0x94   : > { %p2474_p3 = por %p2473_p10, %p2472_p6 }
  0x95   : > { %p2470_p13 = pneg %p2469_p8 }
  0x96   : > { %p2476_p12 = por %p2475_p7, %p2474_p3 }
  0x98   : > { %p2477_p2 = pnand %p2476_p12, %p2470_p13 }
  0x9a   : > { %2480 = shalt.err (!%p2477_p2)
}
  0x9b   : > { %s2481_s18 = scalar_lea.vmem %s378_s9, 128  ;;  %s2584_s10 = smov [#allocation5]  }
  0x9c   : > { %p2482_p1 = scmp.ne.s32.totalorder %s378_s9, %s2481_s18  ;;  %s2486_s25 = sshll.u32 %s2584_s10, 4  ;;  %s2487_s25 = int_to_ptr.vmem [resolvable:$false] %s2486_s25 }
  0x9d   : > { %s2488_s2 = scalar_lea.vmem %s2487_s25, 256  ;;  %p2489_p8 = scmp.lt.s32.totalorder %s378_s9, %s2487_s25 }
  0x9e   : > { %p2484_p4 = pnand %p2482_p1, %p2438_p9  ;;  %p2490_p5 = scmp.lt.s32.totalorder %s2488_s2, %s2481_s18 }
  0xa0   : > { %p2485_p0 = pneg %p2484_p4  ;;  %p2491_p6 = por %p2490_p5, %p2489_p8 }
  0xa2   : > { %p2492_p10 = pnand %p2491_p6, %p2485_p0 }
  0xa4   : > { %2495 = shalt.err (!%p2492_p10)
}
  0xa5   : > { %2216 = dma.hbm_to_vmem [thread:$0]  (!%p2807_p11), %s2816_s27, 128, %s378_s9, %s367_s22  }
  0xa6   : > { %p3184_p13 = scmp.ne.s32.totalorder %s3175_s21, 0 }
  0xa7   : > { %s2867_s6 = sand.u32 (!%p3184_p13), 1, %s2566_s14   ;;  %p3185_p5 = scmp.ne.s32.totalorder (!%p3184_p13), %s3172_s19, 0 }
  0xa8   : > { %386 = sbr.rel (%p3184_p13) target bundleno = 2459 (0x99b), region = 60  ;;  %s2870_s20 = sshll.u32 (!%p3184_p13), %s2867_s6, 3 }
  0xa9   : > { %s389_s13 = scalar_lea.sflag (!%p3184_p13), [#allocation3], %s2867_s6  ;;  %s392_s29 = scalar_lea.vmem (!%p3184_p13), [#allocation2], %s2870_s20 }
  0xaf   : > { %2541 = dma.done.wait (%p3185_p5), %s389_s13, 128  }
  0xb0   : > { %2543 = vsyncadd (%p3185_p5), %s389_s13, 4294967168  ;;  %s397_s21 = sand.u32 1, %s2672_s17   ;;  %s401_s27 = scalar_lea.vmem [#allocation5], %s2870_s20 }
  0xb1   : > { %s398_s23 = scalar_lea.sflag [#allocation6], %s397_s21 }
  0xb2   : > { %2545 = dma.done.wait (%p3185_p5), %s398_s23, 128  }
  0xb3   : > { %2547 = vsyncadd (%p3185_p5), %s398_s23, 4294967168  ;;  %p3186_p11 = scmp.eq.s32.totalorder %s2672_s17, 0 }
  0xb5   : > { %2549 = dma.done.wait (%p3186_p11), [#allocation6], 2048   ;;  %p3187_p9 = pmov %p3186_p11 }
  0xb7   : > { %2551 = vsyncadd (%p3187_p9), [#allocation6], 4294965248  ;;  %p3188_p3 = pmov %p3187_p9 }
  0xb9   : > { %2553 = dma.done.wait (%p3188_p3), [#allocation9], 2048   ;;  %p3189_p7 = pmov %p3188_p3 }
  0xba   : > { %v2585_v0 = vmov 0   ;;  %v2586_v1 = vmov 0.0   ;;  %v2278_v2 = vld [vmem:[#allocation7 + $0x4] ss:$8 sps:$4 sm:$0xff]   ;;  %v2280_v3 = vld [vmem:[#allocation7] ss:$8 sps:$4 sm:$0xff]   ;;  %v478_v31 = vlaneseq }
  0xbb   : > { %2555 = vsyncadd (%p3189_p7), [#allocation9], 4294965248  ;;  %600 = vmatprep.mubr.bf16.mxu0 %v2585_v0  ;;  %2046 = vmatprep.subr.bf16.mxu1 %v2586_v1  ;;  %v2281_v4 = vld [vmem:[#allocation7 + $0x14] ss:$8 sps:$4 sm:$0xff]   ;;  %v2283_v5 = vld [vmem:[#allocation7 + $0x10] ss:$8 sps:$4 sm:$0xff]  }
  0xbc   : > { %568 = vmatprep.subr.bf16.mxu0 %v2278_v2  ;;  %v2284_v6 = vld [vmem:[#allocation7 + $0x24] ss:$8 sps:$4 sm:$0xff]   ;;  %v2286_v7 = vld [vmem:[#allocation7 + $0x20] ss:$8 sps:$4 sm:$0xff]   ;;  %v2287_v8 = vld [vmem:[#allocation7 + $0x34] ss:$8 sps:$4 sm:$0xff]  }
  0xbd   : > { %569 = vmatpush1.bf16.msra.mxu0 %v2280_v3  ;;  %v2289_v9 = vld [vmem:[#allocation7 + $0x30] ss:$8 sps:$4 sm:$0xff]   ;;  %v2290_v10 = vld [vmem:[#allocation7 + $0x44] ss:$8 sps:$4 sm:$0xff]   ;;  %v2292_v13 = vld [vmem:[#allocation7 + $0x40] ss:$8 sps:$4 sm:$0xff]  }
  0xbe   : > { %570 = vmatprep.subr.bf16.mxu0 %v2281_v4  ;;  %v2302_v11 = vld [vmem:[#allocation8] sm:$0xff]   ;;  %v2303_v12 = vld [vmem:[#allocation8 + $0x8] sm:$0xff]   ;;  %v2293_v14 = vld [vmem:[#allocation7 + $0x54] ss:$8 sps:$4 sm:$0xff]   ;;  %vm2587_vm0 = vmmov 0   ;;  %v479_v32 = vshrl.u32 %v478_v31, 7 }
  0xbf   : > { %2047 = vmatpush3.bf16.msra.mxu1 %v2302_v11  ;;  %v2304_v15 = vld [vmem:[#allocation8 + $0x10] sm:$0xff]   ;;  %v2296_v17 = vld [vmem:[#allocation7 + $0x64] ss:$8 sps:$4 sm:$0xff]   ;;  %v2305_v18 = vld [vmem:[#allocation8 + $0x18] sm:$0xff]   ;;  %2062 = vmatprep.mubr.msk.bf16.mxu1 %vm2587_vm0, %v2586_v1  ;;  %vm725_vm1 = vcmask 130048   ;;  %s2588_s22 = smov 112  }
  0xc0   : > { %2048 = vmatprep.subr.bf16.mxu1 %v2586_v1  ;;  %v2295_v16 = vld [vmem:[#allocation7 + $0x50] ss:$8 sps:$4 sm:$0xff]   ;;  %v2298_v19 = vld [vmem:[#allocation7 + $0x60] ss:$8 sps:$4 sm:$0xff]   ;;  %v2299_v22 = vld [vmem:[#allocation7 + $0x74] ss:$8 sps:$4 sm:$0xff]  }
  0xc1   : > { %571 = vmatpush1.bf16.msra.mxu0 %v2283_v5  ;;  %v2897_v20 = vld [vmem:[%s392_s29] sm:$0xff]  ;;  %v457_v21 = vld [vmem:[%s401_s27] sm:$0xff]  ;;  %v480_v33 = vsub.s32 0, %v479_v32  ;;  %v484_v35 = vsub.s32 1, %v479_v32  ;;  %s2589_s28 = smov 96   ;;  %s2590_s11 = smov 80  }
  0xc2   : > { %572 = vmatprep.subr.bf16.mxu0 %v2284_v6  ;;  %v458_v23 = vadd.f32 %v457_v21, %v2897_v20  ;;  %v2306_v24 = vld [vmem:[#allocation8 + $0x20] sm:$0xff]   ;;  %v2301_v25 = vld [vmem:[#allocation7 + $0x70] ss:$8 sps:$4 sm:$0xff]   ;;  %v2307_v27 = vld [vmem:[#allocation8 + $0x28] sm:$0xff]   ;;  %v609_v30 = vpack.c.bf16 %v2897_v20, %v2897_v20  ;;  %s2591_s26 = smov 64   ;;  %s2592_s4 = smov 48  }
  0xc3   : > { %2049 = vmatpush3.bf16.msra.mxu1 %v2303_v12  ;;  %v2308_v28 = vld [vmem:[#allocation8 + $0x30] sm:$0xff]   ;;  %v2309_v29 = vld [vmem:[#allocation8 + $0x38] sm:$0xff]   ;;  %v476_v34 = vld [vmem:[%s3151_s3] sm:$0x3]  ;;  %s2593_s18 = smov 32   ;;  %s2594_s10 = smov 16  }
  0xc4   : > { %2050 = vmatprep.subr.bf16.mxu1 %v2586_v1  ;;  %v459_v26 = vpack.c.bf16 %v458_v23, %v458_v23  ;;  %v481_v36 = vrot.slane %v476_v34, %v480_v33  ;;  %v485_v37 = vrot.slane %v476_v34, %v484_v35  ;;  %v1956_v48 = vld [vmem:[%s3153_s5] ss:$0 sm:$0xff]  ;;  %vm788_vm2 = vcmask 1043456   ;;  %s3190_s9 = sld [smem:[#allocation22_spill]]  ;;  %s1789_s25 = scalar_lea.sflag [#allocation4], %s2867_s6 }
  0xc5   : > { %573 = vmatpush1.bf16.msra.mxu0 %v2286_v7  ;;  %vm772_vm3 = vcmask 64512   ;;  %vm1634_vm4 = vcmask 261120   ;;  %vm1636_vm5 = vcmask 392192   ;;  %vm1638_vm6 = vcmask 523264   ;;  %p3192_p2 = scmp.ne.s32.totalorder %s3182_s12, 0 }
  0xc6   : > { %574 = vmatprep.subr.bf16.mxu0 %v2287_v8  ;;  %vm1640_vm7 = vcmask 654336   ;;  %vm1642_vm8 = vcmask 785408   ;;  %vm1644_vm9 = vcmask 916480  }
  0xc7   : > { %2051 = vmatpush3.bf16.msra.mxu1 %v2304_v15 }
  0xc8   : > { %2052 = vmatprep.subr.bf16.mxu1 %v2586_v1 }
  0xc9   : > { %575 = vmatpush1.bf16.msra.mxu0 %v2289_v9 }
  0xca   : > { %576 = vmatprep.subr.bf16.mxu0 %v2290_v10 }
  0xcb   : > { %2053 = vmatpush3.bf16.msra.mxu1 %v2305_v18 }
  0xcc   : > { %2054 = vmatprep.subr.bf16.mxu1 %v2586_v1 }
  0xcd   : > { %577 = vmatpush1.bf16.msra.mxu0 %v2292_v13 }
  0xce   : > { %578 = vmatprep.subr.bf16.mxu0 %v2293_v14 }
  0xcf   : > { %2055 = vmatpush3.bf16.msra.mxu1 %v2306_v24 }
  0xd0   : > { %2056 = vmatprep.subr.bf16.mxu1 %v2586_v1 }
  0xd1   : > { %579 = vmatpush1.bf16.msra.mxu0 %v2295_v16 }
  0xd2   : > { %580 = vmatprep.subr.bf16.mxu0 %v2296_v17 }
  0xd3   : > { %2057 = vmatpush3.bf16.msra.mxu1 %v2307_v27 }
  0xd4   : > { %2058 = vmatprep.subr.bf16.mxu1 %v2586_v1 }
  0xd5   : > { %581 = vmatpush1.bf16.msra.mxu0 %v2298_v19 }
  0xd6   : > { %582 = vmatprep.subr.bf16.mxu0 %v2299_v22 }
  0xd7   : > { %2059 = vmatpush3.bf16.msra.mxu1 %v2308_v28 }
  0xd8   : > { %2060 = vmatprep.subr.bf16.mxu1 %v2586_v1 }
  0xd9   : > { %583 = vmatpush1.bf16.msra.mxu0 %v2301_v25 }
  0xda   : > { %2090 = vmatprep.subr.bf16.mxu0 %v2586_v1 }
  0xdb   : > { %2061 = vmatpush3.bf16.msra.mxu1 %v2309_v29 }
  0xdc   : > { %601 = vmatmul.mubr.bf16.vlgmr.msra.gmra.mrb[0].mxu0 %v459_v26  ;;  %2066 = vmatprep.subr.bf16.mxu1 %v2586_v1 }
  0xdd   : > { %2092 = vmatprep.mubr.msk.bf16.mxu0 %vm2587_vm0, %v2586_v1 }
  0xde   : > { %2063 = vmatmul.mubr.bf16.vlgmr.msra.gmra.mrb[0].mxu1 %v609_v30 }
  0xdf   : > { %2068 = vmatprep.mubr.msk.bf16.mxu1 %vm2587_vm0, %v2586_v1 }
 0x1af   : > { %v602_v38 = vpop.f32.mrb[0].mxu0 }
 0x1b0   : > { %v603_v39 = vadd.f32 %v602_v38, %v481_v36  ;;  %v604_v40 = vpop.f32.mrb[1].mxu0 }
 0x1b1   : > { %v605_v41 = vadd.f32 %v604_v40, %v485_v37  ;;  %v606_v42 = vpop.f32.mrb[2].mxu0  ;;  %v715_v49 = vpop.f32.mrb[0].mxu1 }
 0x1b2   : > { %v607_v43 = vpop.f32.mrb[3].mxu0  ;;  %v721_v44 = vmul.f32 0.25, %v603_v39  ;;  %v716_v50 = vadd.f32 %v1956_v48, %v715_v49  ;;  %v2064_v51 = vpop.f32.mrb[1].mxu1 }
 0x1b3   : > { %v723_v45 = vpack.c.bf16 %v605_v41, %v605_v41  ;;  %v718_v52 = vpop.f32.mrb[2].mxu1 }
 0x1b4   : > { %v722_v47 = vpack.c.bf16 %v721_v44, %v721_v44  ;;  %v2938_v53 = vpack.c.bf16 %v716_v50, %v716_v50  ;;  %v2065_v54 = vpop.f32.mrb[3].mxu1 }
 0x1b5   : > { %836 = vrot.lane.b32.xlu1 %v723_v45, %s2588_s22  ;;  %v730_v46 = vsel %vm725_vm1, %v723_v45, 0 }
 0x1b6   : > { %2067 = vmatpush3.bf16.xpose.msra.mxu1 %v730_v46  ;;  %v790_v55 = vsel %vm788_vm2, %v2938_v53, 0 }
 0x1b7   : > { %2072 = vmatprep.subr.bf16.mxu1 %v2586_v1 }
 0x1b9   : > { %833 = vrot.lane.b32.xlu1 %v722_v47, %s2588_s22 }
 0x1bd   : > { %945 = vrot.lane.b32.xlu1 %v722_v47, %s2589_s28  ;;  %2069 = vmatmul.mubr.msk.bf16.vlgmr.msra.gmra.mrb[4].mxu1 %vm725_vm1, %v722_v47 }
 0x1be   : > { %2074 = vmatprep.mubr.msk.bf16.mxu1 %vm2587_vm0, %v2586_v1  ;;  %2073 = vmatpush3.bf16.msra.mxu1 %v790_v55 }
 0x1bf   : > { %2078 = vmatprep.subr.bf16.mxu1 %v2586_v1 }
 0x1c1   : > { %1057 = vrot.lane.b32.xlu1 %v723_v45, %s2590_s11 }
 0x1c5   : > { %1055 = vrot.lane.b32.xlu1 %v722_v47, %s2590_s11 }
 0x1c9   : > { %1167 = vrot.lane.b32.xlu1 %v723_v45, %s2591_s26 }
 0x1cd   : > { %1165 = vrot.lane.b32.xlu1 %v722_v47, %s2591_s26 }
 0x1d1   : > { %1277 = vrot.lane.b32.xlu1 %v723_v45, %s2592_s4 }
 0x1d5   : > { %1387 = vrot.lane.b32.xlu1 %v723_v45, %s2593_s18 }
 0x1d9   : > { %1497 = vrot.lane.b32.xlu1 %v723_v45, %s2594_s10 }
 0x227   : > { %v837_v3 = vpop.permute.xlu1 %836 }
 0x228   : > { %v842_v16 = vsel %vm725_vm1, %v837_v3, 0 }
 0x22b   : > { %v834_v4 = vpop.permute.xlu1 %833 }
 0x22f   : > { %v946_v5 = vpop.permute.xlu1 %945 }
 0x233   : > { %v1058_v7 = vpop.permute.xlu1 %1057 }
 0x234   : > { %v1063_v13 = vsel %vm725_vm1, %v1058_v7, 0 }
 0x237   : > { %v1056_v10 = vpop.permute.xlu1 %1055 }
 0x23b   : > { %v1168_v14 = vpop.permute.xlu1 %1167 }
 0x23c   : > { %v1173_v18 = vsel %vm725_vm1, %v1168_v14, 0 }
 0x23f   : > { %v1166_v17 = vpop.permute.xlu1 %1165 }
 0x243   : > { %v1278_v19 = vpop.permute.xlu1 %1277 }
 0x244   : > { %v1283_v21 = vsel %vm725_vm1, %v1278_v19, 0 }
 0x247   : > { %v1388_v22 = vpop.permute.xlu1 %1387 }
 0x248   : > { %v1393_v24 = vsel %vm725_vm1, %v1388_v22, 0 }
 0x24b   : > { %v1498_v25 = vpop.permute.xlu1 %1497 }
 0x24c   : > { %v1503_v27 = vsel %vm725_vm1, %v1498_v25, 0 }
 0x290   : > { %v766_v56 = vpop.f32.mrb[4].mxu1 }
 0x291   : > { %v2070_v57 = vpop.f32.mrb[5].mxu1  ;;  %v773_v58 = vsel %vm772_vm3, %v766_v56, -inf }
 0x292   : > { %774 = vmax.xlane.f32.xlu0 %v773_v58  ;;  %v769_v59 = vpop.f32.mrb[6].mxu1 }
 0x293   : > { %v2071_v60 = vpop.f32.mrb[7].mxu1 }
 0x31f   : > { %v775_v61 = vpop.xlane.xlu0 %774 }
 0x320   : > { %v776_v62 = vsub.f32 %v766_v56, %v775_v61 }
 0x322   : > { %v777_v63 = vmul.f32 1.442695, %v776_v62 }
 0x324   : > { %2318 = vpow2.f32 %v777_v63 }
 0x32e   : > { %v2319_v0 = vpop.eup %2318 }
 0x32f   : > { %v779_v2 = vsel %vm772_vm3, %v2319_v0, 0.0 }
 0x330   : > { %780 = vadd.xlane.f32.xlu0 %v779_v2 }
 0x346   : > { %947 = vrot.lane.b32.xlu0 %v723_v45, %s2589_s28 }
 0x34a   : > { %1275 = vrot.lane.b32.xlu0 %v722_v47, %s2592_s4 }
 0x34e   : > { %1385 = vrot.lane.b32.xlu0 %v722_v47, %s2593_s18 }
 0x352   : > { %1495 = vrot.lane.b32.xlu0 %v722_v47, %s2594_s10 }
 0x3bd   : > { %v781_v6 = vpop.xlane.xlu0 %780 }
 0x3be   : > { %2320 = vrcp.f32 %v781_v6 }
 0x3c1   : > { %v948_v8 = vpop.permute.xlu0 %947 }
 0x3c2   : > { %v953_v9 = vsel %vm725_vm1, %v948_v8, 0 }
 0x3c3   : > { %2091 = vmatpush3.bf16.xpose.msra.mxu0 %v953_v9 }
 0x3c4   : > { %2102 = vmatprep.subr.bf16.mxu0 %v2586_v1 }
 0x3c5   : > { %v1276_v23 = vpop.permute.xlu0 %1275 }
 0x3c8   : > { %v2321_v11 = vpop.eup %2320 }
 0x3c9   : > { %v783_v12 = vmul.f32 %v2321_v11, %v2319_v0  ;;  %v1386_v26 = vpop.permute.xlu0 %1385 }
 0x3ca   : > { %2093 = vmatmul.mubr.msk.bf16.vlgmr.msra.gmra.mrb[4].mxu0 %vm725_vm1, %v946_v5 }
 0x3cb   : > { %2103 = vmatpush3.bf16.xpose.msra.mxu0 %v1063_v13  ;;  %v784_v15 = vpack.c.bf16 %v783_v12, %v783_v12  ;;  %2104 = vmatprep.mubr.msk.bf16.mxu0 %vm2587_vm0, %v2586_v1 }
 0x3cc   : > { %2114 = vmatprep.subr.bf16.mxu0 %v2586_v1 }
 0x3cd   : > { %2075 = vmatmul.mubr.msk.bf16.vlgmr.msra.gmra.mrb[8].mxu1 %vm772_vm3, %v784_v15  ;;  %v1496_v28 = vpop.permute.xlu0 %1495 }
 0x3ce   : > { %2079 = vmatpush3.bf16.xpose.msra.mxu1 %v842_v16  ;;  %2080 = vmatprep.mubr.msk.bf16.mxu1 %vm2587_vm0, %v2586_v1 }
 0x3cf   : > { %2084 = vmatprep.subr.bf16.mxu1 %v2586_v1 }
 0x3d2   : > { %2105 = vmatmul.mubr.msk.bf16.vlgmr.msra.gmra.mrb[8].mxu0 %vm725_vm1, %v1056_v10 }
 0x3d3   : > { %2115 = vmatpush3.bf16.xpose.msra.mxu0 %v1173_v18  ;;  %2116 = vmatprep.mubr.msk.bf16.mxu0 %vm2587_vm0, %v2586_v1 }
 0x3d4   : > { %2126 = vmatprep.subr.bf16.mxu0 %v2586_v1 }
 0x3d5   : > { %2081 = vmatmul.mubr.msk.bf16.vlgmr.msra.gmra.mrb[12].mxu1 %vm725_vm1, %v834_v4 }
 0x3d6   : > { %2086 = vmatprep.mubr.msk.bf16.mxu1 %vm2587_vm0, %v2586_v1 }
 0x3da   : > { %2117 = vmatmul.mubr.msk.bf16.vlgmr.msra.gmra.mrb[12].mxu0 %vm725_vm1, %v1166_v17 }
 0x3db   : > { %2127 = vmatpush3.bf16.xpose.msra.mxu0 %v1283_v21  ;;  %2128 = vmatprep.mubr.msk.bf16.mxu0 %vm2587_vm0, %v2586_v1 }
 0x3dc   : > { %2138 = vmatprep.subr.bf16.mxu0 %v2586_v1 }
 0x3e2   : > { %2129 = vmatmul.mubr.msk.bf16.vlgmr.msra.gmra.mrb[16].mxu0 %vm725_vm1, %v1276_v23 }
 0x3e3   : > { %2139 = vmatpush3.bf16.xpose.msra.mxu0 %v1393_v24  ;;  %2140 = vmatprep.mubr.msk.bf16.mxu0 %vm2587_vm0, %v2586_v1 }
 0x3e4   : > { %2150 = vmatprep.subr.bf16.mxu0 %v2586_v1 }
 0x3ea   : > { %2141 = vmatmul.mubr.msk.bf16.vlgmr.msra.gmra.mrb[20].mxu0 %vm725_vm1, %v1386_v26 }
 0x3eb   : > { %2151 = vmatpush3.bf16.xpose.msra.mxu0 %v1503_v27  ;;  %2152 = vmatprep.mubr.msk.bf16.mxu0 %vm2587_vm0, %v2586_v1 }
 0x3ec   : > { %2162 = vmatprep.subr.bf16.mxu0 %v2586_v1 }
 0x3f2   : > { %2153 = vmatmul.mubr.msk.bf16.vlgmr.msra.gmra.mrb[24].mxu0 %vm725_vm1, %v1496_v28 }
 0x3f3   : > { %2178 = vmatprep.mubr.msk.bf16.mxu0 %vm2587_vm0, %v2586_v1 }
 0x49d   : > { %v989_v29 = vpop.f32.mrb[4].mxu0 }
 0x49e   : > { %v2094_v30 = vpop.f32.mrb[5].mxu0  ;;  %v995_v31 = vsel %vm772_vm3, %v989_v29, -inf }
 0x49f   : > { %996 = vmax.xlane.f32.xlu0 %v995_v31  ;;  %v992_v32 = vpop.f32.mrb[6].mxu0 }
 0x4a0   : > { %v2988_v33 = vpop.f32.mrb[8].mxu1  ;;  %v2095_v34 = vpop.f32.mrb[7].mxu0 }
 0x4a1   : > { %v2076_v35 = vpop.f32.mrb[9].mxu1 }
 0x4a2   : > { %v829_v36 = vpop.f32.mrb[10].mxu1 }
 0x4a3   : > { %v2077_v37 = vpop.f32.mrb[11].mxu1 }
 0x4a5   : > { %v1099_v38 = vpop.f32.mrb[8].mxu0 }
 0x4a6   : > { %v2106_v39 = vpop.f32.mrb[9].mxu0  ;;  %v1105_v40 = vsel %vm772_vm3, %v1099_v38, -inf }
 0x4a7   : > { %1106 = vmax.xlane.f32.xlu0 %v1105_v40  ;;  %v1102_v41 = vpop.f32.mrb[10].mxu0 }
 0x4a8   : > { %v878_v42 = vpop.f32.mrb[12].mxu1  ;;  %v2107_v43 = vpop.f32.mrb[11].mxu0 }
 0x4a9   : > { %v2082_v44 = vpop.f32.mrb[13].mxu1  ;;  %v884_v45 = vsel %vm772_vm3, %v878_v42, -inf }
 0x4aa   : > { %885 = vmax.xlane.f32.xlu1 %v884_v45  ;;  %v881_v46 = vpop.f32.mrb[14].mxu1 }
 0x4ab   : > { %v2083_v47 = vpop.f32.mrb[15].mxu1 }
 0x4ad   : > { %v1209_v48 = vpop.f32.mrb[12].mxu0 }
 0x4ae   : > { %v2118_v49 = vpop.f32.mrb[13].mxu0  ;;  %v1215_v50 = vsel %vm772_vm3, %v1209_v48, -inf }
 0x4af   : > { %v1212_v51 = vpop.f32.mrb[14].mxu0  ;;  %1216 = vmax.xlane.f32.xlu1 %v1215_v50 }
 0x4b0   : > { %v2119_v52 = vpop.f32.mrb[15].mxu0 }
 0x4b5   : > { %v1319_v54 = vpop.f32.mrb[16].mxu0 }
 0x4b6   : > { %v2130_v55 = vpop.f32.mrb[17].mxu0  ;;  %v1325_v56 = vsel %vm772_vm3, %v1319_v54, -inf }
 0x4b7   : > { %1326 = vmax.xlane.f32.xlu0 %v1325_v56  ;;  %v1322_v57 = vpop.f32.mrb[18].mxu0 }
 0x4b8   : > { %v2131_v58 = vpop.f32.mrb[19].mxu0 }
 0x4bd   : > { %v1429_v59 = vpop.f32.mrb[20].mxu0 }
 0x4be   : > { %v2142_v60 = vpop.f32.mrb[21].mxu0  ;;  %v1435_v61 = vsel %vm772_vm3, %v1429_v59, -inf }
 0x4bf   : > { %v1432_v62 = vpop.f32.mrb[22].mxu0  ;;  %1436 = vmax.xlane.f32.xlu1 %v1435_v61 }
 0x4c0   : > { %v2143_v63 = vpop.f32.mrb[23].mxu0 }
 0x4c5   : > { %v1539_v0 = vpop.f32.mrb[24].mxu0 }
 0x4c6   : > { %v2154_v2 = vpop.f32.mrb[25].mxu0  ;;  %v1545_v3 = vsel %vm772_vm3, %v1539_v0, -inf }
 0x4c7   : > { %1546 = vmax.xlane.f32.xlu0 %v1545_v3  ;;  %v1542_v4 = vpop.f32.mrb[26].mxu0 }
 0x4c8   : > { %v2155_v5 = vpop.f32.mrb[27].mxu0 }
 0x52c   : > { %v997_v6 = vpop.xlane.xlu0 %996 }
 0x52d   : > { %v998_v7 = vsub.f32 %v989_v29, %v997_v6 }
 0x52f   : > { %v999_v8 = vmul.f32 1.442695, %v998_v7 }
 0x531   : > { %2322 = vpow2.f32 %v999_v8 }
 0x534   : > { %v1107_v9 = vpop.xlane.xlu0 %1106 }
 0x535   : > { %v1108_v10 = vsub.f32 %v1099_v38, %v1107_v9 }
 0x537   : > { %v1109_v11 = vmul.f32 1.442695, %v1108_v10  ;;  %v886_v12 = vpop.xlane.xlu1 %885 }
 0x538   : > { %v887_v13 = vsub.f32 %v878_v42, %v886_v12 }
 0x539   : > { %2324 = vpow2.f32 %v1109_v11 }
 0x53a   : > { %v888_v14 = vmul.f32 1.442695, %v887_v13 }
 0x53b   : > { %v2996_v15 = vpop.eup %2322 }
 0x53c   : > { %2326 = vpow2.f32 %v888_v14  ;;  %v1217_v16 = vpop.xlane.xlu1 %1216  ;;  %v1001_v17 = vsel %vm772_vm3, %v2996_v15, 0.0 }
 0x53d   : > { %v1218_v18 = vsub.f32 %v1209_v48, %v1217_v16  ;;  %1002 = vadd.xlane.f32.xlu0 %v1001_v17 }
 0x53f   : > { %v1219_v19 = vmul.f32 1.442695, %v1218_v18 }
 0x541   : > { %2328 = vpow2.f32 %v1219_v19 }
 0x543   : > { %v3000_v21 = vpop.eup %2324 }
 0x544   : > { %v1327_v22 = vpop.xlane.xlu0 %1326  ;;  %v1111_v23 = vsel %vm772_vm3, %v3000_v21, 0.0 }
 0x545   : > { %v1328_v24 = vsub.f32 %v1319_v54, %v1327_v22  ;;  %1112 = vadd.xlane.f32.xlu1 %v1111_v23 }
 0x546   : > { %v2327_v25 = vpop.eup %2326 }
 0x547   : > { %v1329_v26 = vmul.f32 1.442695, %v1328_v24  ;;  %v890_v27 = vsel %vm772_vm3, %v2327_v25, 0.0 }
 0x549   : > { %2330 = vpow2.f32 %v1329_v26  ;;  %891 = vadd.xlane.f32.xlu1 %v890_v27 }
 0x54b   : > { %v3005_v28 = vpop.eup %2328 }
 0x54c   : > { %v1221_v29 = vsel %vm772_vm3, %v3005_v28, 0.0  ;;  %v1437_v32 = vpop.xlane.xlu1 %1436 }
 0x54d   : > { %1222 = vadd.xlane.f32.xlu0 %v1221_v29  ;;  %v1438_v34 = vsub.f32 %v1429_v59, %v1437_v32 }
 0x54f   : > { %v1439_v35 = vmul.f32 1.442695, %v1438_v34 }
 0x551   : > { %2332 = vpow2.f32 %v1439_v35 }
 0x553   : > { %v3009_v30 = vpop.eup %2330 }
 0x554   : > { %v1331_v31 = vsel %vm772_vm3, %v3009_v30, 0.0  ;;  %v1547_v36 = vpop.xlane.xlu0 %1546 }
 0x555   : > { %1332 = vadd.xlane.f32.xlu0 %v1331_v31  ;;  %v1548_v37 = vsub.f32 %v1539_v0, %v1547_v36  ;;  %v2310_v36 = vld [vmem:[#allocation10] sm:$0xff]  }
 0x556   : > { %2163 = vmatpush3.bf16.msra.mxu0 %v2310_v36 }
 0x557   : > { %v1549_v39 = vmul.f32 1.442695, %v1548_v37  ;;  %v2311_v37 = vld [vmem:[#allocation10 + $0x8] sm:$0xff]   ;;  %2164 = vmatprep.subr.bf16.mxu0 %v2586_v1 }
 0x559   : > { %2334 = vpow2.f32 %v1549_v39 }
 0x55a   : > { %897 = vrot.lane.b32.xlu1 %v2938_v53, %s2588_s22  ;;  %2165 = vmatpush3.bf16.msra.mxu0 %v2311_v37 }
 0x55b   : > { %v3019_v38 = vpop.eup %2332  ;;  %2166 = vmatprep.subr.bf16.mxu0 %v2586_v1 }
 0x55c   : > { %v1441_v40 = vsel %vm772_vm3, %v3019_v38, 0.0 }
 0x563   : > { %v3023_v41 = vpop.eup %2334 }
 0x564   : > { %v1551_v42 = vsel %vm772_vm3, %v3023_v41, 0.0 }
 0x56b   : > { %1007 = vrot.lane.b32.xlu0 %v2938_v53, %s2589_s28 }
 0x56f   : > { %1117 = vrot.lane.b32.xlu0 %v2938_v53, %s2590_s11 }
 0x57e   : > { %1442 = vadd.xlane.f32.xlu1 %v1441_v40 }
 0x58e   : > { %1552 = vadd.xlane.f32.xlu0 %v1551_v42 }
 0x58f   : > { %1227 = vrot.lane.b32.xlu1 %v2938_v53, %s2591_s26 }
 0x593   : > { %1447 = vrot.lane.b32.xlu1 %v2938_v53, %s2593_s18 }
 0x597   : > { %1557 = vrot.lane.b32.xlu1 %v2938_v53, %s2594_s10 }
 0x5a4   : > { %1337 = vrot.lane.b32.xlu0 %v2938_v53, %s2592_s4 }
 0x5ca   : > { %v1003_v45 = vpop.xlane.xlu0 %1002 }
 0x5d2   : > { %v1113_v43 = vpop.xlane.xlu1 %1112 }
 0x5d6   : > { %v892_v44 = vpop.xlane.xlu1 %891 }
 0x5d7   : > { %2336 = vrcp.f32 %v892_v44  ;;  %v2314_v44 = vld [vmem:[#allocation10 + $0x20] sm:$0xff]  }
 0x5d8   : > { %2338 = vrcp.f32 %v1003_v45  ;;  %v2315_v45 = vld [vmem:[#allocation10 + $0x28] sm:$0xff]  }
 0x5d9   : > { %2340 = vrcp.f32 %v1113_v43  ;;  %v2313_v43 = vld [vmem:[#allocation10 + $0x18] sm:$0xff]  }
 0x5da   : > { %v898_v46 = vpop.permute.xlu1 %897  ;;  %v1223_v48 = vpop.xlane.xlu0 %1222 }
 0x5db   : > { %v903_v47 = vsel %vm788_vm2, %v898_v46, 0  ;;  %2342 = vrcp.f32 %v1223_v48  ;;  %v2316_v46 = vld [vmem:[#allocation10 + $0x30] sm:$0xff]  }
 0x5dc   : > { %2085 = vmatpush3.bf16.msra.mxu1 %v903_v47 }
 0x5dd   : > { %2096 = vmatprep.subr.bf16.mxu1 %v2586_v1 }
 0x5e1   : > { %v2337_v49 = vpop.eup %2336 }
 0x5e2   : > { %v894_v50 = vmul.f32 %v2337_v49, %v2327_v25  ;;  %v1333_v51 = vpop.xlane.xlu0 %1332  ;;  %v2339_v54 = vpop.eup %2338 }
 0x5e3   : > { %v1005_v56 = vmul.f32 %v2339_v54, %v2996_v15  ;;  %v2341_v59 = vpop.eup %2340  ;;  %2344 = vrcp.f32 %v1333_v51  ;;  %v2317_v51 = vld [vmem:[#allocation10 + $0x38] sm:$0xff]  }
 0x5e4   : > { %v895_v52 = vpack.c.bf16 %v894_v50, %v894_v50  ;;  %v1115_v61 = vmul.f32 %v2341_v59, %v3000_v21 }
 0x5e5   : > { %v1006_v58 = vpack.c.bf16 %v1005_v56, %v1005_v56  ;;  %v2343_v63 = vpop.eup %2342 }
 0x5e6   : > { %v1008_v55 = vpop.permute.xlu0 %1007  ;;  %2087 = vmatmul.mubr.msk.bf16.vlgmr.msra.gmra.mrb[16].mxu1 %vm772_vm3, %v895_v52  ;;  %v1116_v62 = vpack.c.bf16 %v1115_v61, %v1115_v61  ;;  %v1225_v2 = vmul.f32 %v2343_v63, %v3005_v28 }
 0x5e7   : > { %v1013_v53 = vsel %vm788_vm2, %v1008_v55, 0  ;;  %2098 = vmatprep.mubr.msk.bf16.mxu1 %vm2587_vm0, %v2586_v1 }
 0x5e8   : > { %2097 = vmatpush3.bf16.msra.mxu1 %v1013_v53  ;;  %v1226_v5 = vpack.c.bf16 %v1225_v2, %v1225_v2 }
 0x5e9   : > { %2108 = vmatprep.subr.bf16.mxu1 %v2586_v1 }
 0x5ea   : > { %v1118_v57 = vpop.permute.xlu0 %1117 }
 0x5eb   : > { %v1123_v60 = vsel %vm788_vm2, %v1118_v57, 0 }
 0x5ed   : > { %v2345_v6 = vpop.eup %2344 }
 0x5ee   : > { %2099 = vmatmul.mubr.msk.bf16.vlgmr.msra.gmra.mrb[20].mxu1 %vm772_vm3, %v1006_v58  ;;  %v1335_v8 = vmul.f32 %v2345_v6, %v3009_v30 }
 0x5ef   : > { %2109 = vmatpush3.bf16.msra.mxu1 %v1123_v60  ;;  %2110 = vmatprep.mubr.msk.bf16.mxu1 %vm2587_vm0, %v2586_v1 }
 0x5f0   : > { %2120 = vmatprep.subr.bf16.mxu1 %v2586_v1  ;;  %v1336_v12 = vpack.c.bf16 %v1335_v8, %v1335_v8 }
 0x5f6   : > { %2111 = vmatmul.mubr.msk.bf16.vlgmr.msra.gmra.mrb[24].mxu1 %vm772_vm3, %v1116_v62 }
 0x5f7   : > { %2122 = vmatprep.mubr.msk.bf16.mxu1 %vm2587_vm0, %v2586_v1 }
 0x60b   : > { %v1443_v0 = vpop.xlane.xlu1 %1442 }
 0x60c   : > { %2346 = vrcp.f32 %v1443_v0 }
 0x60f   : > { %v1228_v3 = vpop.permute.xlu1 %1227 }
 0x610   : > { %v1233_v4 = vsel %vm788_vm2, %v1228_v3, 0 }
 0x611   : > { %2121 = vmatpush3.bf16.msra.mxu1 %v1233_v4 }
 0x612   : > { %2132 = vmatprep.subr.bf16.mxu1 %v2586_v1 }
 0x613   : > { %v1448_v11 = vpop.permute.xlu1 %1447 }
 0x614   : > { %2123 = vmatmul.mubr.msk.bf16.vlgmr.msra.gmra.mrb[28].mxu1 %vm772_vm3, %v1226_v5  ;;  %v1453_v14 = vsel %vm788_vm2, %v1448_v11, 0  ;;  %v1981_v11 = vld [vmem:[%s3155_s7] ss:$0 sm:$0xff] }
 0x615   : > { %2134 = vmatprep.mubr.msk.bf16.mxu1 %vm2587_vm0, %v2586_v1 }
 0x616   : > { %v2347_v13 = vpop.eup %2346 }
 0x617   : > { %v1445_v15 = vmul.f32 %v2347_v13, %v3019_v38  ;;  %v1558_v16 = vpop.permute.xlu1 %1557  ;;  %v2312_v38 = vld [vmem:[#allocation10 + $0x10] sm:$0xff]  }
 0x618   : > { %v1563_v19 = vsel %vm788_vm2, %v1558_v16, 0  ;;  %2167 = vmatpush3.bf16.msra.mxu0 %v2312_v38 }
 0x619   : > { %v1446_v17 = vpack.c.bf16 %v1445_v15, %v1445_v15  ;;  %2168 = vmatprep.subr.bf16.mxu0 %v2586_v1 }
 0x61b   : > { %v1553_v7 = vpop.xlane.xlu0 %1552 }
 0x61c   : > { %2348 = vrcp.f32 %v1553_v7  ;;  %2169 = vmatpush3.bf16.msra.mxu0 %v2313_v43 }
 0x61d   : > { %2170 = vmatprep.subr.bf16.mxu0 %v2586_v1 }
 0x61f   : > { %v1338_v9 = vpop.permute.xlu0 %1337 }
 0x620   : > { %v1343_v10 = vsel %vm788_vm2, %v1338_v9, 0  ;;  %2171 = vmatpush3.bf16.msra.mxu0 %v2314_v44 }
 0x621   : > { %2133 = vmatpush3.bf16.msra.mxu1 %v1343_v10  ;;  %2172 = vmatprep.subr.bf16.mxu0 %v2586_v1 }
 0x622   : > { %2144 = vmatprep.subr.bf16.mxu1 %v2586_v1 }
 0x624   : > { %2135 = vmatmul.mubr.msk.bf16.vlgmr.msra.gmra.mrb[32].mxu1 %vm772_vm3, %v1336_v12  ;;  %2173 = vmatpush3.bf16.msra.mxu0 %v2315_v45 }
 0x625   : > { %2145 = vmatpush3.bf16.msra.mxu1 %v1453_v14  ;;  %2146 = vmatprep.mubr.msk.bf16.mxu1 %vm2587_vm0, %v2586_v1 }
 0x626   : > { %2156 = vmatprep.subr.bf16.mxu1 %v2586_v1  ;;  %v2349_v18 = vpop.eup %2348  ;;  %2174 = vmatprep.subr.bf16.mxu0 %v2586_v1 }
 0x627   : > { %v1555_v21 = vmul.f32 %v2349_v18, %v3023_v41 }
 0x628   : > { %2175 = vmatpush3.bf16.msra.mxu0 %v2316_v46 }
 0x629   : > { %v1556_v22 = vpack.c.bf16 %v1555_v21, %v1555_v21  ;;  %2176 = vmatprep.subr.bf16.mxu0 %v2586_v1 }
 0x62c   : > { %2147 = vmatmul.mubr.msk.bf16.vlgmr.msra.gmra.mrb[36].mxu1 %vm772_vm3, %v1446_v17  ;;  %2177 = vmatpush3.bf16.msra.mxu0 %v2317_v51 }
 0x62d   : > { %2157 = vmatpush3.bf16.msra.mxu1 %v1563_v19  ;;  %2158 = vmatprep.mubr.msk.bf16.mxu1 %vm2587_vm0, %v2586_v1 }
 0x634   : > { %2159 = vmatmul.mubr.msk.bf16.vlgmr.msra.gmra.mrb[40].mxu1 %vm772_vm3, %v1556_v22 }
 0x6b9   : > { %v939_v23 = vpop.f32.mrb[16].mxu1 }
 0x6ba   : > { %1606 = vrot.lane.b32.xlu1 %v939_v23, %s2594_s10  ;;  %v2088_v24 = vpop.f32.mrb[17].mxu1 }
 0x6bb   : > { %v942_v25 = vpop.f32.mrb[18].mxu1 }
 0x6bc   : > { %v2089_v26 = vpop.f32.mrb[19].mxu1 }
 0x6bd   : > { %v1990_v26 = vld [vmem:[%s3156_s8] ss:$0 sm:$0xff] }
 0x6c1   : > { %v1049_v27 = vpop.f32.mrb[20].mxu1 }
 0x6c2   : > { %1610 = vrot.lane.b32.xlu1 %v1049_v27, %s2593_s18  ;;  %v2100_v28 = vpop.f32.mrb[21].mxu1  ;;  %s3191_s18 = sld [smem:[#allocation23_spill]] }
 0x6c3   : > { %v1052_v29 = vpop.f32.mrb[22].mxu1 }
 0x6c4   : > { %v2101_v30 = vpop.f32.mrb[23].mxu1 }
 0x6c9   : > { %v1159_v31 = vpop.f32.mrb[24].mxu1 }
 0x6ca   : > { %1614 = vrot.lane.b32.xlu0 %v1159_v31, %s2592_s4  ;;  %v2112_v32 = vpop.f32.mrb[25].mxu1 }
 0x6cb   : > { %v1162_v34 = vpop.f32.mrb[26].mxu1 }
 0x6cc   : > { %v2113_v35 = vpop.f32.mrb[27].mxu1 }
 0x6e7   : > { %v1269_v39 = vpop.f32.mrb[28].mxu1 }
 0x6e8   : > { %1618 = vrot.lane.b32.xlu1 %v1269_v39, %s2591_s26  ;;  %v2124_v40 = vpop.f32.mrb[29].mxu1 }
 0x6e9   : > { %v1272_v41 = vpop.f32.mrb[30].mxu1 }
 0x6ea   : > { %v2125_v42 = vpop.f32.mrb[31].mxu1 }
 0x6f7   : > { %v1379_v47 = vpop.f32.mrb[32].mxu1 }
 0x6f8   : > { %1622 = vrot.lane.b32.xlu0 %v1379_v47, %s2590_s11  ;;  %v2136_v48 = vpop.f32.mrb[33].mxu1 }
 0x6f9   : > { %v1382_v49 = vpop.f32.mrb[34].mxu1 }
 0x6fa   : > { %v2137_v50 = vpop.f32.mrb[35].mxu1 }
 0x6ff   : > { %v1489_v52 = vpop.f32.mrb[36].mxu1 }
 0x700   : > { %1626 = vrot.lane.b32.xlu1 %v1489_v52, %s2589_s28  ;;  %v2148_v54 = vpop.f32.mrb[37].mxu1  ;;  %s454_s28 = scalar_lea.vmem [#allocation11], %s2870_s20 }
 0x701   : > { %v1492_v55 = vpop.f32.mrb[38].mxu1  ;;  %s1802_s11 = sshll.u32 %s454_s28, 4  ;;  %s3106_s11 = int_to_ptr.vmem [resolvable:$true] %s1802_s11 }
 0x702   : > { %v2149_v53 = vpop.f32.mrb[39].mxu1  ;;  %s2496_s2 = scalar_lea.vmem %s3106_s11, 128 }
 0x703   : > { %p2497_p12 = scmp.ne.s32.totalorder %s3106_s11, %s2496_s2 }
 0x705   : > { %p2498_p1 = pnand %p2497_p12, %p3192_p2 }
 0x707   : > { %v1599_v56 = vpop.f32.mrb[40].mxu1  ;;  %p2499_p4 = pneg %p2498_p1 }
 0x708   : > { %1630 = vrot.lane.b32.xlu0 %v1599_v56, %s2588_s22  ;;  %v2160_v57 = vpop.f32.mrb[41].mxu1  ;;  %s1993_s22 = sshll.u32 %s2672_s17, 7  ;;  %s2595_s17 = smov [#allocation11]  }
 0x709   : > { %v1602_v58 = vpop.f32.mrb[42].mxu1  ;;  %s3104_s10 = scalar_lea.hbm %s3191_s18, %s1993_s22  ;;  %s2500_s20 = sshll.u32 %s2595_s17, 4  ;;  %s2501_s20 = int_to_ptr.vmem [resolvable:$false] %s2500_s20 }
 0x70a   : > { %v2161_v59 = vpop.f32.mrb[43].mxu1  ;;  %s2502_s13 = scalar_lea.vmem %s2501_s20, 256  ;;  %p2503_p0 = scmp.lt.s32.totalorder %s3106_s11, %s2501_s20 }
 0x70b   : > { %p2504_p8 = scmp.lt.s32.totalorder %s2502_s13, %s2496_s2 }
 0x70d   : > { %p2505_p6 = por %p2504_p8, %p2503_p0 }
 0x70f   : > { %p2506_p10 = pnand %p2505_p6, %p2499_p4 }
 0x72c   : > { %v1607_v60 = vpop.permute.xlu1 %1606 }
 0x72d   : > { %v1633_v63 = vsel %vm725_vm1, %v2988_v33, %v1607_v60 }
 0x734   : > { %v1611_v61 = vpop.permute.xlu1 %1610 }
 0x735   : > { %v1635_v0 = vsel %vm1634_vm4, %v1633_v63, %v1611_v61 }
 0x73c   : > { %v1615_v62 = vpop.permute.xlu0 %1614 }
 0x73d   : > { %v1637_v3 = vsel %vm1636_vm5, %v1635_v0, %v1615_v62 }
 0x75a   : > { %v1619_v1 = vpop.permute.xlu1 %1618 }
 0x75b   : > { %v1639_v5 = vsel %vm1638_vm6, %v1637_v3, %v1619_v1 }
 0x76a   : > { %v1623_v2 = vpop.permute.xlu0 %1622 }
 0x76b   : > { %v1641_v6 = vsel %vm1640_vm7, %v1639_v5, %v1623_v2 }
 0x772   : > { %v1627_v4 = vpop.permute.xlu1 %1626 }
 0x773   : > { %v1643_v7 = vsel %vm1642_vm8, %v1641_v6, %v1627_v4 }
 0x77a   : > { %v1631_v8 = vpop.permute.xlu0 %1630 }
 0x77b   : > { %v1645_v9 = vsel %vm1644_vm9, %v1643_v7, %v1631_v8 }
 0x77c   : > { %v1646_v10 = vpack.c.bf16 %v1645_v9, %v1645_v9 }
 0x77e   : > { %2179 = vmatmul.mubr.bf16.vlgmr.msra.gmra.mrb[28].mxu0 %v1646_v10 }
 0x851   : > { %v1752_v33 = vpop.f32.mrb[28].mxu0 }
 0x852   : > { %v1753_v12 = vadd.f32 %v1981_v11, %v1752_v33  ;;  %v2180_v13 = vpop.f32.mrb[29].mxu0 }
 0x853   : > { %v1755_v14 = vpop.f32.mrb[30].mxu0 }
 0x854   : > { %v2181_v15 = vpop.f32.mrb[31].mxu0  ;;  %v1758_v16 = vadd.f32 %v1753_v12, %v2897_v20  ;;  %v1991_v20 = vld [vmem:[%s3190_s9] ss:$0 sm:$0xff] }
 0x856   : > { %1759 = vadd.xlane.f32.xlu1 %v1758_v16 }
 0x8e3   : > { %v1760_v17 = vpop.xlane.xlu1 %1759 }
 0x8e4   : > { %v1762_v18 = vmul.f32 0.0078125, %v1760_v17 }
 0x8e6   : > { %v1763_v19 = vsub.f32 %v1758_v16, %v1762_v18 }
 0x8e8   : > { %v1764_v21 = vmul.f32 %v1763_v19, %v1763_v19 }
 0x8ea   : > { %1765 = vadd.xlane.f32.xlu0 %v1764_v21 }
 0x977   : > { %v1766_v22 = vpop.xlane.xlu0 %1765 }
 0x978   : > { %v1767_v23 = vmul.f32 0.0078125, %v1766_v22 }
 0x97a   : > { %v1768_v24 = vadd.f32 1e-05, %v1767_v23 }
 0x97c   : > { %2350 = vrsqrt.f32 %v1768_v24 }
 0x986   : > { %v2351_v25 = vpop.eup %2350 }
 0x987   : > { %v1770_v27 = vmul.f32 %v2351_v25, %v1763_v19 }
 0x989   : > { %v1778_v28 = vmul.f32 %v1990_v26, %v1770_v27 }
 0x98b   : > { %v1786_v29 = vadd.f32 %v1991_v20, %v1778_v28 }
 0x98d   : > { %1787 = vst [vmem:[%s454_s28] sm:$0xff] %v1786_v29 }
 0x98e   : > { %2509 = shalt.err (!%p2506_p10)
}
 0x98f   : > { %s2510_s6 = scalar_lea.hbm %s3104_s10, 128  ;;  %s2514_s23 = scalar_lea.hbm %s3191_s18, 256 }
 0x990   : > { %p2511_p13 = scmp.ne.s32.totalorder %s3104_s10, %s2510_s6  ;;  %p2515_p9 = scmp.lt.u32.totalorder %s3104_s10, %s3191_s18 }
 0x991   : > { %p2516_p3 = scmp.lt.u32.totalorder %s2514_s23, %s2510_s6  ;;  %p2518_p12 = scmp.lt.u32.totalorder %s2510_s6, %s3104_s10 }
 0x992   : > { %p2512_p5 = pnand %p2511_p13, %p3192_p2 }
 0x993   : > { %p2517_p7 = por %p2516_p3, %p2515_p9 }
 0x994   : > { %p2513_p11 = pneg %p2512_p5 }
 0x995   : > { %p2519_p1 = por %p2518_p12, %p2517_p7 }
 0x997   : > { %p2520_p4 = pnand %p2519_p1, %p2513_p11 }
 0x999   : > { %2523 = shalt.err (!%p2520_p4)
}
 0x99a   : > { %2198 = dma.vmem_to_hbm [thread:$0]  (%p3192_p2), %s3106_s11, 128, %s3104_s10, %s1789_s25  }
 0x99b PF: > { %s3193_s9 = sld [smem:[#allocation17_spill]]  ;;  %s3194_s22 = sld [smem:[#allocation18_spill]] }
 0x99c   : > { %p3196_p8 = scmp.ge.s32.totalorder %s2574_s16, 2 }
 0x9a1   : > { %s1814_s28 = sand.u32 1, %s3193_s9   ;;  %p3195_p0 = scmp.ne.s32.totalorder %s3194_s22, 0 }
 0x9a2   : > { %s1815_s26 = scalar_lea.sflag [#allocation4], %s1814_s28 }
 0x9a3   : > { %p2218_p6 = pnand %p3196_p8, %p3195_p0 }
 0x9a5   : > { %2557 = dma.done.wait (!%p2218_p6), %s1815_s26, 128  }
 0x9a6   : > { %2559 = vsyncadd (!%p2218_p6), %s1815_s26, 4294967168  ;;  %p27_p10 = scmp.ge.s32.totalorder %s2761_s30, 4   ;;  %s3197_s13 = smov %s2566_s14 }
 0x9a7   : > { %s3198_s14 = smov %s2570_s15  ;;  %s3199_s15 = smov %s2789_s24 }
 0x9a8   : > { %s3200_s16 = smov %s2761_s30  ;;  %29 = sbr.rel (!%p27_p10) target bundleno = 14 (0xe), region = 130 }
 0x9af   :  { %1820 = vsyncpa [#allocation3], 1 }
 0x9b0   :  { %1822 = vsyncpa [#allocation3 + $0x1], 1 }
 0x9b1   :  { %1823 = vsyncpa [#allocation6], 1 }
 0x9b2   :  { %1825 = vsyncpa [#allocation6 + $0x1], 1 }
 0x9b3   :  { %1826 = vsyncpa [#allocation9], 1 }
 0x9b4   :  { %1827 = vsyncpa [#allocation4], 1 }
 0x9b5   :  { %1829 = vsyncpa [#allocation4 + $0x1], 1 }

// kernel: tpu_custom_call.1
= control target key start
LH: loop header
LB: loop body
LE: loop exit
PB: predicated region body
PF: predicated region fallthrough
CT: control target
= control target key end

     0   :  { %s3148_s0 = inlined_call_operand.hbm [shape: f32[8,256], index: 0, kind: input, shape index: {}]   ;;  %s3149_s1 = inlined_call_operand.hbm [shape: f32[8,256], index: 1, kind: input, shape index: {}]   ;;  %s3150_s2 = inlined_call_operand.hbm [shape: bf16[128,256], index: 2, kind: input, shape index: {}]   ;;  %s3151_s3 = inlined_call_operand.vmem [shape: f32[1,256], index: 3, kind: input, shape index: {}]   ;;  %s3152_s4 = inlined_call_operand.hbm [shape: bf16[128,128], index: 4, kind: input, shape index: {}]   ;;  %s3153_s5 = inlined_call_operand.vmem [shape: f32[1,128], index: 5, kind: input, shape index: {}]   ;;  %s3154_s6 = inlined_call_operand.hbm [shape: bf16[128,128], index: 6, kind: input, shape index: {}]   ;;  %s3155_s7 = inlined_call_operand.vmem [shape: f32[1,128], index: 7, kind: input, shape index: {}]   ;;  %s3156_s8 = inlined_call_operand.vmem [shape: f32[1,128], index: 8, kind: input, shape index: {}]   ;;  %s3157_s9 = inlined_call_operand.vmem [shape: f32[1,128], index: 9, kind: input, shape index: {}]   ;;  %s3158_s10 = inlined_call_operand.hbm [shape: f32[8,256], index: 10, kind: output, shape index: {}]  }
   0x1   :  { %3166 = sst [smem:[#allocation19_spill]] %s3150_s2 }
   0x2   :  { %3167 = sst [smem:[#allocation20_spill]] %s3152_s4 }
   0x3   :  { %3168 = sst [smem:[#allocation21_spill]] %s3154_s6 }
   0x4   :  { %3169 = sst [smem:[#allocation22_spill]] %s3157_s9 }
   0x5   :  { %3170 = sst [smem:[#allocation23_spill]] %s3158_s10 }
   0x6   :  { %15 = vsyncpa [#allocation3], 0 }
   0x7   :  { %17 = vsyncpa [#allocation3 + $0x1], 0 }
   0x8   :  { %18 = vsyncpa [#allocation6], 0 }
   0x9   :  { %20 = vsyncpa [#allocation6 + $0x1], 0 }
   0xa   :  { %21 = vsyncpa [#allocation9], 0 }
   0xb   :  { %22 = vsyncpa [#allocation4], 0 }
   0xc   :  { %24 = vsyncpa [#allocation4 + $0x1], 0  ;;  %s2651_s13 = smov 0   ;;  %s2653_s14 = smov 0  }
   0xd   :  { %s2655_s15 = smov 0   ;;  %s2657_s16 = smov 0  }
   0xe LB: > { %3171 = sst [smem:[#allocation17_spill]] %s2562_s13  ;;  %s2672_s17 = sadd.s32 4294967295, %s2574_s16   ;;  %s2574_s16 = sphi %s2657_s16, %s3200_s16   ;;  %s2570_s15 = sphi %s2655_s15, %s3199_s15   ;;  %s2566_s14 = sphi %s2653_s14, %s3198_s14   ;;  %s2562_s13 = sphi %s2651_s13, %s3197_s13  }
   0xf   : > { %s1923_s18 = sadd.s32 4294967294, %s2574_s16   ;;  %p50_p0 = scmp.ne.s32.totalorder %s2566_s14, %s2562_s13 }
  0x10   : > { %p3159_p1 = scmp.eq.s32.totalorder %s2672_s17, 0  ;;  %p274_p3 = scmp.eq.s32.totalorder %s1923_s18, 1 }
  0x11   : > { %p1924_p5 = scmp.ge.s32.totalorder %s2574_s16, 1  ;;  %p281_p7 = scmp.lt.s32.totalorder %s2574_s16, 3 }
  0x12   : > { %p2681_p4 = por %p3159_p1, %p50_p0  ;;  %p2686_p6 = por %p274_p3, %p50_p0 }
  0x13   : > { %p2691_p8 = pnand %p1924_p5, %p281_p7  ;;  %s2576_s22 = smov [#allocation7]  }
  0x14   : > { %s3172_s19 = scalar_select %p2681_p4, 1, 0 }
  0x15   : > { %s3173_s20 = scalar_select %p2686_p6, 1, 0 }
  0x16   : > { %s3175_s21 = scalar_select %p2691_p8, 1, 0 }
  0x17   : > { %3174 = sst [smem:[#allocation18_spill]] %s3173_s20  ;;  %s293_s23 = sshll.u32 %s2576_s22, 4  ;;  %s2695_s23 = int_to_ptr.vmem [resolvable:$true] %s293_s23 }
  0x18   : > { %p2200_p9 = pneg %p2691_p8  ;;  %s2577_s25 = smov [#allocation8]  }
  0x19   : > { %s309_s26 = sshll.u32 %s2577_s25, 4  ;;  %s3177_s2 = sld [smem:[#allocation19_spill]]  ;;  %s2706_s26 = int_to_ptr.vmem [resolvable:$true] %s309_s26 }
  0x1a   : > { %p2702_p11 = pnand %p2200_p9, %p3159_p1 }
  0x1c   : > { %p2716_p13 = pneg %p2702_p11 }
  0x1f   : > { %s2352_s29 = scalar_lea.hbm %s3177_s2, 2048 }
  0x20   : > { %p2353_p12 = scmp.ne.s32.totalorder %s3177_s2, %s2352_s29  ;;  %p2359_p5 = scmp.lt.u32.totalorder %s2352_s29, %s3177_s2 }
  0x22   : > { %p2355_p0 = pnand %p2716_p13, %p2353_p12 }
  0x24   : > { %p2356_p3 = pneg %p2355_p0 }
  0x26   : > { %p2361_p7 = pnand %p2359_p5, %p2356_p3 }
  0x28   : > { %2364 = shalt.err (!%p2361_p7)
}
  0x29   : > { %s2365_s25 = scalar_lea.vmem %s2695_s23, 2048  ;;  %p2373_p2 = scmp.lt.s32.totalorder %s2695_s23, %s2695_s23 }
  0x2a   : > { %p2366_p9 = scmp.ne.s32.totalorder %s2695_s23, %s2365_s25  ;;  %p2374_p6 = scmp.lt.s32.totalorder %s2365_s25, %s2365_s25 }
  0x2c   : > { %p2368_p10 = pnand %p2366_p9, %p2716_p13  ;;  %p2375_p12 = por %p2374_p6, %p2373_p2 }
  0x2e   : > { %p2369_p1 = pneg %p2368_p10 }
  0x30   : > { %p2376_p0 = pnand %p2375_p12, %p2369_p1 }
  0x32   : > { %2379 = shalt.err (!%p2376_p0)
}
  0x33   : > { %s2578_s27 = smov 128   ;;  %s2579_s28 = smov 8  }
  0x34   : > { %2203 = dma.hbm_to_vmem [thread:$0]  (!%p2702_p11), %s3177_s2, 2048, %s2695_s23, [#allocation6], %s2578_s27, %s2578_s27, %s2579_s28  }
  0x35   : > { %s3179_s4 = sld [smem:[#allocation20_spill]] }
  0x3b   : > { %s2380_s22 = scalar_lea.hbm %s3179_s4, 1024 }
  0x3c   : > { %p2381_p2 = scmp.ne.s32.totalorder %s3179_s4, %s2380_s22  ;;  %p2387_p10 = scmp.lt.u32.totalorder %s2380_s22, %s3179_s4 }
  0x3e   : > { %p2383_p1 = pnand %p2381_p2, %p2716_p13 }
  0x40   : > { %p2384_p6 = pneg %p2383_p1 }
  0x42   : > { %p2389_p3 = pnand %p2387_p10, %p2384_p6 }
  0x44   : > { %2392 = shalt.err (!%p2389_p3)
}
  0x45   : > { %s2393_s23 = scalar_lea.vmem %s2706_s26, 1024  ;;  %p2401_p12 = scmp.lt.s32.totalorder %s2706_s26, %s2706_s26 }
  0x46   : > { %p2394_p5 = scmp.ne.s32.totalorder %s2706_s26, %s2393_s23  ;;  %p2402_p0 = scmp.lt.s32.totalorder %s2393_s23, %s2393_s23 }
  0x48   : > { %p2396_p7 = pnand %p2394_p5, %p2716_p13  ;;  %p2403_p2 = por %p2402_p0, %p2401_p12 }
  0x4a   : > { %p2397_p9 = pneg %p2396_p7 }
  0x4c   : > { %p2404_p1 = pnand %p2403_p2, %p2397_p9 }
  0x4e   : > { %2407 = shalt.err (!%p2404_p1)
}
  0x4f   : > { %s2580_s13 = smov 64   ;;  %s2581_s10 = smov 4  }
  0x50   : > { %2206 = dma.hbm_to_vmem [thread:$0]  (!%p2702_p11), %s3179_s4, 1024, %s2706_s26, [#allocation9], %s2580_s13, %s2580_s13, %s2581_s10  }
  0x51   : > { %s2582_s28 = smov [#allocation10]   ;;  %s2761_s30 = sadd.s32 1, %s2574_s16  }
  0x52   : > { %s325_s29 = sshll.u32 %s2582_s28, 4  ;;  %s3180_s6 = sld [smem:[#allocation21_spill]]  ;;  %s326_s29 = int_to_ptr.vmem [resolvable:$true] %s325_s29 }
  0x58   : > { %s2408_s22 = scalar_lea.hbm %s3180_s6, 1024 }
  0x59   : > { %p2409_p6 = scmp.ne.s32.totalorder %s3180_s6, %s2408_s22  ;;  %p2415_p5 = scmp.lt.u32.totalorder %s2408_s22, %s3180_s6 }
  0x5b   : > { %p2411_p10 = pnand %p2409_p6, %p2716_p13 }
  0x5d   : > { %p2412_p3 = pneg %p2411_p10 }
  0x5f   : > { %p2417_p7 = pnand %p2415_p5, %p2412_p3 }
  0x61   : > { %2420 = shalt.err (!%p2417_p7)
}
  0x62   : > { %s2421_s26 = scalar_lea.vmem %s326_s29, 1024  ;;  %p2429_p2 = scmp.lt.s32.totalorder %s326_s29, %s326_s29 }
  0x63   : > { %p2422_p9 = scmp.ne.s32.totalorder %s326_s29, %s2421_s26  ;;  %p2430_p1 = scmp.lt.s32.totalorder %s2421_s26, %s2421_s26 }
  0x65   : > { %p2424_p12 = pnand %p2422_p9, %p2716_p13  ;;  %p2431_p4 = por %p2430_p1, %p2429_p2 }
  0x67   : > { %p2425_p0 = pneg %p2424_p12 }
  0x69   : > { %p2432_p8 = pnand %p2431_p4, %p2425_p0 }
  0x6b   : > { %2435 = shalt.err (!%p2432_p8)
}
  0x6c   : > { %2209 = dma.hbm_to_vmem [thread:$0]  (!%p2702_p11), %s3180_s6, 1024, %s326_s29, [#allocation9], %s2580_s13, %s2580_s13, %s2581_s10  }
  0x6d   : > { %s34_s2 = ssub.s32 %s2574_s16, %s2761_s30  ;;  %s37_s9 = sadd.s32 1, %s2570_s15 }
  0x6e   : > { %p35_p4 = scmp.eq.s32.totalorder %s34_s2, 0  ;;  %p44_p8 = scmp.ne.s32.totalorder %s2570_s15, %s2566_s14 }
  0x6f   : > { %p45_p13 = scmp.eq.s32.totalorder %s2574_s16, 0  ;;  %p2224_p6 = scmp.lt.s32.totalorder %s2574_s16, 2 }
  0x70   : > { %s2789_s24 = scalar_select %p35_p4, %s2570_s15, %s37_s9  }
  0x71   : > { %p46_p10 = por %p45_p13, %p44_p8  ;;  %p3181_p3 = scmp.eq.s32.totalorder %s2672_s17, 1 }
  0x72   : > { %s348_s28 = sand.u32 1, %s2570_s15   ;;  %s1930_s11 = sshll.u32 %s2574_s16, 7 }
  0x73   : > { %p2793_p5 = por %p3181_p3, %p44_p8  ;;  %s2799_s18 = sshll.u32 %s348_s28, 3 }
  0x74   : > { %s2804_s10 = scalar_lea.hbm %s3148_s0, %s1930_s11  ;;  %s352_s29 = scalar_lea.vmem [#allocation2], %s2799_s18 }
  0x75   : > { %s3182_s12 = scalar_select %p2793_p5, 1, 0 }
  0x76   : > { %s359_s25 = sshll.u32 %s352_s29, 4  ;;  %p2807_p11 = pnand %p2224_p6, %p46_p10  ;;  %s2811_s25 = int_to_ptr.vmem [resolvable:$true] %s359_s25 }
  0x77   : > { %s2816_s27 = scalar_lea.hbm %s3149_s1, %s1930_s11  ;;  %s349_s2 = scalar_lea.sflag [#allocation3], %s348_s28 }
  0x78   : > { %s2436_s9 = scalar_lea.hbm %s2804_s10, 128  ;;  %p2438_p9 = pneg %p2807_p11 }
  0x79   : > { %p2437_p7 = scmp.ne.s32.totalorder %s2804_s10, %s2436_s9  ;;  %s2441_s29 = scalar_lea.hbm %s3148_s0, 256 }
  0x7a   : > { %p2442_p2 = scmp.lt.u32.totalorder %s2804_s10, %s3148_s0  ;;  %p2443_p1 = scmp.lt.u32.totalorder %s2441_s29, %s2436_s9 }
  0x7b   : > { %p2439_p12 = pnand %p2438_p9, %p2437_p7  ;;  %p2445_p8 = scmp.lt.u32.totalorder %s2436_s9, %s2804_s10 }
  0x7c   : > { %p2444_p4 = por %p2443_p1, %p2442_p2 }
  0x7d   : > { %p2440_p0 = pneg %p2439_p12 }
  0x7e   : > { %p2446_p13 = por %p2445_p8, %p2444_p4 }
  0x80   : > { %p2447_p6 = pnand %p2446_p13, %p2440_p0 }
  0x82   : > { %2450 = shalt.err (!%p2447_p6)
}
  0x83   : > { %s2451_s28 = scalar_lea.vmem %s2811_s25, 128  ;;  %s2583_s11 = smov [#allocation2]  }
  0x84   : > { %p2452_p10 = scmp.ne.s32.totalorder %s2811_s25, %s2451_s28  ;;  %s2456_s26 = sshll.u32 %s2583_s11, 4  ;;  %s2457_s26 = int_to_ptr.vmem [resolvable:$false] %s2456_s26 }
  0x85   : > { %s2458_s4 = scalar_lea.vmem %s2457_s26, 256  ;;  %p2459_p12 = scmp.lt.s32.totalorder %s2811_s25, %s2457_s26 }
  0x86   : > { %p2454_p3 = pnand %p2452_p10, %p2438_p9  ;;  %p2460_p2 = scmp.lt.s32.totalorder %s2458_s4, %s2451_s28 }
  0x88   : > { %p2455_p7 = pneg %p2454_p3  ;;  %p2461_p1 = por %p2460_p2, %p2459_p12 }
  0x8a   : > { %p2462_p4 = pnand %p2461_p1, %p2455_p7 }
  0x8c   : > { %2465 = shalt.err (!%p2462_p4)
}
  0x8d   : > { %2213 = dma.hbm_to_vmem [thread:$0]  (!%p2807_p11), %s2804_s10, 128, %s2811_s25, %s349_s2  }
  0x8e   : > { %s366_s6 = sand.u32 1, %s2574_s16   ;;  %s370_s20 = scalar_lea.vmem [#allocation5], %s2799_s18 }
  0x8f   : > { %s377_s9 = sshll.u32 %s370_s20, 4  ;;  %s367_s22 = scalar_lea.sflag [#allocation6], %s366_s6  ;;  %s378_s9 = int_to_ptr.vmem [resolvable:$true] %s377_s9 }
  0x90   : > { %s2466_s13 = scalar_lea.hbm %s2816_s27, 128  ;;  %s2471_s11 = scalar_lea.hbm %s3149_s1, 256 }
  0x91   : > { %p2467_p0 = scmp.ne.s32.totalorder %s2816_s27, %s2466_s13  ;;  %p2472_p6 = scmp.lt.u32.totalorder %s2816_s27, %s3149_s1 }
  0x92   : > { %p2473_p10 = scmp.lt.u32.totalorder %s2471_s11, %s2466_s13  ;;  %p2475_p7 = scmp.lt.u32.totalorder %s2466_s13, %s2816_s27 }
  0x93   : > { %p2469_p8 = pnand %p2467_p0, %p2438_p9 }
  0x94   : > { %p2474_p3 = por %p2473_p10, %p2472_p6 }
  0x95   : > { %p2470_p13 = pneg %p2469_p8 }
  0x96   : > { %p2476_p12 = por %p2475_p7, %p2474_p3 }
  0x98   : > { %p2477_p2 = pnand %p2476_p12, %p2470_p13 }
  0x9a   : > { %2480 = shalt.err (!%p2477_p2)
}
  0x9b   : > { %s2481_s18 = scalar_lea.vmem %s378_s9, 128  ;;  %s2584_s10 = smov [#allocation5]  }
  0x9c   : > { %p2482_p1 = scmp.ne.s32.totalorder %s378_s9, %s2481_s18  ;;  %s2486_s25 = sshll.u32 %s2584_s10, 4  ;;  %s2487_s25 = int_to_ptr.vmem [resolvable:$false] %s2486_s25 }
  0x9d   : > { %s2488_s2 = scalar_lea.vmem %s2487_s25, 256  ;;  %p2489_p8 = scmp.lt.s32.totalorder %s378_s9, %s2487_s25 }
  0x9e   : > { %p2484_p4 = pnand %p2482_p1, %p2438_p9  ;;  %p2490_p5 = scmp.lt.s32.totalorder %s2488_s2, %s2481_s18 }
  0xa0   : > { %p2485_p0 = pneg %p2484_p4  ;;  %p2491_p6 = por %p2490_p5, %p2489_p8 }
  0xa2   : > { %p2492_p10 = pnand %p2491_p6, %p2485_p0 }
  0xa4   : > { %2495 = shalt.err (!%p2492_p10)
}
  0xa5   : > { %2216 = dma.hbm_to_vmem [thread:$0]  (!%p2807_p11), %s2816_s27, 128, %s378_s9, %s367_s22  }
  0xa6   : > { %p3184_p13 = scmp.ne.s32.totalorder %s3175_s21, 0 }
  0xa7   : > { %s2867_s6 = sand.u32 (!%p3184_p13), 1, %s2566_s14   ;;  %p3185_p5 = scmp.ne.s32.totalorder (!%p3184_p13), %s3172_s19, 0 }
  0xa8   : > { %386 = sbr.rel (%p3184_p13) target bundleno = 2459 (0x99b), region = 60  ;;  %s2870_s20 = sshll.u32 (!%p3184_p13), %s2867_s6, 3 }
  0xa9   : > { %s389_s13 = scalar_lea.sflag (!%p3184_p13), [#allocation3], %s2867_s6  ;;  %s392_s29 = scalar_lea.vmem (!%p3184_p13), [#allocation2], %s2870_s20 }
  0xaf   : > { %2541 = dma.done.wait (%p3185_p5), %s389_s13, 128  }
  0xb0   : > { %2543 = vsyncadd (%p3185_p5), %s389_s13, 4294967168  ;;  %s397_s21 = sand.u32 1, %s2672_s17   ;;  %s401_s27 = scalar_lea.vmem [#allocation5], %s2870_s20 }
  0xb1   : > { %s398_s23 = scalar_lea.sflag [#allocation6], %s397_s21 }
  0xb2   : > { %2545 = dma.done.wait (%p3185_p5), %s398_s23, 128  }
  0xb3   : > { %2547 = vsyncadd (%p3185_p5), %s398_s23, 4294967168  ;;  %p3186_p11 = scmp.eq.s32.totalorder %s2672_s17, 0 }
  0xb5   : > { %2549 = dma.done.wait (%p3186_p11), [#allocation6], 2048   ;;  %p3187_p9 = pmov %p3186_p11 }
  0xb7   : > { %2551 = vsyncadd (%p3187_p9), [#allocation6], 4294965248  ;;  %p3188_p3 = pmov %p3187_p9 }
  0xb9   : > { %2553 = dma.done.wait (%p3188_p3), [#allocation9], 2048   ;;  %p3189_p7 = pmov %p3188_p3 }
  0xba   : > { %v2585_v0 = vmov 0   ;;  %v2586_v1 = vmov 0.0   ;;  %v2278_v2 = vld [vmem:[#allocation7 + $0x4] ss:$8 sps:$4 sm:$0xff]   ;;  %v2280_v3 = vld [vmem:[#allocation7] ss:$8 sps:$4 sm:$0xff]   ;;  %v478_v31 = vlaneseq }
  0xbb   : > { %2555 = vsyncadd (%p3189_p7), [#allocation9], 4294965248  ;;  %600 = vmatprep.mubr.bf16.mxu0 %v2585_v0  ;;  %2046 = vmatprep.subr.bf16.mxu1 %v2586_v1  ;;  %v2281_v4 = vld [vmem:[#allocation7 + $0x14] ss:$8 sps:$4 sm:$0xff]   ;;  %v2283_v5 = vld [vmem:[#allocation7 + $0x10] ss:$8 sps:$4 sm:$0xff]  }
  0xbc   : > { %568 = vmatprep.subr.bf16.mxu0 %v2278_v2  ;;  %v2284_v6 = vld [vmem:[#allocation7 + $0x24] ss:$8 sps:$4 sm:$0xff]   ;;  %v2286_v7 = vld [vmem:[#allocation7 + $0x20] ss:$8 sps:$4 sm:$0xff]   ;;  %v2287_v8 = vld [vmem:[#allocation7 + $0x34] ss:$8 sps:$4 sm:$0xff]  }
  0xbd   : > { %569 = vmatpush1.bf16.msra.mxu0 %v2280_v3  ;;  %v2289_v9 = vld [vmem:[#allocation7 + $0x30] ss:$8 sps:$4 sm:$0xff]   ;;  %v2290_v10 = vld [vmem:[#allocation7 + $0x44] ss:$8 sps:$4 sm:$0xff]   ;;  %v2292_v13 = vld [vmem:[#allocation7 + $0x40] ss:$8 sps:$4 sm:$0xff]  }
  0xbe   : > { %570 = vmatprep.subr.bf16.mxu0 %v2281_v4  ;;  %v2302_v11 = vld [vmem:[#allocation8] sm:$0xff]   ;;  %v2303_v12 = vld [vmem:[#allocation8 + $0x8] sm:$0xff]   ;;  %v2293_v14 = vld [vmem:[#allocation7 + $0x54] ss:$8 sps:$4 sm:$0xff]   ;;  %vm2587_vm0 = vmmov 0   ;;  %v479_v32 = vshrl.u32 %v478_v31, 7 }
  0xbf   : > { %2047 = vmatpush3.bf16.msra.mxu1 %v2302_v11  ;;  %v2304_v15 = vld [vmem:[#allocation8 + $0x10] sm:$0xff]   ;;  %v2296_v17 = vld [vmem:[#allocation7 + $0x64] ss:$8 sps:$4 sm:$0xff]   ;;  %v2305_v18 = vld [vmem:[#allocation8 + $0x18] sm:$0xff]   ;;  %2062 = vmatprep.mubr.msk.bf16.mxu1 %vm2587_vm0, %v2586_v1  ;;  %vm725_vm1 = vcmask 130048   ;;  %s2588_s22 = smov 112  }
  0xc0   : > { %2048 = vmatprep.subr.bf16.mxu1 %v2586_v1  ;;  %v2295_v16 = vld [vmem:[#allocation7 + $0x50] ss:$8 sps:$4 sm:$0xff]   ;;  %v2298_v19 = vld [vmem:[#allocation7 + $0x60] ss:$8 sps:$4 sm:$0xff]   ;;  %v2299_v22 = vld [vmem:[#allocation7 + $0x74] ss:$8 sps:$4 sm:$0xff]  }
  0xc1   : > { %571 = vmatpush1.bf16.msra.mxu0 %v2283_v5  ;;  %v2897_v20 = vld [vmem:[%s392_s29] sm:$0xff]  ;;  %v457_v21 = vld [vmem:[%s401_s27] sm:$0xff]  ;;  %v480_v33 = vsub.s32 0, %v479_v32  ;;  %v484_v35 = vsub.s32 1, %v479_v32  ;;  %s2589_s28 = smov 96   ;;  %s2590_s11 = smov 80  }
  0xc2   : > { %572 = vmatprep.subr.bf16.mxu0 %v2284_v6  ;;  %v458_v23 = vadd.f32 %v457_v21, %v2897_v20  ;;  %v2306_v24 = vld [vmem:[#allocation8 + $0x20] sm:$0xff]   ;;  %v2301_v25 = vld [vmem:[#allocation7 + $0x70] ss:$8 sps:$4 sm:$0xff]   ;;  %v2307_v27 = vld [vmem:[#allocation8 + $0x28] sm:$0xff]   ;;  %v609_v30 = vpack.c.bf16 %v2897_v20, %v2897_v20  ;;  %s2591_s26 = smov 64   ;;  %s2592_s4 = smov 48  }
  0xc3   : > { %2049 = vmatpush3.bf16.msra.mxu1 %v2303_v12  ;;  %v2308_v28 = vld [vmem:[#allocation8 + $0x30] sm:$0xff]   ;;  %v2309_v29 = vld [vmem:[#allocation8 + $0x38] sm:$0xff]   ;;  %v476_v34 = vld [vmem:[%s3151_s3] sm:$0x3]  ;;  %s2593_s18 = smov 32   ;;  %s2594_s10 = smov 16  }
  0xc4   : > { %2050 = vmatprep.subr.bf16.mxu1 %v2586_v1  ;;  %v459_v26 = vpack.c.bf16 %v458_v23, %v458_v23  ;;  %v481_v36 = vrot.slane %v476_v34, %v480_v33  ;;  %v485_v37 = vrot.slane %v476_v34, %v484_v35  ;;  %v1956_v48 = vld [vmem:[%s3153_s5] ss:$0 sm:$0xff]  ;;  %vm788_vm2 = vcmask 1043456   ;;  %s3190_s9 = sld [smem:[#allocation22_spill]]  ;;  %s1789_s25 = scalar_lea.sflag [#allocation4], %s2867_s6 }
  0xc5   : > { %573 = vmatpush1.bf16.msra.mxu0 %v2286_v7  ;;  %vm772_vm3 = vcmask 64512   ;;  %vm1634_vm4 = vcmask 261120   ;;  %vm1636_vm5 = vcmask 392192   ;;  %vm1638_vm6 = vcmask 523264   ;;  %p3192_p2 = scmp.ne.s32.totalorder %s3182_s12, 0 }
  0xc6   : > { %574 = vmatprep.subr.bf16.mxu0 %v2287_v8  ;;  %vm1640_vm7 = vcmask 654336   ;;  %vm1642_vm8 = vcmask 785408   ;;  %vm1644_vm9 = vcmask 916480  }
  0xc7   : > { %2051 = vmatpush3.bf16.msra.mxu1 %v2304_v15 }
  0xc8   : > { %2052 = vmatprep.subr.bf16.mxu1 %v2586_v1 }
  0xc9   : > { %575 = vmatpush1.bf16.msra.mxu0 %v2289_v9 }
  0xca   : > { %576 = vmatprep.subr.bf16.mxu0 %v2290_v10 }
  0xcb   : > { %2053 = vmatpush3.bf16.msra.mxu1 %v2305_v18 }
  0xcc   : > { %2054 = vmatprep.subr.bf16.mxu1 %v2586_v1 }
  0xcd   : > { %577 = vmatpush1.bf16.msra.mxu0 %v2292_v13 }
  0xce   : > { %578 = vmatprep.subr.bf16.mxu0 %v2293_v14 }
  0xcf   : > { %2055 = vmatpush3.bf16.msra.mxu1 %v2306_v24 }
  0xd0   : > { %2056 = vmatprep.subr.bf16.mxu1 %v2586_v1 }
  0xd1   : > { %579 = vmatpush1.bf16.msra.mxu0 %v2295_v16 }
  0xd2   : > { %580 = vmatprep.subr.bf16.mxu0 %v2296_v17 }
  0xd3   : > { %2057 = vmatpush3.bf16.msra.mxu1 %v2307_v27 }
  0xd4   : > { %2058 = vmatprep.subr.bf16.mxu1 %v2586_v1 }
  0xd5   : > { %581 = vmatpush1.bf16.msra.mxu0 %v2298_v19 }
  0xd6   : > { %582 = vmatprep.subr.bf16.mxu0 %v2299_v22 }
  0xd7   : > { %2059 = vmatpush3.bf16.msra.mxu1 %v2308_v28 }
  0xd8   : > { %2060 = vmatprep.subr.bf16.mxu1 %v2586_v1 }
  0xd9   : > { %583 = vmatpush1.bf16.msra.mxu0 %v2301_v25 }
  0xda   : > { %2090 = vmatprep.subr.bf16.mxu0 %v2586_v1 }
  0xdb   : > { %2061 = vmatpush3.bf16.msra.mxu1 %v2309_v29 }
  0xdc   : > { %601 = vmatmul.mubr.bf16.vlgmr.msra.gmra.mrb[0].mxu0 %v459_v26  ;;  %2066 = vmatprep.subr.bf16.mxu1 %v2586_v1 }
  0xdd   : > { %2092 = vmatprep.mubr.msk.bf16.mxu0 %vm2587_vm0, %v2586_v1 }
  0xde   : > { %2063 = vmatmul.mubr.bf16.vlgmr.msra.gmra.mrb[0].mxu1 %v609_v30 }
  0xdf   : > { %2068 = vmatprep.mubr.msk.bf16.mxu1 %vm2587_vm0, %v2586_v1 }
 0x1af   : > { %v602_v38 = vpop.f32.mrb[0].mxu0 }
 0x1b0   : > { %v603_v39 = vadd.f32 %v602_v38, %v481_v36  ;;  %v604_v40 = vpop.f32.mrb[1].mxu0 }
 0x1b1   : > { %v605_v41 = vadd.f32 %v604_v40, %v485_v37  ;;  %v606_v42 = vpop.f32.mrb[2].mxu0  ;;  %v715_v49 = vpop.f32.mrb[0].mxu1 }
 0x1b2   : > { %v607_v43 = vpop.f32.mrb[3].mxu0  ;;  %v721_v44 = vmul.f32 0.25, %v603_v39  ;;  %v716_v50 = vadd.f32 %v1956_v48, %v715_v49  ;;  %v2064_v51 = vpop.f32.mrb[1].mxu1 }
 0x1b3   : > { %v723_v45 = vpack.c.bf16 %v605_v41, %v605_v41  ;;  %v718_v52 = vpop.f32.mrb[2].mxu1 }
 0x1b4   : > { %v722_v47 = vpack.c.bf16 %v721_v44, %v721_v44  ;;  %v2938_v53 = vpack.c.bf16 %v716_v50, %v716_v50  ;;  %v2065_v54 = vpop.f32.mrb[3].mxu1 }
 0x1b5   : > { %836 = vrot.lane.b32.xlu1 %v723_v45, %s2588_s22  ;;  %v730_v46 = vsel %vm725_vm1, %v723_v45, 0 }
 0x1b6   : > { %2067 = vmatpush3.bf16.xpose.msra.mxu1 %v730_v46  ;;  %v790_v55 = vsel %vm788_vm2, %v2938_v53, 0 }
 0x1b7   : > { %2072 = vmatprep.subr.bf16.mxu1 %v2586_v1 }
 0x1b9   : > { %833 = vrot.lane.b32.xlu1 %v722_v47, %s2588_s22 }
 0x1bd   : > { %945 = vrot.lane.b32.xlu1 %v722_v47, %s2589_s28  ;;  %2069 = vmatmul.mubr.msk.bf16.vlgmr.msra.gmra.mrb[4].mxu1 %vm725_vm1, %v722_v47 }
 0x1be   : > { %2074 = vmatprep.mubr.msk.bf16.mxu1 %vm2587_vm0, %v2586_v1  ;;  %2073 = vmatpush3.bf16.msra.mxu1 %v790_v55 }
 0x1bf   : > { %2078 = vmatprep.subr.bf16.mxu1 %v2586_v1 }
 0x1c1   : > { %1057 = vrot.lane.b32.xlu1 %v723_v45, %s2590_s11 }
 0x1c5   : > { %1055 = vrot.lane.b32.xlu1 %v722_v47, %s2590_s11 }
 0x1c9   : > { %1167 = vrot.lane.b32.xlu1 %v723_v45, %s2591_s26 }
 0x1cd   : > { %1165 = vrot.lane.b32.xlu1 %v722_v47, %s2591_s26 }
 0x1d1   : > { %1277 = vrot.lane.b32.xlu1 %v723_v45, %s2592_s4 }
 0x1d5   : > { %1387 = vrot.lane.b32.xlu1 %v723_v45, %s2593_s18 }
 0x1d9   : > { %1497 = vrot.lane.b32.xlu1 %v723_v45, %s2594_s10 }
 0x227   : > { %v837_v3 = vpop.permute.xlu1 %836 }
 0x228   : > { %v842_v16 = vsel %vm725_vm1, %v837_v3, 0 }
 0x22b   : > { %v834_v4 = vpop.permute.xlu1 %833 }
 0x22f   : > { %v946_v5 = vpop.permute.xlu1 %945 }
 0x233   : > { %v1058_v7 = vpop.permute.xlu1 %1057 }
 0x234   : > { %v1063_v13 = vsel %vm725_vm1, %v1058_v7, 0 }
 0x237   : > { %v1056_v10 = vpop.permute.xlu1 %1055 }
 0x23b   : > { %v1168_v14 = vpop.permute.xlu1 %1167 }
 0x23c   : > { %v1173_v18 = vsel %vm725_vm1, %v1168_v14, 0 }
 0x23f   : > { %v1166_v17 = vpop.permute.xlu1 %1165 }
 0x243   : > { %v1278_v19 = vpop.permute.xlu1 %1277 }
 0x244   : > { %v1283_v21 = vsel %vm725_vm1, %v1278_v19, 0 }
 0x247   : > { %v1388_v22 = vpop.permute.xlu1 %1387 }
 0x248   : > { %v1393_v24 = vsel %vm725_vm1, %v1388_v22, 0 }
 0x24b   : > { %v1498_v25 = vpop.permute.xlu1 %1497 }
 0x24c   : > { %v1503_v27 = vsel %vm725_vm1, %v1498_v25, 0 }
 0x290   : > { %v766_v56 = vpop.f32.mrb[4].mxu1 }
 0x291   : > { %v2070_v57 = vpop.f32.mrb[5].mxu1  ;;  %v773_v58 = vsel %vm772_vm3, %v766_v56, -inf }
 0x292   : > { %774 = vmax.xlane.f32.xlu0 %v773_v58  ;;  %v769_v59 = vpop.f32.mrb[6].mxu1 }
 0x293   : > { %v2071_v60 = vpop.f32.mrb[7].mxu1 }
 0x31f   : > { %v775_v61 = vpop.xlane.xlu0 %774 }
 0x320   : > { %v776_v62 = vsub.f32 %v766_v56, %v775_v61 }
 0x322   : > { %v777_v63 = vmul.f32 1.442695, %v776_v62 }
 0x324   : > { %2318 = vpow2.f32 %v777_v63 }
 0x32e   : > { %v2319_v0 = vpop.eup %2318 }
 0x32f   : > { %v779_v2 = vsel %vm772_vm3, %v2319_v0, 0.0 }
 0x330   : > { %780 = vadd.xlane.f32.xlu0 %v779_v2 }
 0x346   : > { %947 = vrot.lane.b32.xlu0 %v723_v45, %s2589_s28 }
 0x34a   : > { %1275 = vrot.lane.b32.xlu0 %v722_v47, %s2592_s4 }
 0x34e   : > { %1385 = vrot.lane.b32.xlu0 %v722_v47, %s2593_s18 }
 0x352   : > { %1495 = vrot.lane.b32.xlu0 %v722_v47, %s2594_s10 }
 0x3bd   : > { %v781_v6 = vpop.xlane.xlu0 %780 }
 0x3be   : > { %2320 = vrcp.f32 %v781_v6 }
 0x3c1   : > { %v948_v8 = vpop.permute.xlu0 %947 }
 0x3c2   : > { %v953_v9 = vsel %vm725_vm1, %v948_v8, 0 }
 0x3c3   : > { %2091 = vmatpush3.bf16.xpose.msra.mxu0 %v953_v9 }
 0x3c4   : > { %2102 = vmatprep.subr.bf16.mxu0 %v2586_v1 }
 0x3c5   : > { %v1276_v23 = vpop.permute.xlu0 %1275 }
 0x3c8   : > { %v2321_v11 = vpop.eup %2320 }
 0x3c9   : > { %v783_v12 = vmul.f32 %v2321_v11, %v2319_v0  ;;  %v1386_v26 = vpop.permute.xlu0 %1385 }
 0x3ca   : > { %2093 = vmatmul.mubr.msk.bf16.vlgmr.msra.gmra.mrb[4].mxu0 %vm725_vm1, %v946_v5 }
 0x3cb   : > { %2103 = vmatpush3.bf16.xpose.msra.mxu0 %v1063_v13  ;;  %v784_v15 = vpack.c.bf16 %v783_v12, %v783_v12  ;;  %2104 = vmatprep.mubr.msk.bf16.mxu0 %vm2587_vm0, %v2586_v1 }
 0x3cc   : > { %2114 = vmatprep.subr.bf16.mxu0 %v2586_v1 }
 0x3cd   : > { %2075 = vmatmul.mubr.msk.bf16.vlgmr.msra.gmra.mrb[8].mxu1 %vm772_vm3, %v784_v15  ;;  %v1496_v28 = vpop.permute.xlu0 %1495 }
 0x3ce   : > { %2079 = vmatpush3.bf16.xpose.msra.mxu1 %v842_v16  ;;  %2080 = vmatprep.mubr.msk.bf16.mxu1 %vm2587_vm0, %v2586_v1 }
 0x3cf   : > { %2084 = vmatprep.subr.bf16.mxu1 %v2586_v1 }
 0x3d2   : > { %2105 = vmatmul.mubr.msk.bf16.vlgmr.msra.gmra.mrb[8].mxu0 %vm725_vm1, %v1056_v10 }
 0x3d3   : > { %2115 = vmatpush3.bf16.xpose.msra.mxu0 %v1173_v18  ;;  %2116 = vmatprep.mubr.msk.bf16.mxu0 %vm2587_vm0, %v2586_v1 }
 0x3d4   : > { %2126 = vmatprep.subr.bf16.mxu0 %v2586_v1 }
 0x3d5   : > { %2081 = vmatmul.mubr.msk.bf16.vlgmr.msra.gmra.mrb[12].mxu1 %vm725_vm1, %v834_v4 }
 0x3d6   : > { %2086 = vmatprep.mubr.msk.bf16.mxu1 %vm2587_vm0, %v2586_v1 }
 0x3da   : > { %2117 = vmatmul.mubr.msk.bf16.vlgmr.msra.gmra.mrb[12].mxu0 %vm725_vm1, %v1166_v17 }
 0x3db   : > { %2127 = vmatpush3.bf16.xpose.msra.mxu0 %v1283_v21  ;;  %2128 = vmatprep.mubr.msk.bf16.mxu0 %vm2587_vm0, %v2586_v1 }
 0x3dc   : > { %2138 = vmatprep.subr.bf16.mxu0 %v2586_v1 }
 0x3e2   : > { %2129 = vmatmul.mubr.msk.bf16.vlgmr.msra.gmra.mrb[16].mxu0 %vm725_vm1, %v1276_v23 }
 0x3e3   : > { %2139 = vmatpush3.bf16.xpose.msra.mxu0 %v1393_v24  ;;  %2140 = vmatprep.mubr.msk.bf16.mxu0 %vm2587_vm0, %v2586_v1 }
 0x3e4   : > { %2150 = vmatprep.subr.bf16.mxu0 %v2586_v1 }
 0x3ea   : > { %2141 = vmatmul.mubr.msk.bf16.vlgmr.msra.gmra.mrb[20].mxu0 %vm725_vm1, %v1386_v26 }
 0x3eb   : > { %2151 = vmatpush3.bf16.xpose.msra.mxu0 %v1503_v27  ;;  %2152 = vmatprep.mubr.msk.bf16.mxu0 %vm2587_vm0, %v2586_v1 }
 0x3ec   : > { %2162 = vmatprep.subr.bf16.mxu0 %v2586_v1 }
 0x3f2   : > { %2153 = vmatmul.mubr.msk.bf16.vlgmr.msra.gmra.mrb[24].mxu0 %vm725_vm1, %v1496_v28 }
 0x3f3   : > { %2178 = vmatprep.mubr.msk.bf16.mxu0 %vm2587_vm0, %v2586_v1 }
 0x49d   : > { %v989_v29 = vpop.f32.mrb[4].mxu0 }
 0x49e   : > { %v2094_v30 = vpop.f32.mrb[5].mxu0  ;;  %v995_v31 = vsel %vm772_vm3, %v989_v29, -inf }
 0x49f   : > { %996 = vmax.xlane.f32.xlu0 %v995_v31  ;;  %v992_v32 = vpop.f32.mrb[6].mxu0 }
 0x4a0   : > { %v2988_v33 = vpop.f32.mrb[8].mxu1  ;;  %v2095_v34 = vpop.f32.mrb[7].mxu0 }
 0x4a1   : > { %v2076_v35 = vpop.f32.mrb[9].mxu1 }
 0x4a2   : > { %v829_v36 = vpop.f32.mrb[10].mxu1 }
 0x4a3   : > { %v2077_v37 = vpop.f32.mrb[11].mxu1 }
 0x4a5   : > { %v1099_v38 = vpop.f32.mrb[8].mxu0 }
 0x4a6   : > { %v2106_v39 = vpop.f32.mrb[9].mxu0  ;;  %v1105_v40 = vsel %vm772_vm3, %v1099_v38, -inf }
 0x4a7   : > { %1106 = vmax.xlane.f32.xlu0 %v1105_v40  ;;  %v1102_v41 = vpop.f32.mrb[10].mxu0 }
 0x4a8   : > { %v878_v42 = vpop.f32.mrb[12].mxu1  ;;  %v2107_v43 = vpop.f32.mrb[11].mxu0 }
 0x4a9   : > { %v2082_v44 = vpop.f32.mrb[13].mxu1  ;;  %v884_v45 = vsel %vm772_vm3, %v878_v42, -inf }
 0x4aa   : > { %885 = vmax.xlane.f32.xlu1 %v884_v45  ;;  %v881_v46 = vpop.f32.mrb[14].mxu1 }
 0x4ab   : > { %v2083_v47 = vpop.f32.mrb[15].mxu1 }
 0x4ad   : > { %v1209_v48 = vpop.f32.mrb[12].mxu0 }
 0x4ae   : > { %v2118_v49 = vpop.f32.mrb[13].mxu0  ;;  %v1215_v50 = vsel %vm772_vm3, %v1209_v48, -inf }
 0x4af   : > { %v1212_v51 = vpop.f32.mrb[14].mxu0  ;;  %1216 = vmax.xlane.f32.xlu1 %v1215_v50 }
 0x4b0   : > { %v2119_v52 = vpop.f32.mrb[15].mxu0 }
 0x4b5   : > { %v1319_v54 = vpop.f32.mrb[16].mxu0 }
 0x4b6   : > { %v2130_v55 = vpop.f32.mrb[17].mxu0  ;;  %v1325_v56 = vsel %vm772_vm3, %v1319_v54, -inf }
 0x4b7   : > { %1326 = vmax.xlane.f32.xlu0 %v1325_v56  ;;  %v1322_v57 = vpop.f32.mrb[18].mxu0 }
 0x4b8   : > { %v2131_v58 = vpop.f32.mrb[19].mxu0 }
 0x4bd   : > { %v1429_v59 = vpop.f32.mrb[20].mxu0 }
 0x4be   : > { %v2142_v60 = vpop.f32.mrb[21].mxu0  ;;  %v1435_v61 = vsel %vm772_vm3, %v1429_v59, -inf }
 0x4bf   : > { %v1432_v62 = vpop.f32.mrb[22].mxu0  ;;  %1436 = vmax.xlane.f32.xlu1 %v1435_v61 }
 0x4c0   : > { %v2143_v63 = vpop.f32.mrb[23].mxu0 }
 0x4c5   : > { %v1539_v0 = vpop.f32.mrb[24].mxu0 }
 0x4c6   : > { %v2154_v2 = vpop.f32.mrb[25].mxu0  ;;  %v1545_v3 = vsel %vm772_vm3, %v1539_v0, -inf }
 0x4c7   : > { %1546 = vmax.xlane.f32.xlu0 %v1545_v3  ;;  %v1542_v4 = vpop.f32.mrb[26].mxu0 }
 0x4c8   : > { %v2155_v5 = vpop.f32.mrb[27].mxu0 }
 0x52c   : > { %v997_v6 = vpop.xlane.xlu0 %996 }
 0x52d   : > { %v998_v7 = vsub.f32 %v989_v29, %v997_v6 }
 0x52f   : > { %v999_v8 = vmul.f32 1.442695, %v998_v7 }
 0x531   : > { %2322 = vpow2.f32 %v999_v8 }
 0x534   : > { %v1107_v9 = vpop.xlane.xlu0 %1106 }
 0x535   : > { %v1108_v10 = vsub.f32 %v1099_v38, %v1107_v9 }
 0x537   : > { %v1109_v11 = vmul.f32 1.442695, %v1108_v10  ;;  %v886_v12 = vpop.xlane.xlu1 %885 }
 0x538   : > { %v887_v13 = vsub.f32 %v878_v42, %v886_v12 }
 0x539   : > { %2324 = vpow2.f32 %v1109_v11 }
 0x53a   : > { %v888_v14 = vmul.f32 1.442695, %v887_v13 }
 0x53b   : > { %v2996_v15 = vpop.eup %2322 }
 0x53c   : > { %2326 = vpow2.f32 %v888_v14  ;;  %v1217_v16 = vpop.xlane.xlu1 %1216  ;;  %v1001_v17 = vsel %vm772_vm3, %v2996_v15, 0.0 }
 0x53d   : > { %v1218_v18 = vsub.f32 %v1209_v48, %v1217_v16  ;;  %1002 = vadd.xlane.f32.xlu0 %v1001_v17 }
 0x53f   : > { %v1219_v19 = vmul.f32 1.442695, %v1218_v18 }
 0x541   : > { %2328 = vpow2.f32 %v1219_v19 }
 0x543   : > { %v3000_v21 = vpop.eup %2324 }
 0x544   : > { %v1327_v22 = vpop.xlane.xlu0 %1326  ;;  %v1111_v23 = vsel %vm772_vm3, %v3000_v21, 0.0 }
 0x545   : > { %v1328_v24 = vsub.f32 %v1319_v54, %v1327_v22  ;;  %1112 = vadd.xlane.f32.xlu1 %v1111_v23 }
 0x546   : > { %v2327_v25 = vpop.eup %2326 }
 0x547   : > { %v1329_v26 = vmul.f32 1.442695, %v1328_v24  ;;  %v890_v27 = vsel %vm772_vm3, %v2327_v25, 0.0 }
 0x549   : > { %2330 = vpow2.f32 %v1329_v26  ;;  %891 = vadd.xlane.f32.xlu1 %v890_v27 }
 0x54b   : > { %v3005_v28 = vpop.eup %2328 }
 0x54c   : > { %v1221_v29 = vsel %vm772_vm3, %v3005_v28, 0.0  ;;  %v1437_v32 = vpop.xlane.xlu1 %1436 }
 0x54d   : > { %1222 = vadd.xlane.f32.xlu0 %v1221_v29  ;;  %v1438_v34 = vsub.f32 %v1429_v59, %v1437_v32 }
 0x54f   : > { %v1439_v35 = vmul.f32 1.442695, %v1438_v34 }
 0x551   : > { %2332 = vpow2.f32 %v1439_v35 }
 0x553   : > { %v3009_v30 = vpop.eup %2330 }
 0x554   : > { %v1331_v31 = vsel %vm772_vm3, %v3009_v30, 0.0  ;;  %v1547_v36 = vpop.xlane.xlu0 %1546 }
 0x555   : > { %1332 = vadd.xlane.f32.xlu0 %v1331_v31  ;;  %v1548_v37 = vsub.f32 %v1539_v0, %v1547_v36  ;;  %v2310_v36 = vld [vmem:[#allocation10] sm:$0xff]  }
 0x556   : > { %2163 = vmatpush3.bf16.msra.mxu0 %v2310_v36 }
 0x557   : > { %v1549_v39 = vmul.f32 1.442695, %v1548_v37  ;;  %v2311_v37 = vld [vmem:[#allocation10 + $0x8] sm:$0xff]   ;;  %2164 = vmatprep.subr.bf16.mxu0 %v2586_v1 }
 0x559   : > { %2334 = vpow2.f32 %v1549_v39 }
 0x55a   : > { %897 = vrot.lane.b32.xlu1 %v2938_v53, %s2588_s22  ;;  %2165 = vmatpush3.bf16.msra.mxu0 %v2311_v37 }
 0x55b   : > { %v3019_v38 = vpop.eup %2332  ;;  %2166 = vmatprep.subr.bf16.mxu0 %v2586_v1 }
 0x55c   : > { %v1441_v40 = vsel %vm772_vm3, %v3019_v38, 0.0 }
 0x563   : > { %v3023_v41 = vpop.eup %2334 }
 0x564   : > { %v1551_v42 = vsel %vm772_vm3, %v3023_v41, 0.0 }
 0x56b   : > { %1007 = vrot.lane.b32.xlu0 %v2938_v53, %s2589_s28 }
 0x56f   : > { %1117 = vrot.lane.b32.xlu0 %v2938_v53, %s2590_s11 }
 0x57e   : > { %1442 = vadd.xlane.f32.xlu1 %v1441_v40 }
 0x58e   : > { %1552 = vadd.xlane.f32.xlu0 %v1551_v42 }
 0x58f   : > { %1227 = vrot.lane.b32.xlu1 %v2938_v53, %s2591_s26 }
 0x593   : > { %1447 = vrot.lane.b32.xlu1 %v2938_v53, %s2593_s18 }
 0x597   : > { %1557 = vrot.lane.b32.xlu1 %v2938_v53, %s2594_s10 }
 0x5a4   : > { %1337 = vrot.lane.b32.xlu0 %v2938_v53, %s2592_s4 }
 0x5ca   : > { %v1003_v45 = vpop.xlane.xlu0 %1002 }
 0x5d2   : > { %v1113_v43 = vpop.xlane.xlu1 %1112 }
 0x5d6   : > { %v892_v44 = vpop.xlane.xlu1 %891 }
 0x5d7   : > { %2336 = vrcp.f32 %v892_v44  ;;  %v2314_v44 = vld [vmem:[#allocation10 + $0x20] sm:$0xff]  }
 0x5d8   : > { %2338 = vrcp.f32 %v1003_v45  ;;  %v2315_v45 = vld [vmem:[#allocation10 + $0x28] sm:$0xff]  }
 0x5d9   : > { %2340 = vrcp.f32 %v1113_v43  ;;  %v2313_v43 = vld [vmem:[#allocation10 + $0x18] sm:$0xff]  }
 0x5da   : > { %v898_v46 = vpop.permute.xlu1 %897  ;;  %v1223_v48 = vpop.xlane.xlu0 %1222 }
 0x5db   : > { %v903_v47 = vsel %vm788_vm2, %v898_v46, 0  ;;  %2342 = vrcp.f32 %v1223_v48  ;;  %v2316_v46 = vld [vmem:[#allocation10 + $0x30] sm:$0xff]  }
 0x5dc   : > { %2085 = vmatpush3.bf16.msra.mxu1 %v903_v47 }
 0x5dd   : > { %2096 = vmatprep.subr.bf16.mxu1 %v2586_v1 }
 0x5e1   : > { %v2337_v49 = vpop.eup %2336 }
 0x5e2   : > { %v894_v50 = vmul.f32 %v2337_v49, %v2327_v25  ;;  %v1333_v51 = vpop.xlane.xlu0 %1332  ;;  %v2339_v54 = vpop.eup %2338 }
 0x5e3   : > { %v1005_v56 = vmul.f32 %v2339_v54, %v2996_v15  ;;  %v2341_v59 = vpop.eup %2340  ;;  %2344 = vrcp.f32 %v1333_v51  ;;  %v2317_v51 = vld [vmem:[#allocation10 + $0x38] sm:$0xff]  }
 0x5e4   : > { %v895_v52 = vpack.c.bf16 %v894_v50, %v894_v50  ;;  %v1115_v61 = vmul.f32 %v2341_v59, %v3000_v21 }
 0x5e5   : > { %v1006_v58 = vpack.c.bf16 %v1005_v56, %v1005_v56  ;;  %v2343_v63 = vpop.eup %2342 }
 0x5e6   : > { %v1008_v55 = vpop.permute.xlu0 %1007  ;;  %2087 = vmatmul.mubr.msk.bf16.vlgmr.msra.gmra.mrb[16].mxu1 %vm772_vm3, %v895_v52  ;;  %v1116_v62 = vpack.c.bf16 %v1115_v61, %v1115_v61  ;;  %v1225_v2 = vmul.f32 %v2343_v63, %v3005_v28 }
 0x5e7   : > { %v1013_v53 = vsel %vm788_vm2, %v1008_v55, 0  ;;  %2098 = vmatprep.mubr.msk.bf16.mxu1 %vm2587_vm0, %v2586_v1 }
 0x5e8   : > { %2097 = vmatpush3.bf16.msra.mxu1 %v1013_v53  ;;  %v1226_v5 = vpack.c.bf16 %v1225_v2, %v1225_v2 }
 0x5e9   : > { %2108 = vmatprep.subr.bf16.mxu1 %v2586_v1 }
 0x5ea   : > { %v1118_v57 = vpop.permute.xlu0 %1117 }
 0x5eb   : > { %v1123_v60 = vsel %vm788_vm2, %v1118_v57, 0 }
 0x5ed   : > { %v2345_v6 = vpop.eup %2344 }
 0x5ee   : > { %2099 = vmatmul.mubr.msk.bf16.vlgmr.msra.gmra.mrb[20].mxu1 %vm772_vm3, %v1006_v58  ;;  %v1335_v8 = vmul.f32 %v2345_v6, %v3009_v30 }
 0x5ef   : > { %2109 = vmatpush3.bf16.msra.mxu1 %v1123_v60  ;;  %2110 = vmatprep.mubr.msk.bf16.mxu1 %vm2587_vm0, %v2586_v1 }
 0x5f0   : > { %2120 = vmatprep.subr.bf16.mxu1 %v2586_v1  ;;  %v1336_v12 = vpack.c.bf16 %v1335_v8, %v1335_v8 }
 0x5f6   : > { %2111 = vmatmul.mubr.msk.bf16.vlgmr.msra.gmra.mrb[24].mxu1 %vm772_vm3, %v1116_v62 }
 0x5f7   : > { %2122 = vmatprep.mubr.msk.bf16.mxu1 %vm2587_vm0, %v2586_v1 }
 0x60b   : > { %v1443_v0 = vpop.xlane.xlu1 %1442 }
 0x60c   : > { %2346 = vrcp.f32 %v1443_v0 }
 0x60f   : > { %v1228_v3 = vpop.permute.xlu1 %1227 }
 0x610   : > { %v1233_v4 = vsel %vm788_vm2, %v1228_v3, 0 }
 0x611   : > { %2121 = vmatpush3.bf16.msra.mxu1 %v1233_v4 }
 0x612   : > { %2132 = vmatprep.subr.bf16.mxu1 %v2586_v1 }
 0x613   : > { %v1448_v11 = vpop.permute.xlu1 %1447 }
 0x614   : > { %2123 = vmatmul.mubr.msk.bf16.vlgmr.msra.gmra.mrb[28].mxu1 %vm772_vm3, %v1226_v5  ;;  %v1453_v14 = vsel %vm788_vm2, %v1448_v11, 0  ;;  %v1981_v11 = vld [vmem:[%s3155_s7] ss:$0 sm:$0xff] }
 0x615   : > { %2134 = vmatprep.mubr.msk.bf16.mxu1 %vm2587_vm0, %v2586_v1 }
 0x616   : > { %v2347_v13 = vpop.eup %2346 }
 0x617   : > { %v1445_v15 = vmul.f32 %v2347_v13, %v3019_v38  ;;  %v1558_v16 = vpop.permute.xlu1 %1557  ;;  %v2312_v38 = vld [vmem:[#allocation10 + $0x10] sm:$0xff]  }
 0x618   : > { %v1563_v19 = vsel %vm788_vm2, %v1558_v16, 0  ;;  %2167 = vmatpush3.bf16.msra.mxu0 %v2312_v38 }
 0x619   : > { %v1446_v17 = vpack.c.bf16 %v1445_v15, %v1445_v15  ;;  %2168 = vmatprep.subr.bf16.mxu0 %v2586_v1 }
 0x61b   : > { %v1553_v7 = vpop.xlane.xlu0 %1552 }
 0x61c   : > { %2348 = vrcp.f32 %v1553_v7  ;;  %2169 = vmatpush3.bf16.msra.mxu0 %v2313_v43 }
 0x61d   : > { %2170 = vmatprep.subr.bf16.mxu0 %v2586_v1 }
 0x61f   : > { %v1338_v9 = vpop.permute.xlu0 %1337 }
 0x620   : > { %v1343_v10 = vsel %vm788_vm2, %v1338_v9, 0  ;;  %2171 = vmatpush3.bf16.msra.mxu0 %v2314_v44 }
 0x621   : > { %2133 = vmatpush3.bf16.msra.mxu1 %v1343_v10  ;;  %2172 = vmatprep.subr.bf16.mxu0 %v2586_v1 }
 0x622   : > { %2144 = vmatprep.subr.bf16.mxu1 %v2586_v1 }
 0x624   : > { %2135 = vmatmul.mubr.msk.bf16.vlgmr.msra.gmra.mrb[32].mxu1 %vm772_vm3, %v1336_v12  ;;  %2173 = vmatpush3.bf16.msra.mxu0 %v2315_v45 }
 0x625   : > { %2145 = vmatpush3.bf16.msra.mxu1 %v1453_v14  ;;  %2146 = vmatprep.mubr.msk.bf16.mxu1 %vm2587_vm0, %v2586_v1 }
 0x626   : > { %2156 = vmatprep.subr.bf16.mxu1 %v2586_v1  ;;  %v2349_v18 = vpop.eup %2348  ;;  %2174 = vmatprep.subr.bf16.mxu0 %v2586_v1 }
 0x627   : > { %v1555_v21 = vmul.f32 %v2349_v18, %v3023_v41 }
 0x628   : > { %2175 = vmatpush3.bf16.msra.mxu0 %v2316_v46 }
 0x629   : > { %v1556_v22 = vpack.c.bf16 %v1555_v21, %v1555_v21  ;;  %2176 = vmatprep.subr.bf16.mxu0 %v2586_v1 }
 0x62c   : > { %2147 = vmatmul.mubr.msk.bf16.vlgmr.msra.gmra.mrb[36].mxu1 %vm772_vm3, %v1446_v17  ;;  %2177 = vmatpush3.bf16.msra.mxu0 %v2317_v51 }
 0x62d   : > { %2157 = vmatpush3.bf16.msra.mxu1 %v1563_v19  ;;  %2158 = vmatprep.mubr.msk.bf16.mxu1 %vm2587_vm0, %v2586_v1 }
 0x634   : > { %2159 = vmatmul.mubr.msk.bf16.vlgmr.msra.gmra.mrb[40].mxu1 %vm772_vm3, %v1556_v22 }
 0x6b9   : > { %v939_v23 = vpop.f32.mrb[16].mxu1 }
 0x6ba   : > { %1606 = vrot.lane.b32.xlu1 %v939_v23, %s2594_s10  ;;  %v2088_v24 = vpop.f32.mrb[17].mxu1 }
 0x6bb   : > { %v942_v25 = vpop.f32.mrb[18].mxu1 }
 0x6bc   : > { %v2089_v26 = vpop.f32.mrb[19].mxu1 }
 0x6bd   : > { %v1990_v26 = vld [vmem:[%s3156_s8] ss:$0 sm:$0xff] }
 0x6c1   : > { %v1049_v27 = vpop.f32.mrb[20].mxu1 }
 0x6c2   : > { %1610 = vrot.lane.b32.xlu1 %v1049_v27, %s2593_s18  ;;  %v2100_v28 = vpop.f32.mrb[21].mxu1  ;;  %s3191_s18 = sld [smem:[#allocation23_spill]] }
 0x6c3   : > { %v1052_v29 = vpop.f32.mrb[22].mxu1 }
 0x6c4   : > { %v2101_v30 = vpop.f32.mrb[23].mxu1 }
 0x6c9   : > { %v1159_v31 = vpop.f32.mrb[24].mxu1 }
 0x6ca   : > { %1614 = vrot.lane.b32.xlu0 %v1159_v31, %s2592_s4  ;;  %v2112_v32 = vpop.f32.mrb[25].mxu1 }
 0x6cb   : > { %v1162_v34 = vpop.f32.mrb[26].mxu1 }
 0x6cc   : > { %v2113_v35 = vpop.f32.mrb[27].mxu1 }
 0x6e7   : > { %v1269_v39 = vpop.f32.mrb[28].mxu1 }
 0x6e8   : > { %1618 = vrot.lane.b32.xlu1 %v1269_v39, %s2591_s26  ;;  %v2124_v40 = vpop.f32.mrb[29].mxu1 }
 0x6e9   : > { %v1272_v41 = vpop.f32.mrb[30].mxu1 }
 0x6ea   : > { %v2125_v42 = vpop.f32.mrb[31].mxu1 }
 0x6f7   : > { %v1379_v47 = vpop.f32.mrb[32].mxu1 }
 0x6f8   : > { %1622 = vrot.lane.b32.xlu0 %v1379_v47, %s2590_s11  ;;  %v2136_v48 = vpop.f32.mrb[33].mxu1 }
 0x6f9   : > { %v1382_v49 = vpop.f32.mrb[34].mxu1 }
 0x6fa   : > { %v2137_v50 = vpop.f32.mrb[35].mxu1 }
 0x6ff   : > { %v1489_v52 = vpop.f32.mrb[36].mxu1 }
 0x700   : > { %1626 = vrot.lane.b32.xlu1 %v1489_v52, %s2589_s28  ;;  %v2148_v54 = vpop.f32.mrb[37].mxu1  ;;  %s454_s28 = scalar_lea.vmem [#allocation11], %s2870_s20 }
 0x701   : > { %v1492_v55 = vpop.f32.mrb[38].mxu1  ;;  %s1802_s11 = sshll.u32 %s454_s28, 4  ;;  %s3106_s11 = int_to_ptr.vmem [resolvable:$true] %s1802_s11 }
 0x702   : > { %v2149_v53 = vpop.f32.mrb[39].mxu1  ;;  %s2496_s2 = scalar_lea.vmem %s3106_s11, 128 }
 0x703   : > { %p2497_p12 = scmp.ne.s32.totalorder %s3106_s11, %s2496_s2 }
 0x705   : > { %p2498_p1 = pnand %p2497_p12, %p3192_p2 }
 0x707   : > { %v1599_v56 = vpop.f32.mrb[40].mxu1  ;;  %p2499_p4 = pneg %p2498_p1 }
 0x708   : > { %1630 = vrot.lane.b32.xlu0 %v1599_v56, %s2588_s22  ;;  %v2160_v57 = vpop.f32.mrb[41].mxu1  ;;  %s1993_s22 = sshll.u32 %s2672_s17, 7  ;;  %s2595_s17 = smov [#allocation11]  }
 0x709   : > { %v1602_v58 = vpop.f32.mrb[42].mxu1  ;;  %s3104_s10 = scalar_lea.hbm %s3191_s18, %s1993_s22  ;;  %s2500_s20 = sshll.u32 %s2595_s17, 4  ;;  %s2501_s20 = int_to_ptr.vmem [resolvable:$false] %s2500_s20 }
 0x70a   : > { %v2161_v59 = vpop.f32.mrb[43].mxu1  ;;  %s2502_s13 = scalar_lea.vmem %s2501_s20, 256  ;;  %p2503_p0 = scmp.lt.s32.totalorder %s3106_s11, %s2501_s20 }
 0x70b   : > { %p2504_p8 = scmp.lt.s32.totalorder %s2502_s13, %s2496_s2 }
 0x70d   : > { %p2505_p6 = por %p2504_p8, %p2503_p0 }
 0x70f   : > { %p2506_p10 = pnand %p2505_p6, %p2499_p4 }
 0x72c   : > { %v1607_v60 = vpop.permute.xlu1 %1606 }
 0x72d   : > { %v1633_v63 = vsel %vm725_vm1, %v2988_v33, %v1607_v60 }
 0x734   : > { %v1611_v61 = vpop.permute.xlu1 %1610 }
 0x735   : > { %v1635_v0 = vsel %vm1634_vm4, %v1633_v63, %v1611_v61 }
 0x73c   : > { %v1615_v62 = vpop.permute.xlu0 %1614 }
 0x73d   : > { %v1637_v3 = vsel %vm1636_vm5, %v1635_v0, %v1615_v62 }
 0x75a   : > { %v1619_v1 = vpop.permute.xlu1 %1618 }
 0x75b   : > { %v1639_v5 = vsel %vm1638_vm6, %v1637_v3, %v1619_v1 }
 0x76a   : > { %v1623_v2 = vpop.permute.xlu0 %1622 }
 0x76b   : > { %v1641_v6 = vsel %vm1640_vm7, %v1639_v5, %v1623_v2 }
 0x772   : > { %v1627_v4 = vpop.permute.xlu1 %1626 }
 0x773   : > { %v1643_v7 = vsel %vm1642_vm8, %v1641_v6, %v1627_v4 }
 0x77a   : > { %v1631_v8 = vpop.permute.xlu0 %1630 }
 0x77b   : > { %v1645_v9 = vsel %vm1644_vm9, %v1643_v7, %v1631_v8 }
 0x77c   : > { %v1646_v10 = vpack.c.bf16 %v1645_v9, %v1645_v9 }
 0x77e   : > { %2179 = vmatmul.mubr.bf16.vlgmr.msra.gmra.mrb[28].mxu0 %v1646_v10 }
 0x851   : > { %v1752_v33 = vpop.f32.mrb[28].mxu0 }
 0x852   : > { %v1753_v12 = vadd.f32 %v1981_v11, %v1752_v33  ;;  %v2180_v13 = vpop.f32.mrb[29].mxu0 }
 0x853   : > { %v1755_v14 = vpop.f32.mrb[30].mxu0 }
 0x854   : > { %v2181_v15 = vpop.f32.mrb[31].mxu0  ;;  %v1758_v16 = vadd.f32 %v1753_v12, %v2897_v20  ;;  %v1991_v20 = vld [vmem:[%s3190_s9] ss:$0 sm:$0xff] }
 0x856   : > { %1759 = vadd.xlane.f32.xlu1 %v1758_v16 }
 0x8e3   : > { %v1760_v17 = vpop.xlane.xlu1 %1759 }
 0x8e4   : > { %v1762_v18 = vmul.f32 0.0078125, %v1760_v17 }
 0x8e6   : > { %v1763_v19 = vsub.f32 %v1758_v16, %v1762_v18 }
 0x8e8   : > { %v1764_v21 = vmul.f32 %v1763_v19, %v1763_v19 }
 0x8ea   : > { %1765 = vadd.xlane.f32.xlu0 %v1764_v21 }
 0x977   : > { %v1766_v22 = vpop.xlane.xlu0 %1765 }
 0x978   : > { %v1767_v23 = vmul.f32 0.0078125, %v1766_v22 }
 0x97a   : > { %v1768_v24 = vadd.f32 1e-05, %v1767_v23 }
 0x97c   : > { %2350 = vrsqrt.f32 %v1768_v24 }
 0x986   : > { %v2351_v25 = vpop.eup %2350 }
 0x987   : > { %v1770_v27 = vmul.f32 %v2351_v25, %v1763_v19 }
 0x989   : > { %v1778_v28 = vmul.f32 %v1990_v26, %v1770_v27 }
 0x98b   : > { %v1786_v29 = vadd.f32 %v1991_v20, %v1778_v28 }
 0x98d   : > { %1787 = vst [vmem:[%s454_s28] sm:$0xff] %v1786_v29 }
 0x98e   : > { %2509 = shalt.err (!%p2506_p10)
}
 0x98f   : > { %s2510_s6 = scalar_lea.hbm %s3104_s10, 128  ;;  %s2514_s23 = scalar_lea.hbm %s3191_s18, 256 }
 0x990   : > { %p2511_p13 = scmp.ne.s32.totalorder %s3104_s10, %s2510_s6  ;;  %p2515_p9 = scmp.lt.u32.totalorder %s3104_s10, %s3191_s18 }
 0x991   : > { %p2516_p3 = scmp.lt.u32.totalorder %s2514_s23, %s2510_s6  ;;  %p2518_p12 = scmp.lt.u32.totalorder %s2510_s6, %s3104_s10 }
 0x992   : > { %p2512_p5 = pnand %p2511_p13, %p3192_p2 }
 0x993   : > { %p2517_p7 = por %p2516_p3, %p2515_p9 }
 0x994   : > { %p2513_p11 = pneg %p2512_p5 }
 0x995   : > { %p2519_p1 = por %p2518_p12, %p2517_p7 }
 0x997   : > { %p2520_p4 = pnand %p2519_p1, %p2513_p11 }
 0x999   : > { %2523 = shalt.err (!%p2520_p4)
}
 0x99a   : > { %2198 = dma.vmem_to_hbm [thread:$0]  (%p3192_p2), %s3106_s11, 128, %s3104_s10, %s1789_s25  }
 0x99b PF: > { %s3193_s9 = sld [smem:[#allocation17_spill]]  ;;  %s3194_s22 = sld [smem:[#allocation18_spill]] }
 0x99c   : > { %p3196_p8 = scmp.ge.s32.totalorder %s2574_s16, 2 }
 0x9a1   : > { %s1814_s28 = sand.u32 1, %s3193_s9   ;;  %p3195_p0 = scmp.ne.s32.totalorder %s3194_s22, 0 }
 0x9a2   : > { %s1815_s26 = scalar_lea.sflag [#allocation4], %s1814_s28 }
 0x9a3   : > { %p2218_p6 = pnand %p3196_p8, %p3195_p0 }
 0x9a5   : > { %2557 = dma.done.wait (!%p2218_p6), %s1815_s26, 128  }
 0x9a6   : > { %2559 = vsyncadd (!%p2218_p6), %s1815_s26, 4294967168  ;;  %p27_p10 = scmp.ge.s32.totalorder %s2761_s30, 4   ;;  %s3197_s13 = smov %s2566_s14 }
 0x9a7   : > { %s3198_s14 = smov %s2570_s15  ;;  %s3199_s15 = smov %s2789_s24 }
 0x9a8   : > { %s3200_s16 = smov %s2761_s30  ;;  %29 = sbr.rel (!%p27_p10) target bundleno = 14 (0xe), region = 130 }
 0x9af   :  { %1820 = vsyncpa [#allocation3], 1 }
 0x9b0   :  { %1822 = vsyncpa [#allocation3 + $0x1], 1 }
 0x9b1   :  { %1823 = vsyncpa [#allocation6], 1 }
 0x9b2   :  { %1825 = vsyncpa [#allocation6 + $0x1], 1 }
 0x9b3   :  { %1826 = vsyncpa [#allocation9], 1 }
 0x9b4   :  { %1827 = vsyncpa [#allocation4], 1 }
 0x9b5   :  { %1829 = vsyncpa [#allocation4 + $0x1], 1 }

</bundles_post_ra>
